<compile_context>
chip_gen: v6e
topology: v6e:2x2x1
jax: 0.10.0
libtpu: 0.0.40
codegen_flags: <defaults>
</compile_context>

<pallas_src>
import functools
import math

import jax
import jax.numpy as jnp
from jax.experimental import pallas as pl
from jax.experimental.pallas import tpu as pltpu


# ----------------------------------------------------------------------------
# In-kernel helpers (traced inside Pallas kernels)
# ----------------------------------------------------------------------------

def _layernorm(y, g, b):
    """LayerNorm over the last dim (torch default eps=1e-5); math kept in f32."""
    mu = jnp.mean(y, axis=-1, keepdims=True)
    var = jnp.mean(jnp.square(y - mu), axis=-1, keepdims=True)
    return (y - mu) * jax.lax.rsqrt(var + 1e-5) * g + b


def _activate(h, act):
    if act == "relu":
        return jnp.maximum(h, 0.0)
    if act == "gelu":
        return jax.nn.gelu(h)
    return h


def _conv1d_same(x, w_flat, bias, K):
    """PyTorch-style 'same' Conv1d over the sequence axis, fully in-kernel.

    x:      (S, Cin) f32
    w_flat: (K*Cin, Cout) bf16  -- tap-major flattened conv weights
    bias:   (1, Cout) f32

    The K shifted taps are built from static slices of a zero-padded copy and
    concatenated along lanes so the whole conv is a single MXU matmul
    (no per-tap (S,S) shift matmuls, no per-tap iota/compare work)."""
    S, Cin = x.shape
    pad = K // 2
    if pad:
        z = jnp.zeros((pad, Cin), x.dtype)
        xp = jnp.concatenate([z, x, z], axis=0)           # (S + 2*pad, Cin)
    else:
        xp = x
    taps = [xp[k:k + S, :] for k in range(K)]             # each (S, Cin), static
    xcat = jnp.concatenate(taps, axis=1) if K > 1 else taps[0]
    xcat = xcat.astype(jnp.bfloat16)                      # one cast, lane-dense
    return jnp.dot(xcat, w_flat, preferred_element_type=jnp.float32) + bias


# ----------------------------------------------------------------------------
# Fused transformer stack kernel: all n_layers of (MHSA + LN + conv-FFN + LN)
# in one pallas_call, grid=(B, n_layers), activation resident across layers.
# ----------------------------------------------------------------------------

def _fft_stack_kernel(len_ref, x_ref, wqkv_ref, bqkv_ref, wo_ref, bo_ref,
                      g1_ref, b1_ref, wc1_ref, bc1_ref, wc2_ref, bc2_ref,
                      g2_ref, b2_ref, o_ref, carry_ref, *, H, Dh, K, act):
    b = pl.program_id(0)
    l = pl.program_id(1)

    # Layer 0 reads the (resident) HBM input block; later layers read the
    # f32 carry that stayed in VMEM.
    @pl.when(l == 0)
    def _():
        carry_ref[...] = x_ref[0].astype(jnp.float32)

    x = carry_ref[...]                                   # (S, D) f32
    S = x.shape[0]
    x16 = x.astype(jnp.bfloat16)

    # ---- Multi-head self-attention --------------------------------------
    # Fused QKV projection (1/sqrt(Dh) already folded into the Q columns).
    qkv = jnp.dot(x16, wqkv_ref[0],
                  preferred_element_type=jnp.float32) + bqkv_ref[0]
    qkv16 = qkv.astype(jnp.bfloat16)                     # cast once

    # Additive key mask built from the SMEM-prefetched length
    # (torch reference: positions with index > length get -inf).
    key_pos = jax.lax.broadcasted_iota(jnp.int32, (1, S), 1)
    mask = jnp.where(key_pos > len_ref[b], -jnp.inf, 0.0)      # (1, S) f32

    heads = []
    for h in range(H):
        q = qkv16[:, h * Dh:(h + 1) * Dh]
        k = qkv16[:, (H + h) * Dh:(H + h + 1) * Dh]
        v = qkv16[:, (2 * H + h) * Dh:(2 * H + h + 1) * Dh]
        s = jax.lax.dot_general(q, k, (((1,), (1,)), ((), ())),
                                preferred_element_type=jnp.float32)
        s = s + mask
        s = s - jnp.max(s, axis=-1, keepdims=True)
        p = jnp.exp(s)
        p = p / jnp.sum(p, axis=-1, keepdims=True)        # exact softmax
        heads.append(jnp.dot(p.astype(jnp.bfloat16), v,
                             preferred_element_type=jnp.float32
                             ).astype(jnp.bfloat16))      # (S, Dh)
    ctx = jnp.concatenate(heads, axis=1)                  # (S, H*Dh) bf16
    attn = jnp.dot(ctx, wo_ref[0],
                   preferred_element_type=jnp.float32) + bo_ref[0]

    # Residual + post-LayerNorm (attention sub-block).
    y = _layernorm(attn + x, g1_ref[0], b1_ref[0])

    # ---- Conv feed-forward: conv1 + act + conv2 + residual + LN ----------
    h1 = _activate(_conv1d_same(y, wc1_ref[0], bc1_ref[0], K), act)
    h2 = _conv1d_same(h1, wc2_ref[0], bc2_ref[0], K)
    out = _layernorm(h2 + y, g2_ref[0], b2_ref[0])

    carry_ref[...] = out
    o_ref[0] = out.astype(o_ref.dtype)                    # flushed after last l


def fft_stack(x, lengths, p, *, H, Dh, K, act):
    """Run the whole encoder/decoder Transformer stack in one pallas_call."""
    B, S, D = x.shape
    L = p["wqkv"].shape[0]
    kern = functools.partial(_fft_stack_kernel, H=H, Dh=Dh, K=K, act=act)

    weights = [p["wqkv"], p["bqkv"], p["wo"], p["bo"], p["g1"], p["b1"],
               p["wc1"], p["bc1"], p["wc2"], p["bc2"], p["g2"], p["b2"]]

    def stacked_spec(arr):
        zeros = (0,) * (arr.ndim - 1)
        return pl.BlockSpec((1,) + arr.shape[1:],
                            lambda b, l, lens: (l,) + zeros)

    in_seq_spec = pl.BlockSpec((1, S, D), lambda b, l, lens: (b, 0, 0))
    out_seq_spec = pl.BlockSpec((1, S, D), lambda b, l, lens: (b, 0, 0))

    grid_spec = pltpu.PrefetchScalarGridSpec(
        num_scalar_prefetch=1, grid=(B, L),
        in_specs=[in_seq_spec] + [stacked_spec(w) for w in weights],
        out_specs=out_seq_spec,
        scratch_shapes=[pltpu.VMEM((S, D), jnp.float32)])

    return pl.pallas_call(
        kern,
        out_shape=jax.ShapeDtypeStruct((B, S, D), jnp.bfloat16),
        grid_spec=grid_spec,
        compiler_params=pltpu.CompilerParams(
            dimension_semantics=("parallel", "arbitrary")),
    )(lengths, x, *weights)


# ----------------------------------------------------------------------------
# Fused duration predictor: [Conv1d(3)+ReLU+LN] x2 -> Linear(D,1), one launch.
# Output is lane-dense (B, 1, S); squeezed in the wrapper.
# ----------------------------------------------------------------------------

def _duration_predictor_kernel(x_ref, w1_ref, b1_ref, g1_ref, be1_ref,
                               w2_ref, b2_ref, g2_ref, be2_ref,
                               wl_ref, bl_ref, o_ref):
    x = x_ref[0].astype(jnp.float32)                      # (S, D)
    h = jnp.maximum(_conv1d_same(x, w1_ref[...], b1_ref[...], 3), 0.0)
    h = _layernorm(h, g1_ref[...], be1_ref[...])
    h = jnp.maximum(_conv1d_same(h, w2_ref[...], b2_ref[...], 3), 0.0)
    h = _layernorm(h, g2_ref[...], be2_ref[...])
    # Linear(D, 1) as a (1,D)x(S,D)^T contraction -> lane-dense (1, S) output.
    o_ref[0] = jax.lax.dot_general(
        wl_ref[...], h.astype(jnp.bfloat16),
        (((1,), (1,)), ((), ())),
        preferred_element_type=jnp.float32) + bl_ref[...]


def duration_predictor(x, p):
    B, S, D = x.shape

    def full_spec(arr):
        zeros = (0,) * arr.ndim
        return pl.BlockSpec(arr.shape, lambda b: zeros)

    weights = [p["w1"], p["b1"], p["g1"], p["be1"], p["w2"], p["b2"],
               p["g2"], p["be2"], p["wl"], p["bl"]]
    out = pl.pallas_call(
        _duration_predictor_kernel,
        out_shape=jax.ShapeDtypeStruct((B, 1, S), jnp.float32),
        grid=(B,),
        in_specs=[pl.BlockSpec((1, S, D), lambda b: (b, 0, 0))]
                 + [full_spec(w) for w in weights],
        out_specs=pl.BlockSpec((1, 1, S), lambda b: (b, 0, 0)),
        compiler_params=pltpu.CompilerParams(dimension_semantics=("parallel",)),
    )(x, *weights)
    return out[:, 0, :]


# ----------------------------------------------------------------------------
# duplicate_by_duration: duration mask generated in-kernel, keep-mask fused.
# ----------------------------------------------------------------------------

def _duplicate_kernel(mel_len_ref, dur_ref, cum_ref, enc_ref, o_ref, *, S_mel):
    b = pl.program_id(0)
    dur = dur_ref[0]                                      # (1, S_tok) int32
    cum = cum_ref[0]                                      # (1, S_tok) int32
    S_tok = dur.shape[-1]
    m_idx = jax.lax.broadcasted_iota(jnp.int32, (S_mel, S_tok), 0)
    sel = jnp.logical_and(m_idx < cum, m_idx >= cum - dur)
    row = jax.lax.broadcasted_iota(jnp.int32, (S_mel, 1), 0)
    keep = row <= mel_len_ref[b]                          # melspec keep-mask fused
    mask = jnp.where(jnp.logical_and(sel, keep), 1.0, 0.0).astype(jnp.bfloat16)
    # (S_mel, S_tok) x (S_tok, D) MXU orientation (no transpose).
    # TODO(synk): at realistic S_mel/S_tok replace with a scalar-prefetched
    # row gather instead of a one-hot matmul.
    o_ref[0] = jnp.dot(mask, enc_ref[0],
                       preferred_element_type=jnp.float32).astype(o_ref.dtype)


def duplicate_by_duration(enc, durations, melspec_length, S_mel):
    B, S_tok, D = enc.shape
    durations = durations.astype(jnp.int32)
    cum = jnp.cumsum(durations, axis=1)
    dur3 = durations.reshape(B, 1, S_tok)
    cum3 = cum.reshape(B, 1, S_tok)
    kern = functools.partial(_duplicate_kernel, S_mel=S_mel)
    grid_spec = pltpu.PrefetchScalarGridSpec(
        num_scalar_prefetch=1, grid=(B,),
        in_specs=[pl.BlockSpec((1, 1, S_tok), lambda b, ml: (b, 0, 0)),
                  pl.BlockSpec((1, 1, S_tok), lambda b, ml: (b, 0, 0)),
                  pl.BlockSpec((1, S_tok, D), lambda b, ml: (b, 0, 0))],
        out_specs=pl.BlockSpec((1, S_mel, D), lambda b, ml: (b, 0, 0)))
    return pl.pallas_call(
        kern,
        out_shape=jax.ShapeDtypeStruct((B, S_mel, D), jnp.bfloat16),
        grid_spec=grid_spec,
        compiler_params=pltpu.CompilerParams(dimension_semantics=("parallel",)),
    )(melspec_length.astype(jnp.int32), dur3, cum3, enc)


# ----------------------------------------------------------------------------
# Output linear layer: writes the (B, out_size, S_mel) orientation directly.
# ----------------------------------------------------------------------------

def _output_linear_kernel(x_ref, wt_ref, b_ref, o_ref):
    # wt: (N, D) bf16 (pre-transposed); x: (S, D) bf16; contract D -> (N, S).
    o_ref[0] = jax.lax.dot_general(
        wt_ref[...], x_ref[0].astype(jnp.bfloat16),
        (((1,), (1,)), ((), ())),
        preferred_element_type=jnp.float32) + b_ref[...]


def output_linear(x, wt, b):
    B, S, D = x.shape
    N = wt.shape[0]
    return pl.pallas_call(
        _output_linear_kernel,
        out_shape=jax.ShapeDtypeStruct((B, N, S), jnp.float32),
        grid=(B,),
        in_specs=[pl.BlockSpec((1, S, D), lambda bi: (bi, 0, 0)),
                  pl.BlockSpec(wt.shape, lambda bi: (0, 0)),
                  pl.BlockSpec(b.shape, lambda bi: (0, 0))],
        out_specs=pl.BlockSpec((1, N, S), lambda bi: (bi, 0, 0)),
        compiler_params=pltpu.CompilerParams(dimension_semantics=("parallel",)),
    )(x, wt, b)


# ----------------------------------------------------------------------------
# Model glue (plain JAX: embedding gather, PE addition, orchestration)
# ----------------------------------------------------------------------------

def make_positional_encoding(maxlen, D):
    den = jnp.exp(-jnp.arange(0, D, 2, dtype=jnp.float32) * math.log(10000.0) / D)
    pos = jnp.arange(maxlen, dtype=jnp.float32)[:, None]
    pe = jnp.zeros((maxlen, D), jnp.float32)
    pe = pe.at[:, 0::2].set(jnp.sin(pos * den))
    pe = pe.at[:, 1::2].set(jnp.cos(pos * den))
    return pe


def init_params(key, vocab, maxlen, n_layers, D, inter, H, Dh, K, out_size):
    keys = jax.random.split(key, 16)

    def rnd(k, shape, scale=0.05):
        return jax.random.normal(k, shape, jnp.float32) * scale

    def stack(k):
        ks = jax.random.split(k, 4)
        wqkv = rnd(ks[0], (n_layers, D, 3 * H * Dh))
        # Fold the 1/sqrt(Dh) attention scale into the Q columns (free).
        wqkv = wqkv.at[:, :, :H * Dh].multiply(1.0 / math.sqrt(Dh))
        return dict(
            wqkv=wqkv.astype(jnp.bfloat16),
            bqkv=jnp.zeros((n_layers, 1, 3 * H * Dh), jnp.float32),
            wo=rnd(ks[1], (n_layers, H * Dh, D)).astype(jnp.bfloat16),
            bo=jnp.zeros((n_layers, 1, D), jnp.float32),
            g1=jnp.ones((n_layers, 1, D), jnp.float32),
            b1=jnp.zeros((n_layers, 1, D), jnp.float32),
            # Conv weights stored tap-major flattened: (L, K*Cin, Cout).
            wc1=rnd(ks[2], (n_layers, K * D, inter)).astype(jnp.bfloat16),
            bc1=jnp.zeros((n_layers, 1, inter), jnp.float32),
            wc2=rnd(ks[3], (n_layers, K * inter, D)).astype(jnp.bfloat16),
            bc2=jnp.zeros((n_layers, 1, D), jnp.float32),
            g2=jnp.ones((n_layers, 1, D), jnp.float32),
            b2=jnp.zeros((n_layers, 1, D), jnp.float32),
        )

    kemb, kenc, kdec, kout, kdp1, kdp2, kdpl = list(keys[:7])
    return dict(
        emb=rnd(kemb, (vocab, D), 1.0),
        pe=make_positional_encoding(maxlen, D),
        encoder=stack(kenc),
        decoder=stack(kdec),
        out_wt=rnd(kout, (out_size, D)).astype(jnp.bfloat16),   # pre-transposed
        out_b=jnp.zeros((out_size, 1), jnp.float32),
        dp=dict(
            w1=rnd(kdp1, (3 * D, D)).astype(jnp.bfloat16),
            b1=jnp.zeros((1, D), jnp.float32),
            g1=jnp.ones((1, D), jnp.float32),
            be1=jnp.zeros((1, D), jnp.float32),
            w2=rnd(kdp2, (3 * D, D)).astype(jnp.bfloat16),
            b2=jnp.zeros((1, D), jnp.float32),
            g2=jnp.ones((1, D), jnp.float32),
            be2=jnp.zeros((1, D), jnp.float32),
            wl=rnd(kdpl, (1, D)).astype(jnp.bfloat16),
            bl=jnp.zeros((1, 1), jnp.float32),
        ),
    )


@functools.partial(jax.jit, static_argnames=("S_mel", "H", "Dh", "K", "act"))
def fastspeech_forward(params, tokens, token_lengths, duration_multipliers,
                       melspec_length, *, S_mel, H, Dh, K, act):
    """train=True path of FastSpeechModel.forward."""
    B, _ = tokens.shape

    # Embedding + positional encoding.
    emb = params["emb"][tokens]                                 # (B, S_tok, D)
    # NOTE: reproduces the PyTorch module exactly -- SinCosPositionalEncoding
    # slices the PE table by the *batch* dim (embeddings.shape[0]), broadcasts
    # over the sequence, and forward adds it on top of the embeddings
    # (=> 2*emb + PE[:B]).
    pe = params["pe"][:B][:, None, :]
    x = (emb + (emb + pe)).astype(jnp.bfloat16)

    tl = token_lengths.astype(jnp.int32)
    encoder_result = fft_stack(x, tl, params["encoder"], H=H, Dh=Dh, K=K, act=act)

    length_predictions = duration_predictor(encoder_result, params["dp"])

    dec_in = duplicate_by_duration(encoder_result, duration_multipliers,
                                   melspec_length, S_mel)

    ml = melspec_length.astype(jnp.int32)
    y = fft_stack(dec_in, ml, params["decoder"], H=H, Dh=Dh, K=K, act=act)

    # Kernel already writes the (B, out_size, S_mel) orientation (no transpose).
    out = output_linear(y, params["out_wt"], params["out_b"])
    return out, length_predictions


# ----------------------------------------------------------------------------
# Main
# ----------------------------------------------------------------------------

if __name__ == "__main__":
    # Hyperparameters (small, consistent with the module's __init__).
    vocab_size = 20
    max_len = 64
    n_layers = 2
    output_size = 24           # mel bins
    model_size = 32
    intermidiate_size = 64
    itermidiate_kernel_size = 3
    activation = "relu"
    n_heads = 2
    size_per_head = 16
    # normalization_type / dropout_prob: LayerNorm assumed; dropout is identity.

    key = jax.random.PRNGKey(0)
    pkey, tkey = jax.random.split(key)
    params = init_params(pkey, vocab_size, max_len, n_layers, model_size,
                         intermidiate_size, n_heads, size_per_head,
                         itermidiate_kernel_size, output_size)

    B, S_tok = 2, 8
    tokens = jax.random.randint(tkey, (B, S_tok), 0, vocab_size)
    token_lengths = jnp.array([6, 7], dtype=jnp.int32)
    duration_multipliers = jnp.array([[2, 1, 2, 1, 2, 1, 2, 2],
                                      [1, 2, 1, 2, 1, 2, 1, 1]], dtype=jnp.int32)
    melspec_length = duration_multipliers.sum(axis=1) - 1
    S_mel = int(duration_multipliers.sum(axis=1).max())         # static mel length

    mel_out, length_pred = fastspeech_forward(
        params, tokens, token_lengths, duration_multipliers, melspec_length,
        S_mel=S_mel, H=n_heads, Dh=size_per_head,
        K=itermidiate_kernel_size, act=activation)

    mel_out = jax.block_until_ready(mel_out)
    length_pred = jax.block_until_ready(length_pred)

    assert mel_out.shape == (B, output_size, S_mel), mel_out.shape
    assert length_pred.shape == (B, S_tok), length_pred.shape
    assert bool(jnp.all(jnp.isfinite(mel_out))) and bool(jnp.all(jnp.isfinite(length_pred)))

    print("KERNEL_OK")
</pallas_src>

<mosaic_0001>
module attributes {stable_mosaic.version = 11 : i64} {
  func.func @_duplicate_kernel(%arg0: i32, %arg1: memref<2xi32, #tpu.memory_space<smem>>, %arg2: memref<1x1x8xi32, #tpu.memory_space<vmem>>, %arg3: memref<1x1x8xi32, #tpu.memory_space<vmem>>, %arg4: memref<1x8x32xbf16, #tpu.memory_space<vmem>>, %arg5: memref<1x13x32xbf16, #tpu.memory_space<vmem>>) attributes {dimension_semantics = [#tpu.dimension_semantics<parallel>], iteration_bounds = array<i64: 2>, scalar_prefetch = 1 : i64, scratch_operands = 0 : i64, tpu.core_type = #tpu.core_type<tc>, window_params = [{transform_indices = @transform_0, window_bounds = array<i64: 1, 1, 8>}, {transform_indices = @transform_1, window_bounds = array<i64: 1, 1, 8>}, {transform_indices = @transform_2, window_bounds = array<i64: 1, 8, 32>}, {transform_indices = @transform_3, window_bounds = array<i64: 1, 13, 32>}]} {
    %c0 = arith.constant 0 : index
    %c0_0 = arith.constant 0 : index
    %c0_1 = arith.constant 0 : index
    %0 = vector.load %arg2[%c0, %c0_0, %c0_1] : memref<1x1x8xi32, #tpu.memory_space<vmem>>, vector<1x1x8xi32>
    %1 = vector.shape_cast %0 : vector<1x1x8xi32> to vector<1x8xi32>
    %c0_2 = arith.constant 0 : index
    %c0_3 = arith.constant 0 : index
    %c0_4 = arith.constant 0 : index
    %2 = vector.load %arg3[%c0_2, %c0_3, %c0_4] : memref<1x1x8xi32, #tpu.memory_space<vmem>>, vector<1x1x8xi32>
    %3 = vector.shape_cast %2 : vector<1x1x8xi32> to vector<1x8xi32>
    %4 = tpu.iota {dimensions = array<i32: 0>} : vector<13x8xi32>
    %5 = vector.broadcast %3 : vector<1x8xi32> to vector<13x8xi32>
    %6 = arith.cmpi slt, %4, %5 : vector<13x8xi32>
    %7 = arith.subi %3, %1 : vector<1x8xi32>
    %8 = vector.broadcast %7 : vector<1x8xi32> to vector<13x8xi32>
    %9 = arith.cmpi sge, %4, %8 : vector<13x8xi32>
    %10 = arith.andi %6, %9 : vector<13x8xi1>
    %11 = tpu.iota {dimensions = array<i32: 0>} : vector<13x1xi32>
    %12 = arith.index_cast %arg0 : i32 to index
    %13 = memref.load %arg1[%12] : memref<2xi32, #tpu.memory_space<smem>>
    %14 = vector.broadcast %13 : i32 to vector<13x1xi32>
    %15 = arith.cmpi sle, %11, %14 : vector<13x1xi32>
    %16 = vector.broadcast %15 : vector<13x1xi1> to vector<13x8xi1>
    %17 = arith.andi %10, %16 : vector<13x8xi1>
    %cst = arith.constant 1.000000e+00 : f32
    %cst_5 = arith.constant 0.000000e+00 : f32
    %18 = vector.broadcast %cst : f32 to vector<13x8xf32>
    %19 = vector.broadcast %cst_5 : f32 to vector<13x8xf32>
    %20 = arith.select %17, %18, %19 : vector<13x8xi1>, vector<13x8xf32>
    %21 = arith.truncf %20 : vector<13x8xf32> to vector<13x8xbf16>
    %c0_6 = arith.constant 0 : index
    %c0_7 = arith.constant 0 : index
    %c0_8 = arith.constant 0 : index
    %22 = vector.load %arg4[%c0_6, %c0_7, %c0_8] : memref<1x8x32xbf16, #tpu.memory_space<vmem>>, vector<1x8x32xbf16>
    %23 = vector.shape_cast %22 : vector<1x8x32xbf16> to vector<8x32xbf16>
    %cst_9 = arith.constant dense<0.000000e+00> : vector<13x32xf32>
    %24 = tpu.matmul %21, %23, %cst_9 {dimension_numbers = #tpu.dot_dimension_numbers<[1], [0], [0], [1], [0, 0, 1, 1], [], []>} : vector<13x8xbf16>, vector<8x32xbf16>, vector<13x32xf32> -> vector<13x32xf32>
    %25 = arith.truncf %24 : vector<13x32xf32> to vector<13x32xbf16>
    %c0_10 = arith.constant 0 : index
    %c0_11 = arith.constant 0 : index
    %c0_12 = arith.constant 0 : index
    %26 = vector.load %arg5[%c0_10, %c0_11, %c0_12] : memref<1x13x32xbf16, #tpu.memory_space<vmem>>, vector<1x13x32xbf16>
    %27 = vector.shape_cast %26 : vector<1x13x32xbf16> to vector<13x32xbf16>
    %28 = vector.shape_cast %25 : vector<13x32xbf16> to vector<1x13x32xbf16>
    tpu.vector_store %arg5[%c0_10, %c0_11, %c0_12], %28 {strides = array<i32>} : memref<1x13x32xbf16, #tpu.memory_space<vmem>>, vector<1x13x32xbf16>,
    return
  }
  func.func @transform_0(%arg0: i32, %arg1: memref<2xi32, #tpu.memory_space<smem>>) -> (i32, i32, i32) {
    %c0_i32 = arith.constant 0 : i32
    %c0_i32_0 = arith.constant 0 : i32
    %c0_i32_1 = arith.constant 0 : i32
    return %arg0, %c0_i32, %c0_i32_0 : i32, i32, i32
  }
  func.func @transform_1(%arg0: i32, %arg1: memref<2xi32, #tpu.memory_space<smem>>) -> (i32, i32, i32) {
    %c0_i32 = arith.constant 0 : i32
    %c0_i32_0 = arith.constant 0 : i32
    %c0_i32_1 = arith.constant 0 : i32
    return %arg0, %c0_i32, %c0_i32_0 : i32, i32, i32
  }
  func.func @transform_2(%arg0: i32, %arg1: memref<2xi32, #tpu.memory_space<smem>>) -> (i32, i32, i32) {
    %c0_i32 = arith.constant 0 : i32
    %c0_i32_0 = arith.constant 0 : i32
    %c0_i32_1 = arith.constant 0 : i32
    return %arg0, %c0_i32, %c0_i32_0 : i32, i32, i32
  }
  func.func @transform_3(%arg0: i32, %arg1: memref<2xi32, #tpu.memory_space<smem>>) -> (i32, i32, i32) {
    %c0_i32 = arith.constant 0 : i32
    %c0_i32_0 = arith.constant 0 : i32
    %c0_i32_1 = arith.constant 0 : i32
    return %arg0, %c0_i32, %c0_i32_0 : i32, i32, i32
  }
}

module attributes {stable_mosaic.version = 11 : i64} {
  func.func @_fft_stack_kernel(%arg0: i32, %arg1: i32, %arg2: memref<2xi32, #tpu.memory_space<smem>>, %arg3: memref<1x13x32xbf16, #tpu.memory_space<vmem>>, %arg4: memref<1x32x96xbf16, #tpu.memory_space<vmem>>, %arg5: memref<1x1x96xf32, #tpu.memory_space<vmem>>, %arg6: memref<1x32x32xbf16, #tpu.memory_space<vmem>>, %arg7: memref<1x1x32xf32, #tpu.memory_space<vmem>>, %arg8: memref<1x1x32xf32, #tpu.memory_space<vmem>>, %arg9: memref<1x1x32xf32, #tpu.memory_space<vmem>>, %arg10: memref<1x96x64xbf16, #tpu.memory_space<vmem>>, %arg11: memref<1x1x64xf32, #tpu.memory_space<vmem>>, %arg12: memref<1x192x32xbf16, #tpu.memory_space<vmem>>, %arg13: memref<1x1x32xf32, #tpu.memory_space<vmem>>, %arg14: memref<1x1x32xf32, #tpu.memory_space<vmem>>, %arg15: memref<1x1x32xf32, #tpu.memory_space<vmem>>, %arg16: memref<1x13x32xbf16, #tpu.memory_space<vmem>>, %arg17: memref<13x32xf32, #tpu.memory_space<vmem>>) attributes {dimension_semantics = [#tpu.dimension_semantics<parallel>, #tpu.dimension_semantics<arbitrary>], iteration_bounds = array<i64: 2, 2>, scalar_prefetch = 1 : i64, scratch_operands = 1 : i64, tpu.core_type = #tpu.core_type<tc>, window_params = [{transform_indices = @transform_0, window_bounds = array<i64: 1, 13, 32>}, {transform_indices = @transform_1, window_bounds = array<i64: 1, 32, 96>}, {transform_indices = @transform_2, window_bounds = array<i64: 1, 1, 96>}, {transform_indices = @transform_3, window_bounds = array<i64: 1, 32, 32>}, {transform_indices = @transform_4, window_bounds = array<i64: 1, 1, 32>}, {transform_indices = @transform_5, window_bounds = array<i64: 1, 1, 32>}, {transform_indices = @transform_6, window_bounds = array<i64: 1, 1, 32>}, {transform_indices = @transform_7, window_bounds = array<i64: 1, 96, 64>}, {transform_indices = @transform_8, window_bounds = array<i64: 1, 1, 64>}, {transform_indices = @transform_9, window_bounds = array<i64: 1, 192, 32>}, {transform_indices = @transform_10, window_bounds = array<i64: 1, 1, 32>}, {transform_indices = @transform_11, window_bounds = array<i64: 1, 1, 32>}, {transform_indices = @transform_12, window_bounds = array<i64: 1, 1, 32>}, {transform_indices = @transform_13, window_bounds = array<i64: 1, 13, 32>}]} {
    %c0_i32 = arith.constant 0 : i32
    %0 = arith.cmpi eq, %arg1, %c0_i32 : i32
    %1 = arith.extui %0 : i1 to i32
    %c0_i32_0 = arith.constant 0 : i32
    %2 = arith.cmpi ne, %1, %c0_i32_0 : i32
    scf.if %2 {
      %c0_69 = arith.constant 0 : index
      %c0_70 = arith.constant 0 : index
      %c0_71 = arith.constant 0 : index
      %154 = vector.load %arg3[%c0_69, %c0_70, %c0_71] : memref<1x13x32xbf16, #tpu.memory_space<vmem>>, vector<1x13x32xbf16>
      %155 = vector.shape_cast %154 : vector<1x13x32xbf16> to vector<13x32xbf16>
      %156 = arith.extf %155 : vector<13x32xbf16> to vector<13x32xf32>
      %c0_72 = arith.constant 0 : index
      %c0_73 = arith.constant 0 : index
      %157 = vector.load %arg17[%c0_72, %c0_73] : memref<13x32xf32, #tpu.memory_space<vmem>>, vector<13x32xf32>
      tpu.vector_store %arg17[%c0_72, %c0_73], %156 {strides = array<i32>} : memref<13x32xf32, #tpu.memory_space<vmem>>, vector<13x32xf32>,
    } else {
    }
    %c0 = arith.constant 0 : index
    %c0_1 = arith.constant 0 : index
    %3 = vector.load %arg17[%c0, %c0_1] : memref<13x32xf32, #tpu.memory_space<vmem>>, vector<13x32xf32>
    %4 = arith.truncf %3 : vector<13x32xf32> to vector<13x32xbf16>
    %c0_2 = arith.constant 0 : index
    %c0_3 = arith.constant 0 : index
    %c0_4 = arith.constant 0 : index
    %5 = vector.load %arg4[%c0_2, %c0_3, %c0_4] : memref<1x32x96xbf16, #tpu.memory_space<vmem>>, vector<1x32x96xbf16>
    %6 = vector.shape_cast %5 : vector<1x32x96xbf16> to vector<32x96xbf16>
    %cst = arith.constant dense<0.000000e+00> : vector<13x96xf32>
    %7 = tpu.matmul %4, %6, %cst {dimension_numbers = #tpu.dot_dimension_numbers<[1], [0], [0], [1], [0, 0, 1, 1], [], []>} : vector<13x32xbf16>, vector<32x96xbf16>, vector<13x96xf32> -> vector<13x96xf32>
    %c0_5 = arith.constant 0 : index
    %c0_6 = arith.constant 0 : index
    %c0_7 = arith.constant 0 : index
    %8 = vector.load %arg5[%c0_5, %c0_6, %c0_7] : memref<1x1x96xf32, #tpu.memory_space<vmem>>, vector<1x1x96xf32>
    %9 = vector.shape_cast %8 : vector<1x1x96xf32> to vector<1x96xf32>
    %10 = vector.broadcast %9 : vector<1x96xf32> to vector<13x96xf32>
    %11 = arith.addf %7, %10 : vector<13x96xf32>
    %12 = arith.truncf %11 : vector<13x96xf32> to vector<13x96xbf16>
    %13 = tpu.iota {dimensions = array<i32: 1>} : vector<1x13xi32>
    %14 = arith.index_cast %arg0 : i32 to index
    %15 = memref.load %arg2[%14] : memref<2xi32, #tpu.memory_space<smem>>
    %16 = vector.broadcast %15 : i32 to vector<1x13xi32>
    %17 = arith.cmpi sgt, %13, %16 : vector<1x13xi32>
    %cst_8 = arith.constant 0xFF800000 : f32
    %cst_9 = arith.constant 0.000000e+00 : f32
    %18 = vector.broadcast %cst_8 : f32 to vector<1x13xf32>
    %19 = vector.broadcast %cst_9 : f32 to vector<1x13xf32>
    %20 = arith.select %17, %18, %19 : vector<1x13xi1>, vector<1x13xf32>
    %21 = vector.extract_strided_slice %12 {offsets = [0, 0], sizes = [13, 16], strides = [1, 1]} : vector<13x96xbf16> to vector<13x16xbf16>
    %22 = vector.extract_strided_slice %12 {offsets = [0, 32], sizes = [13, 16], strides = [1, 1]} : vector<13x96xbf16> to vector<13x16xbf16>
    %23 = vector.extract_strided_slice %12 {offsets = [0, 64], sizes = [13, 16], strides = [1, 1]} : vector<13x96xbf16> to vector<13x16xbf16>
    %cst_10 = arith.constant dense<0.000000e+00> : vector<13x13xf32>
    %24 = tpu.matmul %21, %22, %cst_10 {dimension_numbers = #tpu.dot_dimension_numbers<[1], [1], [0], [0], [0, 0, 1, 0], [], []>} : vector<13x16xbf16>, vector<13x16xbf16>, vector<13x13xf32> -> vector<13x13xf32>
    %25 = vector.broadcast %20 : vector<1x13xf32> to vector<13x13xf32>
    %26 = arith.addf %24, %25 : vector<13x13xf32>
    %cst_11 = arith.constant dense<0xFF800000> : vector<13xf32>
    %27 = vector.multi_reduction <maximumf>, %26, %cst_11 [1] : vector<13x13xf32> to vector<13xf32>
    %28 = vector.shape_cast %27 : vector<13xf32> to vector<13x1xf32>
    %29 = vector.broadcast %28 : vector<13x1xf32> to vector<13x13xf32>
    %30 = arith.subf %26, %29 : vector<13x13xf32>
    %31 = math.exp %30 : vector<13x13xf32>
    %cst_12 = arith.constant dense<0.000000e+00> : vector<13xf32>
    %32 = vector.multi_reduction <add>, %31, %cst_12 [1] : vector<13x13xf32> to vector<13xf32>
    %33 = vector.shape_cast %32 : vector<13xf32> to vector<13x1xf32>
    %34 = vector.broadcast %33 : vector<13x1xf32> to vector<13x13xf32>
    %35 = arith.divf %31, %34 : vector<13x13xf32>
    %36 = arith.truncf %35 : vector<13x13xf32> to vector<13x13xbf16>
    %cst_13 = arith.constant dense<0.000000e+00> : vector<13x16xf32>
    %37 = tpu.matmul %36, %23, %cst_13 {dimension_numbers = #tpu.dot_dimension_numbers<[1], [0], [0], [1], [0, 0, 1, 1], [], []>} : vector<13x13xbf16>, vector<13x16xbf16>, vector<13x16xf32> -> vector<13x16xf32>
    %38 = arith.truncf %37 : vector<13x16xf32> to vector<13x16xbf16>
    %39 = vector.extract_strided_slice %12 {offsets = [0, 16], sizes = [13, 16], strides = [1, 1]} : vector<13x96xbf16> to vector<13x16xbf16>
    %40 = vector.extract_strided_slice %12 {offsets = [0, 48], sizes = [13, 16], strides = [1, 1]} : vector<13x96xbf16> to vector<13x16xbf16>
    %41 = vector.extract_strided_slice %12 {offsets = [0, 80], sizes = [13, 16], strides = [1, 1]} : vector<13x96xbf16> to vector<13x16xbf16>
    %cst_14 = arith.constant dense<0.000000e+00> : vector<13x13xf32>
    %42 = tpu.matmul %39, %40, %cst_14 {dimension_numbers = #tpu.dot_dimension_numbers<[1], [1], [0], [0], [0, 0, 1, 0], [], []>} : vector<13x16xbf16>, vector<13x16xbf16>, vector<13x13xf32> -> vector<13x13xf32>
    %43 = vector.broadcast %20 : vector<1x13xf32> to vector<13x13xf32>
    %44 = arith.addf %42, %43 : vector<13x13xf32>
    %cst_15 = arith.constant dense<0xFF800000> : vector<13xf32>
    %45 = vector.multi_reduction <maximumf>, %44, %cst_15 [1] : vector<13x13xf32> to vector<13xf32>
    %46 = vector.shape_cast %45 : vector<13xf32> to vector<13x1xf32>
    %47 = vector.broadcast %46 : vector<13x1xf32> to vector<13x13xf32>
    %48 = arith.subf %44, %47 : vector<13x13xf32>
    %49 = math.exp %48 : vector<13x13xf32>
    %cst_16 = arith.constant dense<0.000000e+00> : vector<13xf32>
    %50 = vector.multi_reduction <add>, %49, %cst_16 [1] : vector<13x13xf32> to vector<13xf32>
    %51 = vector.shape_cast %50 : vector<13xf32> to vector<13x1xf32>
    %52 = vector.broadcast %51 : vector<13x1xf32> to vector<13x13xf32>
    %53 = arith.divf %49, %52 : vector<13x13xf32>
    %54 = arith.truncf %53 : vector<13x13xf32> to vector<13x13xbf16>
    %cst_17 = arith.constant dense<0.000000e+00> : vector<13x16xf32>
    %55 = tpu.matmul %54, %41, %cst_17 {dimension_numbers = #tpu.dot_dimension_numbers<[1], [0], [0], [1], [0, 0, 1, 1], [], []>} : vector<13x13xbf16>, vector<13x16xbf16>, vector<13x16xf32> -> vector<13x16xf32>
    %56 = arith.truncf %55 : vector<13x16xf32> to vector<13x16xbf16>
    %57 = tpu.concatenate %38, %56 in 1 : vector<13x16xbf16>, vector<13x16xbf16> -> vector<13x32xbf16>
    %c0_18 = arith.constant 0 : index
    %c0_19 = arith.constant 0 : index
    %c0_20 = arith.constant 0 : index
    %58 = vector.load %arg6[%c0_18, %c0_19, %c0_20] : memref<1x32x32xbf16, #tpu.memory_space<vmem>>, vector<1x32x32xbf16>
    %59 = vector.shape_cast %58 : vector<1x32x32xbf16> to vector<32x32xbf16>
    %cst_21 = arith.constant dense<0.000000e+00> : vector<13x32xf32>
    %60 = tpu.matmul %57, %59, %cst_21 {dimension_numbers = #tpu.dot_dimension_numbers<[1], [0], [0], [1], [0, 0, 1, 1], [], []>} : vector<13x32xbf16>, vector<32x32xbf16>, vector<13x32xf32> -> vector<13x32xf32>
    %c0_22 = arith.constant 0 : index
    %c0_23 = arith.constant 0 : index
    %c0_24 = arith.constant 0 : index
    %61 = vector.load %arg7[%c0_22, %c0_23, %c0_24] : memref<1x1x32xf32, #tpu.memory_space<vmem>>, vector<1x1x32xf32>
    %62 = vector.shape_cast %61 : vector<1x1x32xf32> to vector<1x32xf32>
    %63 = vector.broadcast %62 : vector<1x32xf32> to vector<13x32xf32>
    %64 = arith.addf %60, %63 : vector<13x32xf32>
    %65 = arith.addf %64, %3 : vector<13x32xf32>
    %c0_25 = arith.constant 0 : index
    %c0_26 = arith.constant 0 : index
    %c0_27 = arith.constant 0 : index
    %66 = vector.load %arg8[%c0_25, %c0_26, %c0_27] : memref<1x1x32xf32, #tpu.memory_space<vmem>>, vector<1x1x32xf32>
    %67 = vector.shape_cast %66 : vector<1x1x32xf32> to vector<1x32xf32>
    %c0_28 = arith.constant 0 : index
    %c0_29 = arith.constant 0 : index
    %c0_30 = arith.constant 0 : index
    %68 = vector.load %arg9[%c0_28, %c0_29, %c0_30] : memref<1x1x32xf32, #tpu.memory_space<vmem>>, vector<1x1x32xf32>
    %69 = vector.shape_cast %68 : vector<1x1x32xf32> to vector<1x32xf32>
    %cst_31 = arith.constant dense<0.000000e+00> : vector<13xf32>
    %70 = vector.multi_reduction <add>, %65, %cst_31 [1] : vector<13x32xf32> to vector<13xf32>
    %71 = vector.shape_cast %70 : vector<13xf32> to vector<13x1xf32>
    %cst_32 = arith.constant 3.200000e+01 : f32
    %72 = vector.broadcast %cst_32 : f32 to vector<13x1xf32>
    %73 = arith.divf %71, %72 : vector<13x1xf32>
    %74 = vector.broadcast %73 : vector<13x1xf32> to vector<13x32xf32>
    %75 = arith.subf %65, %74 : vector<13x32xf32>
    %76 = arith.mulf %75, %75 : vector<13x32xf32>
    %cst_33 = arith.constant dense<0.000000e+00> : vector<13xf32>
    %77 = vector.multi_reduction <add>, %76, %cst_33 [1] : vector<13x32xf32> to vector<13xf32>
    %78 = vector.shape_cast %77 : vector<13xf32> to vector<13x1xf32>
    %cst_34 = arith.constant 3.200000e+01 : f32
    %79 = vector.broadcast %cst_34 : f32 to vector<13x1xf32>
    %80 = arith.divf %78, %79 : vector<13x1xf32>
    %81 = vector.broadcast %73 : vector<13x1xf32> to vector<13x32xf32>
    %82 = arith.subf %65, %81 : vector<13x32xf32>
    %cst_35 = arith.constant 9.99999974E-6 : f32
    %83 = vector.broadcast %cst_35 : f32 to vector<13x1xf32>
    %84 = arith.addf %80, %83 : vector<13x1xf32>
    %85 = math.rsqrt %84 : vector<13x1xf32>
    %86 = vector.broadcast %85 : vector<13x1xf32> to vector<13x32xf32>
    %87 = arith.mulf %82, %86 : vector<13x32xf32>
    %88 = vector.broadcast %67 : vector<1x32xf32> to vector<13x32xf32>
    %89 = arith.mulf %87, %88 : vector<13x32xf32>
    %90 = vector.broadcast %69 : vector<1x32xf32> to vector<13x32xf32>
    %91 = arith.addf %89, %90 : vector<13x32xf32>
    %c0_36 = arith.constant 0 : index
    %c0_37 = arith.constant 0 : index
    %c0_38 = arith.constant 0 : index
    %92 = vector.load %arg10[%c0_36, %c0_37, %c0_38] : memref<1x96x64xbf16, #tpu.memory_space<vmem>>, vector<1x96x64xbf16>
    %93 = vector.shape_cast %92 : vector<1x96x64xbf16> to vector<96x64xbf16>
    %c0_39 = arith.constant 0 : index
    %c0_40 = arith.constant 0 : index
    %c0_41 = arith.constant 0 : index
    %94 = vector.load %arg11[%c0_39, %c0_40, %c0_41] : memref<1x1x64xf32, #tpu.memory_space<vmem>>, vector<1x1x64xf32>
    %95 = vector.shape_cast %94 : vector<1x1x64xf32> to vector<1x64xf32>
    %cst_42 = arith.constant 0.000000e+00 : f32
    %96 = vector.broadcast %cst_42 : f32 to vector<1x32xf32>
    %97 = tpu.concatenate %96, %91, %96 in 0 : vector<1x32xf32>, vector<13x32xf32>, vector<1x32xf32> -> vector<15x32xf32>
    %98 = vector.extract_strided_slice %97 {offsets = [0, 0], sizes = [13, 32], strides = [1, 1]} : vector<15x32xf32> to vector<13x32xf32>
    %99 = vector.extract_strided_slice %97 {offsets = [1, 0], sizes = [13, 32], strides = [1, 1]} : vector<15x32xf32> to vector<13x32xf32>
    %100 = vector.extract_strided_slice %97 {offsets = [2, 0], sizes = [13, 32], strides = [1, 1]} : vector<15x32xf32> to vector<13x32xf32>
    %101 = tpu.concatenate %98, %99, %100 in 1 : vector<13x32xf32>, vector<13x32xf32>, vector<13x32xf32> -> vector<13x96xf32>
    %102 = arith.truncf %101 : vector<13x96xf32> to vector<13x96xbf16>
    %cst_43 = arith.constant dense<0.000000e+00> : vector<13x64xf32>
    %103 = tpu.matmul %102, %93, %cst_43 {dimension_numbers = #tpu.dot_dimension_numbers<[1], [0], [0], [1], [0, 0, 1, 1], [], []>} : vector<13x96xbf16>, vector<96x64xbf16>, vector<13x64xf32> -> vector<13x64xf32>
    %104 = vector.broadcast %95 : vector<1x64xf32> to vector<13x64xf32>
    %105 = arith.addf %103, %104 : vector<13x64xf32>
    %cst_44 = arith.constant 0.000000e+00 : f32
    %106 = vector.broadcast %cst_44 : f32 to vector<13x64xf32>
    %107 = arith.maximumf %105, %106 : vector<13x64xf32>
    %c0_45 = arith.constant 0 : index
    %c0_46 = arith.constant 0 : index
    %c0_47 = arith.constant 0 : index
    %108 = vector.load %arg12[%c0_45, %c0_46, %c0_47] : memref<1x192x32xbf16, #tpu.memory_space<vmem>>, vector<1x192x32xbf16>
    %109 = vector.shape_cast %108 : vector<1x192x32xbf16> to vector<192x32xbf16>
    %c0_48 = arith.constant 0 : index
    %c0_49 = arith.constant 0 : index
    %c0_50 = arith.constant 0 : index
    %110 = vector.load %arg13[%c0_48, %c0_49, %c0_50] : memref<1x1x32xf32, #tpu.memory_space<vmem>>, vector<1x1x32xf32>
    %111 = vector.shape_cast %110 : vector<1x1x32xf32> to vector<1x32xf32>
    %cst_51 = arith.constant 0.000000e+00 : f32
    %112 = vector.broadcast %cst_51 : f32 to vector<1x64xf32>
    %113 = tpu.concatenate %112, %107, %112 in 0 : vector<1x64xf32>, vector<13x64xf32>, vector<1x64xf32> -> vector<15x64xf32>
    %114 = vector.extract_strided_slice %113 {offsets = [0, 0], sizes = [13, 64], strides = [1, 1]} : vector<15x64xf32> to vector<13x64xf32>
    %115 = vector.extract_strided_slice %113 {offsets = [1, 0], sizes = [13, 64], strides = [1, 1]} : vector<15x64xf32> to vector<13x64xf32>
    %116 = vector.extract_strided_slice %113 {offsets = [2, 0], sizes = [13, 64], strides = [1, 1]} : vector<15x64xf32> to vector<13x64xf32>
    %117 = tpu.concatenate %114, %115, %116 in 1 : vector<13x64xf32>, vector<13x64xf32>, vector<13x64xf32> -> vector<13x192xf32>
    %118 = arith.truncf %117 : vector<13x192xf32> to vector<13x192xbf16>
    %cst_52 = arith.constant dense<0.000000e+00> : vector<13x32xf32>
    %119 = tpu.matmul %118, %109, %cst_52 {dimension_numbers = #tpu.dot_dimension_numbers<[1], [0], [0], [1], [0, 0, 1, 1], [], []>} : vector<13x192xbf16>, vector<192x32xbf16>, vector<13x32xf32> -> vector<13x32xf32>
    %120 = vector.broadcast %111 : vector<1x32xf32> to vector<13x32xf32>
    %121 = arith.addf %119, %120 : vector<13x32xf32>
    %122 = arith.addf %121, %91 : vector<13x32xf32>
    %c0_53 = arith.constant 0 : index
    %c0_54 = arith.constant 0 : index
    %c0_55 = arith.constant 0 : index
    %123 = vector.load %arg14[%c0_53, %c0_54, %c0_55] : memref<1x1x32xf32, #tpu.memory_space<vmem>>, vector<1x1x32xf32>
    %124 = vector.shape_cast %123 : vector<1x1x32xf32> to vector<1x32xf32>
    %c0_56 = arith.constant 0 : index
    %c0_57 = arith.constant 0 : index
    %c0_58 = arith.constant 0 : index
    %125 = vector.load %arg15[%c0_56, %c0_57, %c0_58] : memref<1x1x32xf32, #tpu.memory_space<vmem>>, vector<1x1x32xf32>
    %126 = vector.shape_cast %125 : vector<1x1x32xf32> to vector<1x32xf32>
    %cst_59 = arith.constant dense<0.000000e+00> : vector<13xf32>
    %127 = vector.multi_reduction <add>, %122, %cst_59 [1] : vector<13x32xf32> to vector<13xf32>
    %128 = vector.shape_cast %127 : vector<13xf32> to vector<13x1xf32>
    %cst_60 = arith.constant 3.200000e+01 : f32
    %129 = vector.broadcast %cst_60 : f32 to vector<13x1xf32>
    %130 = arith.divf %128, %129 : vector<13x1xf32>
    %131 = vector.broadcast %130 : vector<13x1xf32> to vector<13x32xf32>
    %132 = arith.subf %122, %131 : vector<13x32xf32>
    %133 = arith.mulf %132, %132 : vector<13x32xf32>
    %cst_61 = arith.constant dense<0.000000e+00> : vector<13xf32>
    %134 = vector.multi_reduction <add>, %133, %cst_61 [1] : vector<13x32xf32> to vector<13xf32>
    %135 = vector.shape_cast %134 : vector<13xf32> to vector<13x1xf32>
    %cst_62 = arith.constant 3.200000e+01 : f32
    %136 = vector.broadcast %cst_62 : f32 to vector<13x1xf32>
    %137 = arith.divf %135, %136 : vector<13x1xf32>
    %138 = vector.broadcast %130 : vector<13x1xf32> to vector<13x32xf32>
    %139 = arith.subf %122, %138 : vector<13x32xf32>
    %cst_63 = arith.constant 9.99999974E-6 : f32
    %140 = vector.broadcast %cst_63 : f32 to vector<13x1xf32>
    %141 = arith.addf %137, %140 : vector<13x1xf32>
    %142 = math.rsqrt %141 : vector<13x1xf32>
    %143 = vector.broadcast %142 : vector<13x1xf32> to vector<13x32xf32>
    %144 = arith.mulf %139, %143 : vector<13x32xf32>
    %145 = vector.broadcast %124 : vector<1x32xf32> to vector<13x32xf32>
    %146 = arith.mulf %144, %145 : vector<13x32xf32>
    %147 = vector.broadcast %126 : vector<1x32xf32> to vector<13x32xf32>
    %148 = arith.addf %146, %147 : vector<13x32xf32>
    %c0_64 = arith.constant 0 : index
    %c0_65 = arith.constant 0 : index
    %149 = vector.load %arg17[%c0_64, %c0_65] : memref<13x32xf32, #tpu.memory_space<vmem>>, vector<13x32xf32>
    tpu.vector_store %arg17[%c0_64, %c0_65], %148 {strides = array<i32>} : memref<13x32xf32, #tpu.memory_space<vmem>>, vector<13x32xf32>,
    %150 = arith.truncf %148 : vector<13x32xf32> to vector<13x32xbf16>
    %c0_66 = arith.constant 0 : index
    %c0_67 = arith.constant 0 : index
    %c0_68 = arith.constant 0 : index
    %151 = vector.load %arg16[%c0_66, %c0_67, %c0_68] : memref<1x13x32xbf16, #tpu.memory_space<vmem>>, vector<1x13x32xbf16>
    %152 = vector.shape_cast %151 : vector<1x13x32xbf16> to vector<13x32xbf16>
    %153 = vector.shape_cast %150 : vector<13x32xbf16> to vector<1x13x32xbf16>
    tpu.vector_store %arg16[%c0_66, %c0_67, %c0_68], %153 {strides = array<i32>} : memref<1x13x32xbf16, #tpu.memory_space<vmem>>, vector<1x13x32xbf16>,
    return
  }
  func.func @transform_0(%arg0: i32, %arg1: i32, %arg2: memref<2xi32, #tpu.memory_space<smem>>) -> (i32, i32, i32) {
    %c0_i32 = arith.constant 0 : i32
    %c0_i32_0 = arith.constant 0 : i32
    %c0_i32_1 = arith.constant 0 : i32
    return %arg0, %c0_i32, %c0_i32_0 : i32, i32, i32
  }
  func.func @transform_1(%arg0: i32, %arg1: i32, %arg2: memref<2xi32, #tpu.memory_space<smem>>) -> (i32, i32, i32) {
    %c0_i32 = arith.constant 0 : i32
    %c0_i32_0 = arith.constant 0 : i32
    %c0_i32_1 = arith.constant 0 : i32
    return %arg1, %c0_i32, %c0_i32_0 : i32, i32, i32
  }
  func.func @transform_2(%arg0: i32, %arg1: i32, %arg2: memref<2xi32, #tpu.memory_space<smem>>) -> (i32, i32, i32) {
    %c0_i32 = arith.constant 0 : i32
    %c0_i32_0 = arith.constant 0 : i32
    %c0_i32_1 = arith.constant 0 : i32
    return %arg1, %c0_i32, %c0_i32_0 : i32, i32, i32
  }
  func.func @transform_3(%arg0: i32, %arg1: i32, %arg2: memref<2xi32, #tpu.memory_space<smem>>) -> (i32, i32, i32) {
    %c0_i32 = arith.constant 0 : i32
    %c0_i32_0 = arith.constant 0 : i32
    %c0_i32_1 = arith.constant 0 : i32
    return %arg1, %c0_i32, %c0_i32_0 : i32, i32, i32
  }
  func.func @transform_4(%arg0: i32, %arg1: i32, %arg2: memref<2xi32, #tpu.memory_space<smem>>) -> (i32, i32, i32) {
    %c0_i32 = arith.constant 0 : i32
    %c0_i32_0 = arith.constant 0 : i32
    %c0_i32_1 = arith.constant 0 : i32
    return %arg1, %c0_i32, %c0_i32_0 : i32, i32, i32
  }
  func.func @transform_5(%arg0: i32, %arg1: i32, %arg2: memref<2xi32, #tpu.memory_space<smem>>) -> (i32, i32, i32) {
    %c0_i32 = arith.constant 0 : i32
    %c0_i32_0 = arith.constant 0 : i32
    %c0_i32_1 = arith.constant 0 : i32
    return %arg1, %c0_i32, %c0_i32_0 : i32, i32, i32
  }
  func.func @transform_6(%arg0: i32, %arg1: i32, %arg2: memref<2xi32, #tpu.memory_space<smem>>) -> (i32, i32, i32) {
    %c0_i32 = arith.constant 0 : i32
    %c0_i32_0 = arith.constant 0 : i32
    %c0_i32_1 = arith.constant 0 : i32
    return %arg1, %c0_i32, %c0_i32_0 : i32, i32, i32
  }
  func.func @transform_7(%arg0: i32, %arg1: i32, %arg2: memref<2xi32, #tpu.memory_space<smem>>) -> (i32, i32, i32) {
    %c0_i32 = arith.constant 0 : i32
    %c0_i32_0 = arith.constant 0 : i32
    %c0_i32_1 = arith.constant 0 : i32
    return %arg1, %c0_i32, %c0_i32_0 : i32, i32, i32
  }
  func.func @transform_8(%arg0: i32, %arg1: i32, %arg2: memref<2xi32, #tpu.memory_space<smem>>) -> (i32, i32, i32) {
    %c0_i32 = arith.constant 0 : i32
    %c0_i32_0 = arith.constant 0 : i32
    %c0_i32_1 = arith.constant 0 : i32
    return %arg1, %c0_i32, %c0_i32_0 : i32, i32, i32
  }
  func.func @transform_9(%arg0: i32, %arg1: i32, %arg2: memref<2xi32, #tpu.memory_space<smem>>) -> (i32, i32, i32) {
    %c0_i32 = arith.constant 0 : i32
    %c0_i32_0 = arith.constant 0 : i32
    %c0_i32_1 = arith.constant 0 : i32
    return %arg1, %c0_i32, %c0_i32_0 : i32, i32, i32
  }
  func.func @transform_10(%arg0: i32, %arg1: i32, %arg2: memref<2xi32, #tpu.memory_space<smem>>) -> (i32, i32, i32) {
    %c0_i32 = arith.constant 0 : i32
    %c0_i32_0 = arith.constant 0 : i32
    %c0_i32_1 = arith.constant 0 : i32
    return %arg1, %c0_i32, %c0_i32_0 : i32, i32, i32
  }
  func.func @transform_11(%arg0: i32, %arg1: i32, %arg2: memref<2xi32, #tpu.memory_space<smem>>) -> (i32, i32, i32) {
    %c0_i32 = arith.constant 0 : i32
    %c0_i32_0 = arith.constant 0 : i32
    %c0_i32_1 = arith.constant 0 : i32
    return %arg1, %c0_i32, %c0_i32_0 : i32, i32, i32
  }
  func.func @transform_12(%arg0: i32, %arg1: i32, %arg2: memref<2xi32, #tpu.memory_space<smem>>) -> (i32, i32, i32) {
    %c0_i32 = arith.constant 0 : i32
    %c0_i32_0 = arith.constant 0 : i32
    %c0_i32_1 = arith.constant 0 : i32
    return %arg1, %c0_i32, %c0_i32_0 : i32, i32, i32
  }
  func.func @transform_13(%arg0: i32, %arg1: i32, %arg2: memref<2xi32, #tpu.memory_space<smem>>) -> (i32, i32, i32) {
    %c0_i32 = arith.constant 0 : i32
    %c0_i32_0 = arith.constant 0 : i32
    %c0_i32_1 = arith.constant 0 : i32
    return %arg0, %c0_i32, %c0_i32_0 : i32, i32, i32
  }
}

module attributes {stable_mosaic.version = 11 : i64} {
  func.func @_output_linear_kernel(%arg0: i32, %arg1: memref<1x13x32xbf16, #tpu.memory_space<vmem>>, %arg2: memref<24x32xbf16, #tpu.memory_space<vmem>>, %arg3: memref<24x1xf32, #tpu.memory_space<vmem>>, %arg4: memref<1x24x13xf32, #tpu.memory_space<vmem>>) attributes {dimension_semantics = [#tpu.dimension_semantics<parallel>], iteration_bounds = array<i64: 2>, scalar_prefetch = 0 : i64, scratch_operands = 0 : i64, tpu.core_type = #tpu.core_type<tc>, window_params = [{transform_indices = @transform_0, window_bounds = array<i64: 1, 13, 32>}, {pipeline_mode = #tpu.pipeline_mode<synchronous>, transform_indices = @transform_1, window_bounds = array<i64: 24, 32>}, {pipeline_mode = #tpu.pipeline_mode<synchronous>, transform_indices = @transform_2, window_bounds = array<i64: 24, 1>}, {transform_indices = @transform_3, window_bounds = array<i64: 1, 24, 13>}]} {
    %c0 = arith.constant 0 : index
    %c0_0 = arith.constant 0 : index
    %0 = vector.load %arg2[%c0, %c0_0] : memref<24x32xbf16, #tpu.memory_space<vmem>>, vector<24x32xbf16>
    %c0_1 = arith.constant 0 : index
    %c0_2 = arith.constant 0 : index
    %c0_3 = arith.constant 0 : index
    %1 = vector.load %arg1[%c0_1, %c0_2, %c0_3] : memref<1x13x32xbf16, #tpu.memory_space<vmem>>, vector<1x13x32xbf16>
    %2 = vector.shape_cast %1 : vector<1x13x32xbf16> to vector<13x32xbf16>
    %cst = arith.constant dense<0.000000e+00> : vector<24x13xf32>
    %3 = tpu.matmul %0, %2, %cst {dimension_numbers = #tpu.dot_dimension_numbers<[1], [1], [0], [0], [0, 0, 1, 0], [], []>} : vector<24x32xbf16>, vector<13x32xbf16>, vector<24x13xf32> -> vector<24x13xf32>
    %c0_4 = arith.constant 0 : index
    %c0_5 = arith.constant 0 : index
    %4 = vector.load %arg3[%c0_4, %c0_5] : memref<24x1xf32, #tpu.memory_space<vmem>>, vector<24x1xf32>
    %5 = vector.broadcast %4 : vector<24x1xf32> to vector<24x13xf32>
    %6 = arith.addf %3, %5 : vector<24x13xf32>
    %c0_6 = arith.constant 0 : index
    %c0_7 = arith.constant 0 : index
    %c0_8 = arith.constant 0 : index
    %7 = vector.load %arg4[%c0_6, %c0_7, %c0_8] : memref<1x24x13xf32, #tpu.memory_space<vmem>>, vector<1x24x13xf32>
    %8 = vector.shape_cast %7 : vector<1x24x13xf32> to vector<24x13xf32>
    %9 = vector.shape_cast %6 : vector<24x13xf32> to vector<1x24x13xf32>
    tpu.vector_store %arg4[%c0_6, %c0_7, %c0_8], %9 {strides = array<i32>} : memref<1x24x13xf32, #tpu.memory_space<vmem>>, vector<1x24x13xf32>,
    return
  }
  func.func @transform_0(%arg0: i32) -> (i32, i32, i32) {
    %c0_i32 = arith.constant 0 : i32
    %c0_i32_0 = arith.constant 0 : i32
    %c0_i32_1 = arith.constant 0 : i32
    return %arg0, %c0_i32, %c0_i32_0 : i32, i32, i32
  }
  func.func @transform_1(%arg0: i32) -> (i32, i32) {
    %c0_i32 = arith.constant 0 : i32
    %c0_i32_0 = arith.constant 0 : i32
    %c0_i32_1 = arith.constant 0 : i32
    return %c0_i32, %c0_i32_0 : i32, i32
  }
  func.func @transform_2(%arg0: i32) -> (i32, i32) {
    %c0_i32 = arith.constant 0 : i32
    %c0_i32_0 = arith.constant 0 : i32
    %c0_i32_1 = arith.constant 0 : i32
    return %c0_i32, %c0_i32_0 : i32, i32
  }
  func.func @transform_3(%arg0: i32) -> (i32, i32, i32) {
    %c0_i32 = arith.constant 0 : i32
    %c0_i32_0 = arith.constant 0 : i32
    %c0_i32_1 = arith.constant 0 : i32
    return %arg0, %c0_i32, %c0_i32_0 : i32, i32, i32
  }
}

module attributes {stable_mosaic.version = 11 : i64} {
  func.func @_fft_stack_kernel(%arg0: i32, %arg1: i32, %arg2: memref<2xi32, #tpu.memory_space<smem>>, %arg3: memref<1x8x32xbf16, #tpu.memory_space<vmem>>, %arg4: memref<1x32x96xbf16, #tpu.memory_space<vmem>>, %arg5: memref<1x1x96xf32, #tpu.memory_space<vmem>>, %arg6: memref<1x32x32xbf16, #tpu.memory_space<vmem>>, %arg7: memref<1x1x32xf32, #tpu.memory_space<vmem>>, %arg8: memref<1x1x32xf32, #tpu.memory_space<vmem>>, %arg9: memref<1x1x32xf32, #tpu.memory_space<vmem>>, %arg10: memref<1x96x64xbf16, #tpu.memory_space<vmem>>, %arg11: memref<1x1x64xf32, #tpu.memory_space<vmem>>, %arg12: memref<1x192x32xbf16, #tpu.memory_space<vmem>>, %arg13: memref<1x1x32xf32, #tpu.memory_space<vmem>>, %arg14: memref<1x1x32xf32, #tpu.memory_space<vmem>>, %arg15: memref<1x1x32xf32, #tpu.memory_space<vmem>>, %arg16: memref<1x8x32xbf16, #tpu.memory_space<vmem>>, %arg17: memref<8x32xf32, #tpu.memory_space<vmem>>) attributes {dimension_semantics = [#tpu.dimension_semantics<parallel>, #tpu.dimension_semantics<arbitrary>], iteration_bounds = array<i64: 2, 2>, scalar_prefetch = 1 : i64, scratch_operands = 1 : i64, tpu.core_type = #tpu.core_type<tc>, window_params = [{transform_indices = @transform_0, window_bounds = array<i64: 1, 8, 32>}, {transform_indices = @transform_1, window_bounds = array<i64: 1, 32, 96>}, {transform_indices = @transform_2, window_bounds = array<i64: 1, 1, 96>}, {transform_indices = @transform_3, window_bounds = array<i64: 1, 32, 32>}, {transform_indices = @transform_4, window_bounds = array<i64: 1, 1, 32>}, {transform_indices = @transform_5, window_bounds = array<i64: 1, 1, 32>}, {transform_indices = @transform_6, window_bounds = array<i64: 1, 1, 32>}, {transform_indices = @transform_7, window_bounds = array<i64: 1, 96, 64>}, {transform_indices = @transform_8, window_bounds = array<i64: 1, 1, 64>}, {transform_indices = @transform_9, window_bounds = array<i64: 1, 192, 32>}, {transform_indices = @transform_10, window_bounds = array<i64: 1, 1, 32>}, {transform_indices = @transform_11, window_bounds = array<i64: 1, 1, 32>}, {transform_indices = @transform_12, window_bounds = array<i64: 1, 1, 32>}, {transform_indices = @transform_13, window_bounds = array<i64: 1, 8, 32>}]} {
    %c0_i32 = arith.constant 0 : i32
    %0 = arith.cmpi eq, %arg1, %c0_i32 : i32
    %1 = arith.extui %0 : i1 to i32
    %c0_i32_0 = arith.constant 0 : i32
    %2 = arith.cmpi ne, %1, %c0_i32_0 : i32
    scf.if %2 {
      %c0_69 = arith.constant 0 : index
      %c0_70 = arith.constant 0 : index
      %c0_71 = arith.constant 0 : index
      %154 = vector.load %arg3[%c0_69, %c0_70, %c0_71] : memref<1x8x32xbf16, #tpu.memory_space<vmem>>, vector<1x8x32xbf16>
      %155 = vector.shape_cast %154 : vector<1x8x32xbf16> to vector<8x32xbf16>
      %156 = arith.extf %155 : vector<8x32xbf16> to vector<8x32xf32>
      %c0_72 = arith.constant 0 : index
      %c0_73 = arith.constant 0 : index
      %157 = vector.load %arg17[%c0_72, %c0_73] : memref<8x32xf32, #tpu.memory_space<vmem>>, vector<8x32xf32>
      tpu.vector_store %arg17[%c0_72, %c0_73], %156 {strides = array<i32>} : memref<8x32xf32, #tpu.memory_space<vmem>>, vector<8x32xf32>,
    } else {
    }
    %c0 = arith.constant 0 : index
    %c0_1 = arith.constant 0 : index
    %3 = vector.load %arg17[%c0, %c0_1] : memref<8x32xf32, #tpu.memory_space<vmem>>, vector<8x32xf32>
    %4 = arith.truncf %3 : vector<8x32xf32> to vector<8x32xbf16>
    %c0_2 = arith.constant 0 : index
    %c0_3 = arith.constant 0 : index
    %c0_4 = arith.constant 0 : index
    %5 = vector.load %arg4[%c0_2, %c0_3, %c0_4] : memref<1x32x96xbf16, #tpu.memory_space<vmem>>, vector<1x32x96xbf16>
    %6 = vector.shape_cast %5 : vector<1x32x96xbf16> to vector<32x96xbf16>
    %cst = arith.constant dense<0.000000e+00> : vector<8x96xf32>
    %7 = tpu.matmul %4, %6, %cst {dimension_numbers = #tpu.dot_dimension_numbers<[1], [0], [0], [1], [0, 0, 1, 1], [], []>} : vector<8x32xbf16>, vector<32x96xbf16>, vector<8x96xf32> -> vector<8x96xf32>
    %c0_5 = arith.constant 0 : index
    %c0_6 = arith.constant 0 : index
    %c0_7 = arith.constant 0 : index
    %8 = vector.load %arg5[%c0_5, %c0_6, %c0_7] : memref<1x1x96xf32, #tpu.memory_space<vmem>>, vector<1x1x96xf32>
    %9 = vector.shape_cast %8 : vector<1x1x96xf32> to vector<1x96xf32>
    %10 = vector.broadcast %9 : vector<1x96xf32> to vector<8x96xf32>
    %11 = arith.addf %7, %10 : vector<8x96xf32>
    %12 = arith.truncf %11 : vector<8x96xf32> to vector<8x96xbf16>
    %13 = tpu.iota {dimensions = array<i32: 1>} : vector<1x8xi32>
    %14 = arith.index_cast %arg0 : i32 to index
    %15 = memref.load %arg2[%14] : memref<2xi32, #tpu.memory_space<smem>>
    %16 = vector.broadcast %15 : i32 to vector<1x8xi32>
    %17 = arith.cmpi sgt, %13, %16 : vector<1x8xi32>
    %cst_8 = arith.constant 0xFF800000 : f32
    %cst_9 = arith.constant 0.000000e+00 : f32
    %18 = vector.broadcast %cst_8 : f32 to vector<1x8xf32>
    %19 = vector.broadcast %cst_9 : f32 to vector<1x8xf32>
    %20 = arith.select %17, %18, %19 : vector<1x8xi1>, vector<1x8xf32>
    %21 = vector.extract_strided_slice %12 {offsets = [0, 0], sizes = [8, 16], strides = [1, 1]} : vector<8x96xbf16> to vector<8x16xbf16>
    %22 = vector.extract_strided_slice %12 {offsets = [0, 32], sizes = [8, 16], strides = [1, 1]} : vector<8x96xbf16> to vector<8x16xbf16>
    %23 = vector.extract_strided_slice %12 {offsets = [0, 64], sizes = [8, 16], strides = [1, 1]} : vector<8x96xbf16> to vector<8x16xbf16>
    %cst_10 = arith.constant dense<0.000000e+00> : vector<8x8xf32>
    %24 = tpu.matmul %21, %22, %cst_10 {dimension_numbers = #tpu.dot_dimension_numbers<[1], [1], [0], [0], [0, 0, 1, 0], [], []>} : vector<8x16xbf16>, vector<8x16xbf16>, vector<8x8xf32> -> vector<8x8xf32>
    %25 = vector.broadcast %20 : vector<1x8xf32> to vector<8x8xf32>
    %26 = arith.addf %24, %25 : vector<8x8xf32>
    %cst_11 = arith.constant dense<0xFF800000> : vector<8xf32>
    %27 = vector.multi_reduction <maximumf>, %26, %cst_11 [1] : vector<8x8xf32> to vector<8xf32>
    %28 = vector.shape_cast %27 : vector<8xf32> to vector<8x1xf32>
    %29 = vector.broadcast %28 : vector<8x1xf32> to vector<8x8xf32>
    %30 = arith.subf %26, %29 : vector<8x8xf32>
    %31 = math.exp %30 : vector<8x8xf32>
    %cst_12 = arith.constant dense<0.000000e+00> : vector<8xf32>
    %32 = vector.multi_reduction <add>, %31, %cst_12 [1] : vector<8x8xf32> to vector<8xf32>
    %33 = vector.shape_cast %32 : vector<8xf32> to vector<8x1xf32>
    %34 = vector.broadcast %33 : vector<8x1xf32> to vector<8x8xf32>
    %35 = arith.divf %31, %34 : vector<8x8xf32>
    %36 = arith.truncf %35 : vector<8x8xf32> to vector<8x8xbf16>
    %cst_13 = arith.constant dense<0.000000e+00> : vector<8x16xf32>
    %37 = tpu.matmul %36, %23, %cst_13 {dimension_numbers = #tpu.dot_dimension_numbers<[1], [0], [0], [1], [0, 0, 1, 1], [], []>} : vector<8x8xbf16>, vector<8x16xbf16>, vector<8x16xf32> -> vector<8x16xf32>
    %38 = arith.truncf %37 : vector<8x16xf32> to vector<8x16xbf16>
    %39 = vector.extract_strided_slice %12 {offsets = [0, 16], sizes = [8, 16], strides = [1, 1]} : vector<8x96xbf16> to vector<8x16xbf16>
    %40 = vector.extract_strided_slice %12 {offsets = [0, 48], sizes = [8, 16], strides = [1, 1]} : vector<8x96xbf16> to vector<8x16xbf16>
    %41 = vector.extract_strided_slice %12 {offsets = [0, 80], sizes = [8, 16], strides = [1, 1]} : vector<8x96xbf16> to vector<8x16xbf16>
    %cst_14 = arith.constant dense<0.000000e+00> : vector<8x8xf32>
    %42 = tpu.matmul %39, %40, %cst_14 {dimension_numbers = #tpu.dot_dimension_numbers<[1], [1], [0], [0], [0, 0, 1, 0], [], []>} : vector<8x16xbf16>, vector<8x16xbf16>, vector<8x8xf32> -> vector<8x8xf32>
    %43 = vector.broadcast %20 : vector<1x8xf32> to vector<8x8xf32>
    %44 = arith.addf %42, %43 : vector<8x8xf32>
    %cst_15 = arith.constant dense<0xFF800000> : vector<8xf32>
    %45 = vector.multi_reduction <maximumf>, %44, %cst_15 [1] : vector<8x8xf32> to vector<8xf32>
    %46 = vector.shape_cast %45 : vector<8xf32> to vector<8x1xf32>
    %47 = vector.broadcast %46 : vector<8x1xf32> to vector<8x8xf32>
    %48 = arith.subf %44, %47 : vector<8x8xf32>
    %49 = math.exp %48 : vector<8x8xf32>
    %cst_16 = arith.constant dense<0.000000e+00> : vector<8xf32>
    %50 = vector.multi_reduction <add>, %49, %cst_16 [1] : vector<8x8xf32> to vector<8xf32>
    %51 = vector.shape_cast %50 : vector<8xf32> to vector<8x1xf32>
    %52 = vector.broadcast %51 : vector<8x1xf32> to vector<8x8xf32>
    %53 = arith.divf %49, %52 : vector<8x8xf32>
    %54 = arith.truncf %53 : vector<8x8xf32> to vector<8x8xbf16>
    %cst_17 = arith.constant dense<0.000000e+00> : vector<8x16xf32>
    %55 = tpu.matmul %54, %41, %cst_17 {dimension_numbers = #tpu.dot_dimension_numbers<[1], [0], [0], [1], [0, 0, 1, 1], [], []>} : vector<8x8xbf16>, vector<8x16xbf16>, vector<8x16xf32> -> vector<8x16xf32>
    %56 = arith.truncf %55 : vector<8x16xf32> to vector<8x16xbf16>
    %57 = tpu.concatenate %38, %56 in 1 : vector<8x16xbf16>, vector<8x16xbf16> -> vector<8x32xbf16>
    %c0_18 = arith.constant 0 : index
    %c0_19 = arith.constant 0 : index
    %c0_20 = arith.constant 0 : index
    %58 = vector.load %arg6[%c0_18, %c0_19, %c0_20] : memref<1x32x32xbf16, #tpu.memory_space<vmem>>, vector<1x32x32xbf16>
    %59 = vector.shape_cast %58 : vector<1x32x32xbf16> to vector<32x32xbf16>
    %cst_21 = arith.constant dense<0.000000e+00> : vector<8x32xf32>
    %60 = tpu.matmul %57, %59, %cst_21 {dimension_numbers = #tpu.dot_dimension_numbers<[1], [0], [0], [1], [0, 0, 1, 1], [], []>} : vector<8x32xbf16>, vector<32x32xbf16>, vector<8x32xf32> -> vector<8x32xf32>
    %c0_22 = arith.constant 0 : index
    %c0_23 = arith.constant 0 : index
    %c0_24 = arith.constant 0 : index
    %61 = vector.load %arg7[%c0_22, %c0_23, %c0_24] : memref<1x1x32xf32, #tpu.memory_space<vmem>>, vector<1x1x32xf32>
    %62 = vector.shape_cast %61 : vector<1x1x32xf32> to vector<1x32xf32>
    %63 = vector.broadcast %62 : vector<1x32xf32> to vector<8x32xf32>
    %64 = arith.addf %60, %63 : vector<8x32xf32>
    %65 = arith.addf %64, %3 : vector<8x32xf32>
    %c0_25 = arith.constant 0 : index
    %c0_26 = arith.constant 0 : index
    %c0_27 = arith.constant 0 : index
    %66 = vector.load %arg8[%c0_25, %c0_26, %c0_27] : memref<1x1x32xf32, #tpu.memory_space<vmem>>, vector<1x1x32xf32>
    %67 = vector.shape_cast %66 : vector<1x1x32xf32> to vector<1x32xf32>
    %c0_28 = arith.constant 0 : index
    %c0_29 = arith.constant 0 : index
    %c0_30 = arith.constant 0 : index
    %68 = vector.load %arg9[%c0_28, %c0_29, %c0_30] : memref<1x1x32xf32, #tpu.memory_space<vmem>>, vector<1x1x32xf32>
    %69 = vector.shape_cast %68 : vector<1x1x32xf32> to vector<1x32xf32>
    %cst_31 = arith.constant dense<0.000000e+00> : vector<8xf32>
    %70 = vector.multi_reduction <add>, %65, %cst_31 [1] : vector<8x32xf32> to vector<8xf32>
    %71 = vector.shape_cast %70 : vector<8xf32> to vector<8x1xf32>
    %cst_32 = arith.constant 3.200000e+01 : f32
    %72 = vector.broadcast %cst_32 : f32 to vector<8x1xf32>
    %73 = arith.divf %71, %72 : vector<8x1xf32>
    %74 = vector.broadcast %73 : vector<8x1xf32> to vector<8x32xf32>
    %75 = arith.subf %65, %74 : vector<8x32xf32>
    %76 = arith.mulf %75, %75 : vector<8x32xf32>
    %cst_33 = arith.constant dense<0.000000e+00> : vector<8xf32>
    %77 = vector.multi_reduction <add>, %76, %cst_33 [1] : vector<8x32xf32> to vector<8xf32>
    %78 = vector.shape_cast %77 : vector<8xf32> to vector<8x1xf32>
    %cst_34 = arith.constant 3.200000e+01 : f32
    %79 = vector.broadcast %cst_34 : f32 to vector<8x1xf32>
    %80 = arith.divf %78, %79 : vector<8x1xf32>
    %81 = vector.broadcast %73 : vector<8x1xf32> to vector<8x32xf32>
    %82 = arith.subf %65, %81 : vector<8x32xf32>
    %cst_35 = arith.constant 9.99999974E-6 : f32
    %83 = vector.broadcast %cst_35 : f32 to vector<8x1xf32>
    %84 = arith.addf %80, %83 : vector<8x1xf32>
    %85 = math.rsqrt %84 : vector<8x1xf32>
    %86 = vector.broadcast %85 : vector<8x1xf32> to vector<8x32xf32>
    %87 = arith.mulf %82, %86 : vector<8x32xf32>
    %88 = vector.broadcast %67 : vector<1x32xf32> to vector<8x32xf32>
    %89 = arith.mulf %87, %88 : vector<8x32xf32>
    %90 = vector.broadcast %69 : vector<1x32xf32> to vector<8x32xf32>
    %91 = arith.addf %89, %90 : vector<8x32xf32>
    %c0_36 = arith.constant 0 : index
    %c0_37 = arith.constant 0 : index
    %c0_38 = arith.constant 0 : index
    %92 = vector.load %arg10[%c0_36, %c0_37, %c0_38] : memref<1x96x64xbf16, #tpu.memory_space<vmem>>, vector<1x96x64xbf16>
    %93 = vector.shape_cast %92 : vector<1x96x64xbf16> to vector<96x64xbf16>
    %c0_39 = arith.constant 0 : index
    %c0_40 = arith.constant 0 : index
    %c0_41 = arith.constant 0 : index
    %94 = vector.load %arg11[%c0_39, %c0_40, %c0_41] : memref<1x1x64xf32, #tpu.memory_space<vmem>>, vector<1x1x64xf32>
    %95 = vector.shape_cast %94 : vector<1x1x64xf32> to vector<1x64xf32>
    %cst_42 = arith.constant 0.000000e+00 : f32
    %96 = vector.broadcast %cst_42 : f32 to vector<1x32xf32>
    %97 = tpu.concatenate %96, %91, %96 in 0 : vector<1x32xf32>, vector<8x32xf32>, vector<1x32xf32> -> vector<10x32xf32>
    %98 = vector.extract_strided_slice %97 {offsets = [0, 0], sizes = [8, 32], strides = [1, 1]} : vector<10x32xf32> to vector<8x32xf32>
    %99 = vector.extract_strided_slice %97 {offsets = [1, 0], sizes = [8, 32], strides = [1, 1]} : vector<10x32xf32> to vector<8x32xf32>
    %100 = vector.extract_strided_slice %97 {offsets = [2, 0], sizes = [8, 32], strides = [1, 1]} : vector<10x32xf32> to vector<8x32xf32>
    %101 = tpu.concatenate %98, %99, %100 in 1 : vector<8x32xf32>, vector<8x32xf32>, vector<8x32xf32> -> vector<8x96xf32>
    %102 = arith.truncf %101 : vector<8x96xf32> to vector<8x96xbf16>
    %cst_43 = arith.constant dense<0.000000e+00> : vector<8x64xf32>
    %103 = tpu.matmul %102, %93, %cst_43 {dimension_numbers = #tpu.dot_dimension_numbers<[1], [0], [0], [1], [0, 0, 1, 1], [], []>} : vector<8x96xbf16>, vector<96x64xbf16>, vector<8x64xf32> -> vector<8x64xf32>
    %104 = vector.broadcast %95 : vector<1x64xf32> to vector<8x64xf32>
    %105 = arith.addf %103, %104 : vector<8x64xf32>
    %cst_44 = arith.constant 0.000000e+00 : f32
    %106 = vector.broadcast %cst_44 : f32 to vector<8x64xf32>
    %107 = arith.maximumf %105, %106 : vector<8x64xf32>
    %c0_45 = arith.constant 0 : index
    %c0_46 = arith.constant 0 : index
    %c0_47 = arith.constant 0 : index
    %108 = vector.load %arg12[%c0_45, %c0_46, %c0_47] : memref<1x192x32xbf16, #tpu.memory_space<vmem>>, vector<1x192x32xbf16>
    %109 = vector.shape_cast %108 : vector<1x192x32xbf16> to vector<192x32xbf16>
    %c0_48 = arith.constant 0 : index
    %c0_49 = arith.constant 0 : index
    %c0_50 = arith.constant 0 : index
    %110 = vector.load %arg13[%c0_48, %c0_49, %c0_50] : memref<1x1x32xf32, #tpu.memory_space<vmem>>, vector<1x1x32xf32>
    %111 = vector.shape_cast %110 : vector<1x1x32xf32> to vector<1x32xf32>
    %cst_51 = arith.constant 0.000000e+00 : f32
    %112 = vector.broadcast %cst_51 : f32 to vector<1x64xf32>
    %113 = tpu.concatenate %112, %107, %112 in 0 : vector<1x64xf32>, vector<8x64xf32>, vector<1x64xf32> -> vector<10x64xf32>
    %114 = vector.extract_strided_slice %113 {offsets = [0, 0], sizes = [8, 64], strides = [1, 1]} : vector<10x64xf32> to vector<8x64xf32>
    %115 = vector.extract_strided_slice %113 {offsets = [1, 0], sizes = [8, 64], strides = [1, 1]} : vector<10x64xf32> to vector<8x64xf32>
    %116 = vector.extract_strided_slice %113 {offsets = [2, 0], sizes = [8, 64], strides = [1, 1]} : vector<10x64xf32> to vector<8x64xf32>
    %117 = tpu.concatenate %114, %115, %116 in 1 : vector<8x64xf32>, vector<8x64xf32>, vector<8x64xf32> -> vector<8x192xf32>
    %118 = arith.truncf %117 : vector<8x192xf32> to vector<8x192xbf16>
    %cst_52 = arith.constant dense<0.000000e+00> : vector<8x32xf32>
    %119 = tpu.matmul %118, %109, %cst_52 {dimension_numbers = #tpu.dot_dimension_numbers<[1], [0], [0], [1], [0, 0, 1, 1], [], []>} : vector<8x192xbf16>, vector<192x32xbf16>, vector<8x32xf32> -> vector<8x32xf32>
    %120 = vector.broadcast %111 : vector<1x32xf32> to vector<8x32xf32>
    %121 = arith.addf %119, %120 : vector<8x32xf32>
    %122 = arith.addf %121, %91 : vector<8x32xf32>
    %c0_53 = arith.constant 0 : index
    %c0_54 = arith.constant 0 : index
    %c0_55 = arith.constant 0 : index
    %123 = vector.load %arg14[%c0_53, %c0_54, %c0_55] : memref<1x1x32xf32, #tpu.memory_space<vmem>>, vector<1x1x32xf32>
    %124 = vector.shape_cast %123 : vector<1x1x32xf32> to vector<1x32xf32>
    %c0_56 = arith.constant 0 : index
    %c0_57 = arith.constant 0 : index
    %c0_58 = arith.constant 0 : index
    %125 = vector.load %arg15[%c0_56, %c0_57, %c0_58] : memref<1x1x32xf32, #tpu.memory_space<vmem>>, vector<1x1x32xf32>
    %126 = vector.shape_cast %125 : vector<1x1x32xf32> to vector<1x32xf32>
    %cst_59 = arith.constant dense<0.000000e+00> : vector<8xf32>
    %127 = vector.multi_reduction <add>, %122, %cst_59 [1] : vector<8x32xf32> to vector<8xf32>
    %128 = vector.shape_cast %127 : vector<8xf32> to vector<8x1xf32>
    %cst_60 = arith.constant 3.200000e+01 : f32
    %129 = vector.broadcast %cst_60 : f32 to vector<8x1xf32>
    %130 = arith.divf %128, %129 : vector<8x1xf32>
    %131 = vector.broadcast %130 : vector<8x1xf32> to vector<8x32xf32>
    %132 = arith.subf %122, %131 : vector<8x32xf32>
    %133 = arith.mulf %132, %132 : vector<8x32xf32>
    %cst_61 = arith.constant dense<0.000000e+00> : vector<8xf32>
    %134 = vector.multi_reduction <add>, %133, %cst_61 [1] : vector<8x32xf32> to vector<8xf32>
    %135 = vector.shape_cast %134 : vector<8xf32> to vector<8x1xf32>
    %cst_62 = arith.constant 3.200000e+01 : f32
    %136 = vector.broadcast %cst_62 : f32 to vector<8x1xf32>
    %137 = arith.divf %135, %136 : vector<8x1xf32>
    %138 = vector.broadcast %130 : vector<8x1xf32> to vector<8x32xf32>
    %139 = arith.subf %122, %138 : vector<8x32xf32>
    %cst_63 = arith.constant 9.99999974E-6 : f32
    %140 = vector.broadcast %cst_63 : f32 to vector<8x1xf32>
    %141 = arith.addf %137, %140 : vector<8x1xf32>
    %142 = math.rsqrt %141 : vector<8x1xf32>
    %143 = vector.broadcast %142 : vector<8x1xf32> to vector<8x32xf32>
    %144 = arith.mulf %139, %143 : vector<8x32xf32>
    %145 = vector.broadcast %124 : vector<1x32xf32> to vector<8x32xf32>
    %146 = arith.mulf %144, %145 : vector<8x32xf32>
    %147 = vector.broadcast %126 : vector<1x32xf32> to vector<8x32xf32>
    %148 = arith.addf %146, %147 : vector<8x32xf32>
    %c0_64 = arith.constant 0 : index
    %c0_65 = arith.constant 0 : index
    %149 = vector.load %arg17[%c0_64, %c0_65] : memref<8x32xf32, #tpu.memory_space<vmem>>, vector<8x32xf32>
    tpu.vector_store %arg17[%c0_64, %c0_65], %148 {strides = array<i32>} : memref<8x32xf32, #tpu.memory_space<vmem>>, vector<8x32xf32>,
    %150 = arith.truncf %148 : vector<8x32xf32> to vector<8x32xbf16>
    %c0_66 = arith.constant 0 : index
    %c0_67 = arith.constant 0 : index
    %c0_68 = arith.constant 0 : index
    %151 = vector.load %arg16[%c0_66, %c0_67, %c0_68] : memref<1x8x32xbf16, #tpu.memory_space<vmem>>, vector<1x8x32xbf16>
    %152 = vector.shape_cast %151 : vector<1x8x32xbf16> to vector<8x32xbf16>
    %153 = vector.shape_cast %150 : vector<8x32xbf16> to vector<1x8x32xbf16>
    tpu.vector_store %arg16[%c0_66, %c0_67, %c0_68], %153 {strides = array<i32>} : memref<1x8x32xbf16, #tpu.memory_space<vmem>>, vector<1x8x32xbf16>,
    return
  }
  func.func @transform_0(%arg0: i32, %arg1: i32, %arg2: memref<2xi32, #tpu.memory_space<smem>>) -> (i32, i32, i32) {
    %c0_i32 = arith.constant 0 : i32
    %c0_i32_0 = arith.constant 0 : i32
    %c0_i32_1 = arith.constant 0 : i32
    return %arg0, %c0_i32, %c0_i32_0 : i32, i32, i32
  }
  func.func @transform_1(%arg0: i32, %arg1: i32, %arg2: memref<2xi32, #tpu.memory_space<smem>>) -> (i32, i32, i32) {
    %c0_i32 = arith.constant 0 : i32
    %c0_i32_0 = arith.constant 0 : i32
    %c0_i32_1 = arith.constant 0 : i32
    return %arg1, %c0_i32, %c0_i32_0 : i32, i32, i32
  }
  func.func @transform_2(%arg0: i32, %arg1: i32, %arg2: memref<2xi32, #tpu.memory_space<smem>>) -> (i32, i32, i32) {
    %c0_i32 = arith.constant 0 : i32
    %c0_i32_0 = arith.constant 0 : i32
    %c0_i32_1 = arith.constant 0 : i32
    return %arg1, %c0_i32, %c0_i32_0 : i32, i32, i32
  }
  func.func @transform_3(%arg0: i32, %arg1: i32, %arg2: memref<2xi32, #tpu.memory_space<smem>>) -> (i32, i32, i32) {
    %c0_i32 = arith.constant 0 : i32
    %c0_i32_0 = arith.constant 0 : i32
    %c0_i32_1 = arith.constant 0 : i32
    return %arg1, %c0_i32, %c0_i32_0 : i32, i32, i32
  }
  func.func @transform_4(%arg0: i32, %arg1: i32, %arg2: memref<2xi32, #tpu.memory_space<smem>>) -> (i32, i32, i32) {
    %c0_i32 = arith.constant 0 : i32
    %c0_i32_0 = arith.constant 0 : i32
    %c0_i32_1 = arith.constant 0 : i32
    return %arg1, %c0_i32, %c0_i32_0 : i32, i32, i32
  }
  func.func @transform_5(%arg0: i32, %arg1: i32, %arg2: memref<2xi32, #tpu.memory_space<smem>>) -> (i32, i32, i32) {
    %c0_i32 = arith.constant 0 : i32
    %c0_i32_0 = arith.constant 0 : i32
    %c0_i32_1 = arith.constant 0 : i32
    return %arg1, %c0_i32, %c0_i32_0 : i32, i32, i32
  }
  func.func @transform_6(%arg0: i32, %arg1: i32, %arg2: memref<2xi32, #tpu.memory_space<smem>>) -> (i32, i32, i32) {
    %c0_i32 = arith.constant 0 : i32
    %c0_i32_0 = arith.constant 0 : i32
    %c0_i32_1 = arith.constant 0 : i32
    return %arg1, %c0_i32, %c0_i32_0 : i32, i32, i32
  }
  func.func @transform_7(%arg0: i32, %arg1: i32, %arg2: memref<2xi32, #tpu.memory_space<smem>>) -> (i32, i32, i32) {
    %c0_i32 = arith.constant 0 : i32
    %c0_i32_0 = arith.constant 0 : i32
    %c0_i32_1 = arith.constant 0 : i32
    return %arg1, %c0_i32, %c0_i32_0 : i32, i32, i32
  }
  func.func @transform_8(%arg0: i32, %arg1: i32, %arg2: memref<2xi32, #tpu.memory_space<smem>>) -> (i32, i32, i32) {
    %c0_i32 = arith.constant 0 : i32
    %c0_i32_0 = arith.constant 0 : i32
    %c0_i32_1 = arith.constant 0 : i32
    return %arg1, %c0_i32, %c0_i32_0 : i32, i32, i32
  }
  func.func @transform_9(%arg0: i32, %arg1: i32, %arg2: memref<2xi32, #tpu.memory_space<smem>>) -> (i32, i32, i32) {
    %c0_i32 = arith.constant 0 : i32
    %c0_i32_0 = arith.constant 0 : i32
    %c0_i32_1 = arith.constant 0 : i32
    return %arg1, %c0_i32, %c0_i32_0 : i32, i32, i32
  }
  func.func @transform_10(%arg0: i32, %arg1: i32, %arg2: memref<2xi32, #tpu.memory_space<smem>>) -> (i32, i32, i32) {
    %c0_i32 = arith.constant 0 : i32
    %c0_i32_0 = arith.constant 0 : i32
    %c0_i32_1 = arith.constant 0 : i32
    return %arg1, %c0_i32, %c0_i32_0 : i32, i32, i32
  }
  func.func @transform_11(%arg0: i32, %arg1: i32, %arg2: memref<2xi32, #tpu.memory_space<smem>>) -> (i32, i32, i32) {
    %c0_i32 = arith.constant 0 : i32
    %c0_i32_0 = arith.constant 0 : i32
    %c0_i32_1 = arith.constant 0 : i32
    return %arg1, %c0_i32, %c0_i32_0 : i32, i32, i32
  }
  func.func @transform_12(%arg0: i32, %arg1: i32, %arg2: memref<2xi32, #tpu.memory_space<smem>>) -> (i32, i32, i32) {
    %c0_i32 = arith.constant 0 : i32
    %c0_i32_0 = arith.constant 0 : i32
    %c0_i32_1 = arith.constant 0 : i32
    return %arg1, %c0_i32, %c0_i32_0 : i32, i32, i32
  }
  func.func @transform_13(%arg0: i32, %arg1: i32, %arg2: memref<2xi32, #tpu.memory_space<smem>>) -> (i32, i32, i32) {
    %c0_i32 = arith.constant 0 : i32
    %c0_i32_0 = arith.constant 0 : i32
    %c0_i32_1 = arith.constant 0 : i32
    return %arg0, %c0_i32, %c0_i32_0 : i32, i32, i32
  }
}

module attributes {stable_mosaic.version = 11 : i64} {
  func.func @_duration_predictor_kernel(%arg0: i32, %arg1: memref<1x8x32xbf16, #tpu.memory_space<vmem>>, %arg2: memref<96x32xbf16, #tpu.memory_space<vmem>>, %arg3: memref<1x32xf32, #tpu.memory_space<vmem>>, %arg4: memref<1x32xf32, #tpu.memory_space<vmem>>, %arg5: memref<1x32xf32, #tpu.memory_space<vmem>>, %arg6: memref<96x32xbf16, #tpu.memory_space<vmem>>, %arg7: memref<1x32xf32, #tpu.memory_space<vmem>>, %arg8: memref<1x32xf32, #tpu.memory_space<vmem>>, %arg9: memref<1x32xf32, #tpu.memory_space<vmem>>, %arg10: memref<1x32xbf16, #tpu.memory_space<vmem>>, %arg11: memref<1x1xf32, #tpu.memory_space<vmem>>, %arg12: memref<1x1x8xf32, #tpu.memory_space<vmem>>) attributes {dimension_semantics = [#tpu.dimension_semantics<parallel>], iteration_bounds = array<i64: 2>, scalar_prefetch = 0 : i64, scratch_operands = 0 : i64, tpu.core_type = #tpu.core_type<tc>, window_params = [{transform_indices = @transform_0, window_bounds = array<i64: 1, 8, 32>}, {pipeline_mode = #tpu.pipeline_mode<synchronous>, transform_indices = @transform_1, window_bounds = array<i64: 96, 32>}, {pipeline_mode = #tpu.pipeline_mode<synchronous>, transform_indices = @transform_2, window_bounds = array<i64: 1, 32>}, {pipeline_mode = #tpu.pipeline_mode<synchronous>, transform_indices = @transform_3, window_bounds = array<i64: 1, 32>}, {pipeline_mode = #tpu.pipeline_mode<synchronous>, transform_indices = @transform_4, window_bounds = array<i64: 1, 32>}, {pipeline_mode = #tpu.pipeline_mode<synchronous>, transform_indices = @transform_5, window_bounds = array<i64: 96, 32>}, {pipeline_mode = #tpu.pipeline_mode<synchronous>, transform_indices = @transform_6, window_bounds = array<i64: 1, 32>}, {pipeline_mode = #tpu.pipeline_mode<synchronous>, transform_indices = @transform_7, window_bounds = array<i64: 1, 32>}, {pipeline_mode = #tpu.pipeline_mode<synchronous>, transform_indices = @transform_8, window_bounds = array<i64: 1, 32>}, {pipeline_mode = #tpu.pipeline_mode<synchronous>, transform_indices = @transform_9, window_bounds = array<i64: 1, 32>}, {pipeline_mode = #tpu.pipeline_mode<synchronous>, transform_indices = @transform_10, window_bounds = array<i64: 1, 1>}, {transform_indices = @transform_11, window_bounds = array<i64: 1, 1, 8>}]} {
    %c0 = arith.constant 0 : index
    %c0_0 = arith.constant 0 : index
    %c0_1 = arith.constant 0 : index
    %0 = vector.load %arg1[%c0, %c0_0, %c0_1] : memref<1x8x32xbf16, #tpu.memory_space<vmem>>, vector<1x8x32xbf16>
    %1 = vector.shape_cast %0 : vector<1x8x32xbf16> to vector<8x32xbf16>
    %2 = arith.extf %1 : vector<8x32xbf16> to vector<8x32xf32>
    %c0_2 = arith.constant 0 : index
    %c0_3 = arith.constant 0 : index
    %3 = vector.load %arg2[%c0_2, %c0_3] : memref<96x32xbf16, #tpu.memory_space<vmem>>, vector<96x32xbf16>
    %c0_4 = arith.constant 0 : index
    %c0_5 = arith.constant 0 : index
    %4 = vector.load %arg3[%c0_4, %c0_5] : memref<1x32xf32, #tpu.memory_space<vmem>>, vector<1x32xf32>
    %cst = arith.constant 0.000000e+00 : f32
    %5 = vector.broadcast %cst : f32 to vector<1x32xf32>
    %6 = tpu.concatenate %5, %2, %5 in 0 : vector<1x32xf32>, vector<8x32xf32>, vector<1x32xf32> -> vector<10x32xf32>
    %7 = vector.extract_strided_slice %6 {offsets = [0, 0], sizes = [8, 32], strides = [1, 1]} : vector<10x32xf32> to vector<8x32xf32>
    %8 = vector.extract_strided_slice %6 {offsets = [1, 0], sizes = [8, 32], strides = [1, 1]} : vector<10x32xf32> to vector<8x32xf32>
    %9 = vector.extract_strided_slice %6 {offsets = [2, 0], sizes = [8, 32], strides = [1, 1]} : vector<10x32xf32> to vector<8x32xf32>
    %10 = tpu.concatenate %7, %8, %9 in 1 : vector<8x32xf32>, vector<8x32xf32>, vector<8x32xf32> -> vector<8x96xf32>
    %11 = arith.truncf %10 : vector<8x96xf32> to vector<8x96xbf16>
    %cst_6 = arith.constant dense<0.000000e+00> : vector<8x32xf32>
    %12 = tpu.matmul %11, %3, %cst_6 {dimension_numbers = #tpu.dot_dimension_numbers<[1], [0], [0], [1], [0, 0, 1, 1], [], []>} : vector<8x96xbf16>, vector<96x32xbf16>, vector<8x32xf32> -> vector<8x32xf32>
    %13 = vector.broadcast %4 : vector<1x32xf32> to vector<8x32xf32>
    %14 = arith.addf %12, %13 : vector<8x32xf32>
    %cst_7 = arith.constant 0.000000e+00 : f32
    %15 = vector.broadcast %cst_7 : f32 to vector<8x32xf32>
    %16 = arith.maximumf %14, %15 : vector<8x32xf32>
    %c0_8 = arith.constant 0 : index
    %c0_9 = arith.constant 0 : index
    %17 = vector.load %arg4[%c0_8, %c0_9] : memref<1x32xf32, #tpu.memory_space<vmem>>, vector<1x32xf32>
    %c0_10 = arith.constant 0 : index
    %c0_11 = arith.constant 0 : index
    %18 = vector.load %arg5[%c0_10, %c0_11] : memref<1x32xf32, #tpu.memory_space<vmem>>, vector<1x32xf32>
    %cst_12 = arith.constant dense<0.000000e+00> : vector<8xf32>
    %19 = vector.multi_reduction <add>, %16, %cst_12 [1] : vector<8x32xf32> to vector<8xf32>
    %20 = vector.shape_cast %19 : vector<8xf32> to vector<8x1xf32>
    %cst_13 = arith.constant 3.200000e+01 : f32
    %21 = vector.broadcast %cst_13 : f32 to vector<8x1xf32>
    %22 = arith.divf %20, %21 : vector<8x1xf32>
    %23 = vector.broadcast %22 : vector<8x1xf32> to vector<8x32xf32>
    %24 = arith.subf %16, %23 : vector<8x32xf32>
    %25 = arith.mulf %24, %24 : vector<8x32xf32>
    %cst_14 = arith.constant dense<0.000000e+00> : vector<8xf32>
    %26 = vector.multi_reduction <add>, %25, %cst_14 [1] : vector<8x32xf32> to vector<8xf32>
    %27 = vector.shape_cast %26 : vector<8xf32> to vector<8x1xf32>
    %cst_15 = arith.constant 3.200000e+01 : f32
    %28 = vector.broadcast %cst_15 : f32 to vector<8x1xf32>
    %29 = arith.divf %27, %28 : vector<8x1xf32>
    %30 = vector.broadcast %22 : vector<8x1xf32> to vector<8x32xf32>
    %31 = arith.subf %16, %30 : vector<8x32xf32>
    %cst_16 = arith.constant 9.99999974E-6 : f32
    %32 = vector.broadcast %cst_16 : f32 to vector<8x1xf32>
    %33 = arith.addf %29, %32 : vector<8x1xf32>
    %34 = math.rsqrt %33 : vector<8x1xf32>
    %35 = vector.broadcast %34 : vector<8x1xf32> to vector<8x32xf32>
    %36 = arith.mulf %31, %35 : vector<8x32xf32>
    %37 = vector.broadcast %17 : vector<1x32xf32> to vector<8x32xf32>
    %38 = arith.mulf %36, %37 : vector<8x32xf32>
    %39 = vector.broadcast %18 : vector<1x32xf32> to vector<8x32xf32>
    %40 = arith.addf %38, %39 : vector<8x32xf32>
    %c0_17 = arith.constant 0 : index
    %c0_18 = arith.constant 0 : index
    %41 = vector.load %arg6[%c0_17, %c0_18] : memref<96x32xbf16, #tpu.memory_space<vmem>>, vector<96x32xbf16>
    %c0_19 = arith.constant 0 : index
    %c0_20 = arith.constant 0 : index
    %42 = vector.load %arg7[%c0_19, %c0_20] : memref<1x32xf32, #tpu.memory_space<vmem>>, vector<1x32xf32>
    %cst_21 = arith.constant 0.000000e+00 : f32
    %43 = vector.broadcast %cst_21 : f32 to vector<1x32xf32>
    %44 = tpu.concatenate %43, %40, %43 in 0 : vector<1x32xf32>, vector<8x32xf32>, vector<1x32xf32> -> vector<10x32xf32>
    %45 = vector.extract_strided_slice %44 {offsets = [0, 0], sizes = [8, 32], strides = [1, 1]} : vector<10x32xf32> to vector<8x32xf32>
    %46 = vector.extract_strided_slice %44 {offsets = [1, 0], sizes = [8, 32], strides = [1, 1]} : vector<10x32xf32> to vector<8x32xf32>
    %47 = vector.extract_strided_slice %44 {offsets = [2, 0], sizes = [8, 32], strides = [1, 1]} : vector<10x32xf32> to vector<8x32xf32>
    %48 = tpu.concatenate %45, %46, %47 in 1 : vector<8x32xf32>, vector<8x32xf32>, vector<8x32xf32> -> vector<8x96xf32>
    %49 = arith.truncf %48 : vector<8x96xf32> to vector<8x96xbf16>
    %cst_22 = arith.constant dense<0.000000e+00> : vector<8x32xf32>
    %50 = tpu.matmul %49, %41, %cst_22 {dimension_numbers = #tpu.dot_dimension_numbers<[1], [0], [0], [1], [0, 0, 1, 1], [], []>} : vector<8x96xbf16>, vector<96x32xbf16>, vector<8x32xf32> -> vector<8x32xf32>
    %51 = vector.broadcast %42 : vector<1x32xf32> to vector<8x32xf32>
    %52 = arith.addf %50, %51 : vector<8x32xf32>
    %cst_23 = arith.constant 0.000000e+00 : f32
    %53 = vector.broadcast %cst_23 : f32 to vector<8x32xf32>
    %54 = arith.maximumf %52, %53 : vector<8x32xf32>
    %c0_24 = arith.constant 0 : index
    %c0_25 = arith.constant 0 : index
    %55 = vector.load %arg8[%c0_24, %c0_25] : memref<1x32xf32, #tpu.memory_space<vmem>>, vector<1x32xf32>
    %c0_26 = arith.constant 0 : index
    %c0_27 = arith.constant 0 : index
    %56 = vector.load %arg9[%c0_26, %c0_27] : memref<1x32xf32, #tpu.memory_space<vmem>>, vector<1x32xf32>
    %cst_28 = arith.constant dense<0.000000e+00> : vector<8xf32>
    %57 = vector.multi_reduction <add>, %54, %cst_28 [1] : vector<8x32xf32> to vector<8xf32>
    %58 = vector.shape_cast %57 : vector<8xf32> to vector<8x1xf32>
    %cst_29 = arith.constant 3.200000e+01 : f32
    %59 = vector.broadcast %cst_29 : f32 to vector<8x1xf32>
    %60 = arith.divf %58, %59 : vector<8x1xf32>
    %61 = vector.broadcast %60 : vector<8x1xf32> to vector<8x32xf32>
    %62 = arith.subf %54, %61 : vector<8x32xf32>
    %63 = arith.mulf %62, %62 : vector<8x32xf32>
    %cst_30 = arith.constant dense<0.000000e+00> : vector<8xf32>
    %64 = vector.multi_reduction <add>, %63, %cst_30 [1] : vector<8x32xf32> to vector<8xf32>
    %65 = vector.shape_cast %64 : vector<8xf32> to vector<8x1xf32>
    %cst_31 = arith.constant 3.200000e+01 : f32
    %66 = vector.broadcast %cst_31 : f32 to vector<8x1xf32>
    %67 = arith.divf %65, %66 : vector<8x1xf32>
    %68 = vector.broadcast %60 : vector<8x1xf32> to vector<8x32xf32>
    %69 = arith.subf %54, %68 : vector<8x32xf32>
    %cst_32 = arith.constant 9.99999974E-6 : f32
    %70 = vector.broadcast %cst_32 : f32 to vector<8x1xf32>
    %71 = arith.addf %67, %70 : vector<8x1xf32>
    %72 = math.rsqrt %71 : vector<8x1xf32>
    %73 = vector.broadcast %72 : vector<8x1xf32> to vector<8x32xf32>
    %74 = arith.mulf %69, %73 : vector<8x32xf32>
    %75 = vector.broadcast %55 : vector<1x32xf32> to vector<8x32xf32>
    %76 = arith.mulf %74, %75 : vector<8x32xf32>
    %77 = vector.broadcast %56 : vector<1x32xf32> to vector<8x32xf32>
    %78 = arith.addf %76, %77 : vector<8x32xf32>
    %c0_33 = arith.constant 0 : index
    %c0_34 = arith.constant 0 : index
    %79 = vector.load %arg10[%c0_33, %c0_34] : memref<1x32xbf16, #tpu.memory_space<vmem>>, vector<1x32xbf16>
    %80 = arith.truncf %78 : vector<8x32xf32> to vector<8x32xbf16>
    %cst_35 = arith.constant dense<0.000000e+00> : vector<1x8xf32>
    %81 = tpu.matmul %79, %80, %cst_35 {dimension_numbers = #tpu.dot_dimension_numbers<[1], [1], [0], [0], [0, 0, 1, 0], [], []>} : vector<1x32xbf16>, vector<8x32xbf16>, vector<1x8xf32> -> vector<1x8xf32>
    %c0_36 = arith.constant 0 : index
    %c0_37 = arith.constant 0 : index
    %82 = vector.load %arg11[%c0_36, %c0_37] : memref<1x1xf32, #tpu.memory_space<vmem>>, vector<1x1xf32>
    %83 = vector.broadcast %82 : vector<1x1xf32> to vector<1x8xf32>
    %84 = arith.addf %81, %83 : vector<1x8xf32>
    %c0_38 = arith.constant 0 : index
    %c0_39 = arith.constant 0 : index
    %c0_40 = arith.constant 0 : index
    %85 = vector.load %arg12[%c0_38, %c0_39, %c0_40] : memref<1x1x8xf32, #tpu.memory_space<vmem>>, vector<1x1x8xf32>
    %86 = vector.shape_cast %85 : vector<1x1x8xf32> to vector<1x8xf32>
    %87 = vector.shape_cast %84 : vector<1x8xf32> to vector<1x1x8xf32>
    tpu.vector_store %arg12[%c0_38, %c0_39, %c0_40], %87 {strides = array<i32>} : memref<1x1x8xf32, #tpu.memory_space<vmem>>, vector<1x1x8xf32>,
    return
  }
  func.func @transform_0(%arg0: i32) -> (i32, i32, i32) {
    %c0_i32 = arith.constant 0 : i32
    %c0_i32_0 = arith.constant 0 : i32
    %c0_i32_1 = arith.constant 0 : i32
    return %arg0, %c0_i32, %c0_i32_0 : i32, i32, i32
  }
  func.func @transform_1(%arg0: i32) -> (i32, i32) {
    %c0_i32 = arith.constant 0 : i32
    %c0_i32_0 = arith.constant 0 : i32
    %c0_i32_1 = arith.constant 0 : i32
    return %c0_i32, %c0_i32_0 : i32, i32
  }
  func.func @transform_2(%arg0: i32) -> (i32, i32) {
    %c0_i32 = arith.constant 0 : i32
    %c0_i32_0 = arith.constant 0 : i32
    %c0_i32_1 = arith.constant 0 : i32
    return %c0_i32, %c0_i32_0 : i32, i32
  }
  func.func @transform_3(%arg0: i32) -> (i32, i32) {
    %c0_i32 = arith.constant 0 : i32
    %c0_i32_0 = arith.constant 0 : i32
    %c0_i32_1 = arith.constant 0 : i32
    return %c0_i32, %c0_i32_0 : i32, i32
  }
  func.func @transform_4(%arg0: i32) -> (i32, i32) {
    %c0_i32 = arith.constant 0 : i32
    %c0_i32_0 = arith.constant 0 : i32
    %c0_i32_1 = arith.constant 0 : i32
    return %c0_i32, %c0_i32_0 : i32, i32
  }
  func.func @transform_5(%arg0: i32) -> (i32, i32) {
    %c0_i32 = arith.constant 0 : i32
    %c0_i32_0 = arith.constant 0 : i32
    %c0_i32_1 = arith.constant 0 : i32
    return %c0_i32, %c0_i32_0 : i32, i32
  }
  func.func @transform_6(%arg0: i32) -> (i32, i32) {
    %c0_i32 = arith.constant 0 : i32
    %c0_i32_0 = arith.constant 0 : i32
    %c0_i32_1 = arith.constant 0 : i32
    return %c0_i32, %c0_i32_0 : i32, i32
  }
  func.func @transform_7(%arg0: i32) -> (i32, i32) {
    %c0_i32 = arith.constant 0 : i32
    %c0_i32_0 = arith.constant 0 : i32
    %c0_i32_1 = arith.constant 0 : i32
    return %c0_i32, %c0_i32_0 : i32, i32
  }
  func.func @transform_8(%arg0: i32) -> (i32, i32) {
    %c0_i32 = arith.constant 0 : i32
    %c0_i32_0 = arith.constant 0 : i32
    %c0_i32_1 = arith.constant 0 : i32
    return %c0_i32, %c0_i32_0 : i32, i32
  }
  func.func @transform_9(%arg0: i32) -> (i32, i32) {
    %c0_i32 = arith.constant 0 : i32
    %c0_i32_0 = arith.constant 0 : i32
    %c0_i32_1 = arith.constant 0 : i32
    return %c0_i32, %c0_i32_0 : i32, i32
  }
  func.func @transform_10(%arg0: i32) -> (i32, i32) {
    %c0_i32 = arith.constant 0 : i32
    %c0_i32_0 = arith.constant 0 : i32
    %c0_i32_1 = arith.constant 0 : i32
    return %c0_i32, %c0_i32_0 : i32, i32
  }
  func.func @transform_11(%arg0: i32) -> (i32, i32, i32) {
    %c0_i32 = arith.constant 0 : i32
    %c0_i32_0 = arith.constant 0 : i32
    %c0_i32_1 = arith.constant 0 : i32
    return %arg0, %c0_i32, %c0_i32_0 : i32, i32, i32
  }
}

</mosaic_0001>

<bundles_post_ra>
// kernel: fastspeech_forward.9
= control target key start
LH: loop header
LB: loop body
LE: loop exit
PB: predicated region body
PF: predicated region fallthrough
CT: control target
= control target key end

     0   :  { %s395_s12 = smov 0   ;;  %s431_s0 = inlined_call_operand.vmem [shape: bf16[2,13,32], index: 0, kind: input, shape index: {}]   ;;  %s432_s1 = inlined_call_operand.vmem [shape: bf16[24,32], index: 1, kind: input, shape index: {}]   ;;  %s433_s2 = inlined_call_operand.vmem [shape: f32[24,1], index: 2, kind: input, shape index: {}]   ;;  %s434_s3 = inlined_call_operand.vmem [shape: f32[2,24,13], index: 3, kind: output, shape index: {}]  }
   0x1 LB: > { %s325_s13 = sadd.s32 4294967295, %s372_s12   ;;  %p329_p0 = scmp.ge.s32.totalorder %s372_s12, 1  ;;  %s372_s12 = sphi %s395_s12, %s13_s12  }
   0x2   : > { %p137_p1 = scmp.lt.s32.totalorder %s372_s12, 3 }
   0x4   : > { %p138_p2 = pnand %p329_p0, %p137_p1 }
   0x5   : > { %p161_p3 = scmp.lt.s32.totalorder (!%p138_p2), %s325_s13, 1 }
   0x6   : > { %141 = sbr.rel (%p138_p2) target bundleno = 225 (0xe1), region = 32 }
   0xb   : > { %v364_v0 = vld [vmem:[%s432_s1] sm:$0xff]   ;;  %s436_s13 = smov (!%p161_p3, %s325_s13), 1  ;;  %vm208_vm0 = vcmask 261120   ;;  %v374_v1 = vmov 0   ;;  %v179_v3 = vld [vmem:[%s433_s2 + $0x10] sm:$0xff]  ;;  %v178_v4 = vld [vmem:[%s433_s2 + $0x8] sm:$0xff] }
   0xc   : > { %361 = vset.pattern.permute.xlu0 %v374_v1  ;;  %v177_v2 = vld [vmem:[%s433_s2] sm:$0xff]  ;;  %362 = vset.pattern.permute.xlu1 %v374_v1  ;;  %s340_s20 = sshll.u32 %s436_s13, 3  ;;  %v365_v7 = vld [vmem:[%s432_s1 + $0x8] ss:$0 sps:$4 sm:$0xff]   ;;  %s351_s28 = smul.u32 24, %s436_s13  ;;  %vm266_vm1 = vcmask 105472  }
   0xd   : > { %346 = vmatprep.mubr.msk.bf16.mxu0 %vm208_vm0, %v364_v0  ;;  %182 = vperm.xlu0 %361, %v177_v2   ;;  %s165_s25 = scalar_lea.vmem %s431_s0, %s340_s20 }
   0xe   : > { %192 = vperm.xlu1 %362, %v179_v3   ;;  %v363_v5 = vld [vmem:[%s165_s25] sm:$0x7f]   ;;  %s170_s4 = scalar_lea.vmem %s434_s3, %s351_s28 }
   0xf   : > { %350 = vmatprep.subr.msk.bf16.mxu0 %vm208_vm0, %v363_v5  ;;  %v216_v6 = vsel %vm208_vm0, %v363_v5, 0 }
  0x10   : > { %345 = vmatpush3.bf16.xpose.msra.mxu0 %v216_v6 }
  0x11   : > { %187 = vperm.xlu0 %361, %v178_v4  }
  0x17   : > { %347 = vmatmul.mubr.msk.bf16.vlgmr.msra.gmra.mxu0 %vm208_vm0, %v365_v7 }
  0x88   : > { %v183_v9 = vpop.permute.xlu0 %182 }
  0x89   : > { %v193_v8 = vpop.permute.xlu1 %192 }
  0x8c   : > { %v188_v15 = vpop.permute.xlu0 %187 }
  0xd7   : > { %v348_v10 = vpop.f32.mrf.mxu0 }
  0xd8   : > { %v261_v11 = vadd.f32 %v348_v10, %v193_v8 }
  0xd9   : > { %v252_v12 = vpop.f32.mrf.mxu0 }
  0xda   : > { %269 = vst.msk [vmem:[%s170_s4 + $0x10] sm:$0xff] %vm266_vm1, %v261_v11  ;;  %v253_v13 = vadd.f32 %v252_v12, %v183_v9 }
  0xdb   : > { %v349_v14 = vpop.f32.mrf.mxu0 }
  0xdc   : > { %267 = vst.msk [vmem:[%s170_s4] sm:$0xff] %vm266_vm1, %v253_v13 }
  0xdd   : > { %v255_v16 = vpop.f32.mrf.mxu0 }
  0xde   : > { %v256_v17 = vadd.f32 %v255_v16, %v188_v15 }
  0xe0   : > { %268 = vst.msk [vmem:[%s170_s4 + $0x8] sm:$0xff] %vm266_vm1, %v256_v17 }
  0xe1 PF: > { %s13_s12 = sadd.s32 1, %s372_s12  }
  0xe2   : > { %p10_p4 = scmp.ge.s32.totalorder %s13_s12, 4  }
  0xe4   :  { %12 = sbr.rel (!%p10_p4) target bundleno = 1 (0x1), region = 62 }

// kernel: fastspeech_forward.7
= control target key start
LH: loop header
LB: loop body
LE: loop exit
PB: predicated region body
PF: predicated region fallthrough
CT: control target
= control target key end

     0   :  { %s493_s0 = inlined_call_operand.vmem [shape: s32[2], index: 0, kind: input, shape index: {}]   ;;  %s494_s1 = inlined_call_operand.vmem [shape: s32[2,1,8], index: 1, kind: input, shape index: {}]   ;;  %s495_s2 = inlined_call_operand.vmem [shape: s32[2,1,8], index: 2, kind: input, shape index: {}]   ;;  %s496_s3 = inlined_call_operand.vmem [shape: bf16[2,8,32], index: 3, kind: input, shape index: {}]   ;;  %s497_s4 = inlined_call_operand.vmem [shape: bf16[2,13,32], index: 4, kind: output, shape index: {}]  }
   0x1   :  { %s9_s17 = sshll.u32 %s493_s0, 4  ;;  %s10_s17 = int_to_ptr.vmem [resolvable:$true] %s9_s17 }
   0x2   :  { %s411_s18 = scalar_lea.vmem %s10_s17, 16  ;;  %p416_p1 = scmp.lt.s32.totalorder %s10_s17, %s10_s17 }
   0x3   :  { %p412_p0 = scmp.ne.s32.totalorder %s10_s17, %s411_s18  ;;  %p417_p2 = scmp.lt.s32.totalorder %s411_s18, %s411_s18 }
   0x5   :  { %p418_p3 = por %p417_p2, %p416_p1 }
   0x7   :  { %p419_p4 = pnand %p418_p3, %p412_p0 }
   0x9   :  { %422 = shalt.err (!%p419_p4)  }
   0xa   :  { %s433_s19 = smov [#allocation3]  }
   0xb   :  { %12 = dma.vmem_to_smem %s10_s17, 16, %s433_s19, [#allocation2] }
   0xc   :  { %427 = dma.done.wait [#allocation2], 16 }
   0xd   :  { %428 = vsyncadd [#allocation2], 4294967280 }
   0xe   :  { %14 = sfence }
   0xf   :  { %s464_s20 = smov 0  }
  0x10 LB: > { %s376_s0 = sadd.s32 4294967295, %s431_s20   ;;  %p380_p5 = scmp.ge.s32.totalorder %s431_s20, 1  ;;  %s431_s20 = sphi %s464_s20, %s20_s20  }
  0x11   : > { %p159_p6 = scmp.lt.s32.totalorder %s431_s20, 3 }
  0x13   : > { %p160_p7 = pnand %p380_p5, %p159_p6 }
  0x14   : > { %p188_p8 = scmp.lt.s32.totalorder (!%p160_p7), %s376_s0, 1  ;;  %s224_s21 = sld [smem:[#allocation3 + %s376_s0]] (!%p160_p7) }
  0x15   : > { %163 = sbr.rel (%p160_p7) target bundleno = 243 (0xf3), region = 32 }
  0x1a   : > { %v206_v0 = vlaneseq  ;;  %v434_v1 = vmov 0.0   ;;  %vm435_vm0 = vmmov 0   ;;  %s499_s0 = smov (!%p188_p8, %s376_s0), 1  ;;  %vm242_vm1 = vcmask 1043456  }
  0x1b   : > { %394 = vmatprep.subr.bf16.mxu0 %v434_v1  ;;  %396 = vmatprep.mubr.msk.bf16.mxu0 %vm435_vm0, %v434_v1  ;;  %s190_s24 = scalar_lea.vmem %s494_s1, %s499_s0  ;;  %s193_s27 = scalar_lea.vmem %s495_s2, %s499_s0  ;;  %v225_v9 = vstv %s224_s21  ;;  %vm238_vm12 = vcmask 64512   ;;  %vm295_vm13 = vcmask 257024   ;;  %vm297_vm14 = vcmask 256000  }
  0x1c   : > { %v207_v2 = vshrl.u32 %v206_v0, 7  ;;  %v204_v4 = vld [vmem:[%s190_s24] sm:$0x1]  ;;  %s381_s28 = sshll.u32 %s499_s0, 2  ;;  %s389_s6 = sshll.u32 %s499_s0, 3 }
  0x1d   : > { %v205_v5 = vld [vmem:[%s193_s27] sm:$0x1]  ;;  %s197_s5 = scalar_lea.vmem %s496_s3, %s381_s28  ;;  %s202_s9 = scalar_lea.vmem %s497_s4, %s389_s6  ;;  %vm298_vm15 = vsmask.f32 2304 }
  0x1e   : > { %v211_v3 = vsub.s32 0, %v207_v2  ;;  %v208_v6 = vadd.s32 8, %v207_v2  ;;  %v215_v8 = vsub.s32 %v205_v5, %v204_v4  ;;  %v237_v10 = vld [vmem:[%s197_s5] sm:$0xf]  ;;  %vm226_vm6 = vcmp.le.s32.totalorder %v207_v2, %v225_v9  ;;  %vm299_vm0 = vmand %vm297_vm14, %vm298_vm15  ;;  %v300_v20 = vld [vmem:[%s202_s9 + $0x4] sm:$0x7] }
  0x1f   : > { %v244_v12 = vsel %vm242_vm1, %v237_v10, 0 }
  0x20   : > { %v212_v7 = vrot.slane %v205_v5, %v211_v3  ;;  %v219_v11 = vrot.slane %v215_v8, %v211_v3  ;;  %395 = vmatpush3.bf16.msra.mxu0 %v244_v12  ;;  %vm227_vm8 = vcmp.le.s32.totalorder %v208_v6, %v225_v9 }
  0x22   : > { %vm213_vm2 = vcmp.lt.s32.totalorder %v207_v2, %v212_v7  ;;  %vm214_vm3 = vcmp.lt.s32.totalorder %v208_v6, %v212_v7  ;;  %vm220_vm4 = vcmp.ge.s32.totalorder %v207_v2, %v219_v11  ;;  %vm221_vm5 = vcmp.ge.s32.totalorder %v208_v6, %v219_v11 }
  0x23   : > { %vm222_vm7 = vmand %vm213_vm2, %vm220_vm4 }
  0x24   : > { %vm223_vm9 = vmand %vm214_vm3, %vm221_vm5 }
  0x25   : > { %vm232_vm10 = vmand %vm222_vm7, %vm226_vm6 }
  0x26   : > { %vm233_vm11 = vmand %vm223_vm9, %vm227_vm8  ;;  %v234_v13 = vsel %vm232_vm10, 1.0, %v434_v1 }
  0x27   : > { %v235_v14 = vsel %vm233_vm11, 1.0, %v434_v1 }
  0x28   : > { %v236_v15 = vpack.c.bf16 %v235_v14, %v234_v13 }
  0x2a   : > { %397 = vmatmul.mubr.msk.bf16.vlgmr.msra.gmra.mxu0 %vm238_vm12, %v236_v15 }
  0xea   : > { %v280_v16 = vpop.f32.mrf.mxu0 }
  0xeb   : > { %v390_v17 = vpack.c.bf16 %v280_v16, %v280_v16 }
  0xec   : > { %v398_v18 = vpop.f32.mrf.mxu0 }
  0xed   : > { %296 = vst.msk [vmem:[%s202_s9] sm:$0xf] %vm295_vm13, %v390_v17 }
  0xee   : > { %v283_v19 = vpop.f32.mrf.mxu0 }
  0xef   : > { %v391_v21 = vpack.c.bf16 %v283_v19, %v283_v19 }
  0xf0   : > { %v399_v22 = vpop.f32.mrf.mxu0 }
  0xf1   : > { %v301_v23 = vsel %vm299_vm0, %v391_v21, %v300_v20 }
  0xf2   : > { %302 = vst [vmem:[%s202_s9 + $0x4] sm:$0x7] %v301_v23 }
  0xf3 PF: > { %s20_s20 = sadd.s32 1, %s431_s20  }
  0xf4   : > { %p17_p9 = scmp.ge.s32.totalorder %s20_s20, 4  }
  0xf6   :  { %19 = sbr.rel (!%p17_p9) target bundleno = 16 (0x10), region = 68 }

// kernel: fastspeech_forward.5
= control target key start
LH: loop header
LB: loop body
LE: loop exit
PB: predicated region body
PF: predicated region fallthrough
CT: control target
= control target key end

     0   :  { %s2181_s0 = inlined_call_operand.vmem [shape: s32[2], index: 0, kind: input, shape index: {}]   ;;  %s2182_s1 = inlined_call_operand.vmem [shape: bf16[2,8,32], index: 1, kind: input, shape index: {}]   ;;  %s2183_s2 = inlined_call_operand.vmem [shape: bf16[2,32,96], index: 2, kind: input, shape index: {}]   ;;  %s2184_s3 = inlined_call_operand.vmem [shape: f32[2,1,96], index: 3, kind: input, shape index: {}]   ;;  %s2185_s4 = inlined_call_operand.vmem [shape: bf16[2,32,32], index: 4, kind: input, shape index: {}]   ;;  %s2186_s5 = inlined_call_operand.vmem [shape: f32[2,1,32], index: 5, kind: input, shape index: {}]   ;;  %s2187_s6 = inlined_call_operand.vmem [shape: f32[2,1,32], index: 6, kind: input, shape index: {}]   ;;  %s2188_s7 = inlined_call_operand.vmem [shape: f32[2,1,32], index: 7, kind: input, shape index: {}]   ;;  %s2189_s8 = inlined_call_operand.vmem [shape: bf16[2,96,64], index: 8, kind: input, shape index: {}]   ;;  %s2190_s9 = inlined_call_operand.vmem [shape: f32[2,1,64], index: 9, kind: input, shape index: {}]   ;;  %s2191_s10 = inlined_call_operand.vmem [shape: bf16[2,192,32], index: 10, kind: input, shape index: {}]   ;;  %s2192_s11 = inlined_call_operand.vmem [shape: f32[2,1,32], index: 11, kind: input, shape index: {}]   ;;  %s2193_s12 = inlined_call_operand.vmem [shape: f32[2,1,32], index: 12, kind: input, shape index: {}]   ;;  %s2194_s13 = inlined_call_operand.vmem [shape: f32[2,1,32], index: 13, kind: input, shape index: {}]   ;;  %s2195_s14 = inlined_call_operand.vmem [shape: bf16[2,8,32], index: 14, kind: output, shape index: {}]  }
   0x1   :  { %2201 = sst [smem:[#allocation13_spill]] %s2182_s1  ;;  %s19_s15 = sshll.u32 %s2181_s0, 4  ;;  %s20_s15 = int_to_ptr.vmem [resolvable:$true] %s19_s15 }
   0x2   :  { %2202 = sst [smem:[#allocation14_spill]] %s2183_s2  ;;  %s1788_s16 = scalar_lea.vmem %s20_s15, 16 }
   0x3   :  { %2203 = sst [smem:[#allocation15_spill]] %s2185_s4  ;;  %p1789_p0 = scmp.ne.s32.totalorder %s20_s15, %s1788_s16 }
   0x4   :  { %2204 = sst [smem:[#allocation16_spill]] %s2190_s9  ;;  %p1793_p1 = scmp.lt.s32.totalorder %s20_s15, %s20_s15 }
   0x5   :  { %2205 = sst [smem:[#allocation17_spill]] %s2192_s11  ;;  %p1794_p2 = scmp.lt.s32.totalorder %s1788_s16, %s1788_s16 }
   0x6   :  { %2206 = sst [smem:[#allocation18_spill]] %s2194_s13 }
   0x7   :  { %2207 = sst [smem:[#allocation19_spill]] %s2195_s14  ;;  %p1795_p3 = por %p1794_p2, %p1793_p1 }
   0x9   :  { %p1796_p4 = pnand %p1795_p3, %p1789_p0 }
   0xb   :  { %1799 = shalt.err (!%p1796_p4)  }
   0xc   :  { %s1842_s17 = smov [#allocation4]  }
   0xd   :  { %22 = dma.vmem_to_smem %s20_s15, 16, %s1842_s17, [#allocation3] }
   0xe   :  { %1820 = dma.done.wait [#allocation3], 16 }
   0xf   :  { %1821 = vsyncadd [#allocation3], 4294967280 }
  0x10   :  { %24 = sfence }
  0x11   :  { %s1931_s18 = smov 0   ;;  %s1933_s19 = smov 0  }
  0x12   :  { %s1935_s20 = smov 0   ;;  %s1937_s0 = smov 0  }
  0x13   :  { %s1939_s21 = smov 0  }
  0x14 LB: > { %2208 = sst [smem:[#allocation6_spill]] %s1824_s18  ;;  %s39_s22 = sadd.s32 1, %s1832_s20  ;;  %s1840_s21 = sphi %s1939_s21, %s30_s21   ;;  %s1836_s0 = sphi %s1937_s0, %s2237_s0   ;;  %s1832_s20 = sphi %s1935_s20, %s2236_s20   ;;  %s1828_s19 = sphi %s1933_s19, %s2235_s19   ;;  %s1824_s18 = sphi %s1931_s18, %s2234_s18  }
  0x15   : > { %2209 = sst [smem:[#allocation7_spill]] %s1828_s19  ;;  %s42_s23 = sadd.s32 1, %s1836_s0 }
  0x16   : > { %2210 = sst [smem:[#allocation8_spill]] %s1832_s20  ;;  %p40_p5 = scmp.ge.s32.totalorder %s39_s22, 2 }
  0x17   : > { %2211 = sst [smem:[#allocation9_spill]] %s1836_s0  ;;  %p1572_p6 = scmp.ge.s32.totalorder %s1840_s21, 1 }
  0x18   : > { %2212 = sst [smem:[#allocation10_spill]] %s1840_s21  ;;  %p509_p7 = scmp.lt.s32.totalorder %s1840_s21, 5 }
  0x19   : > { %s2239_s22 = smov (%p40_p5, %s39_s22), 0  ;;  %s2241_s23 = smov (!%p40_p5, %s42_s23), %s1836_s0 }
  0x1a   : > { %2213 = sst [smem:[#allocation11_spill]] %s2239_s22  ;;  %p510_p8 = pnand %p1572_p6, %p509_p7 }
  0x1b   : > { %p44_p9 = scmp.ge.s32.totalorder %s2241_s23, 2  ;;  %p595_p10 = scmp.lt.s32.totalorder (!%p510_p8), %s1828_s19, 1 }
  0x1c   : > { %513 = sbr.rel (%p510_p8) target bundleno = 2674 (0xa72), region = 72  ;;  %p599_p11 = scmp.lt.s32.totalorder (!%p510_p8), %s1824_s18, 1 }
  0x1d   : > { %s2243_s23 = smov (%p44_p9, %s2241_s23), 0  ;;  %s2215_s1 = sld [smem:[#allocation13_spill]] (!%p510_p8) }
  0x1e   : > { %2214 = sst [smem:[#allocation12_spill]] %s2243_s23 }
  0x1f   : > { %s2216_s2 = sld [smem:[#allocation14_spill]] (!%p510_p8) }
  0x20   : > { %s2217_s4 = sld [smem:[#allocation15_spill]] (!%p510_p8) }
  0x21   : > { %s596_s24 = scalar_select %p595_p10, %s1828_s19, 1 }
  0x22   : > { %s1969_s25 = scalar_select %p599_p11, %s1824_s18, 1 }
  0x23   : > { %s1573_s26 = sshll.u32 %s596_s24, 2  ;;  %s2220_s0 = sld [smem:[#allocation18_spill]] }
  0x24   : > { %s598_s29 = scalar_lea.vmem %s2215_s1, %s1573_s26  ;;  %s1622_s30 = sshll.u32 %s1969_s25, 4 }
  0x25   : > { %s603_s17 = scalar_lea.vmem %s2216_s2, %s1622_s30  ;;  %s1701_s2 = smul.u32 48, %s1969_s25 }
  0x26   : > { %s1985_s19 = scalar_lea.vmem %s2217_s4, %s1622_s30  ;;  %s1702_s20 = smul.u32 96, %s1969_s25 }
  0x27   : > { %s2012_s27 = scalar_lea.vmem %s2189_s8, %s1701_s2  ;;  %s639_s13 = scalar_lea.vmem %s2193_s12, %s1969_s25 }
  0x28   : > { %s2021_s14 = scalar_lea.vmem %s2191_s10, %s1702_s20  ;;  %s2221_s4 = sld [smem:[#allocation19_spill]] }
  0x29   : > { %s642_s9 = scalar_lea.vmem %s2220_s0, %s1969_s25  ;;  %s2222_s2 = sld [smem:[#allocation6_spill]] }
  0x2e   : > { %s2030_s11 = scalar_lea.vmem %s2221_s4, %s1573_s26 }
  0x2f   : > { %p1581_p12 = scmp.ne.s32.totalorder %s2222_s2, 0 }
  0x31   : > { %651 = sbr.rel (%p1581_p12) target bundleno = 58 (0x3a), region = 76 }
  0x36   : > { %v652_v0 = vld [vmem:[%s598_s29] sm:$0xf]  ;;  %vm654_vm0 = vcmask 261120  }
  0x37   : > { %v653_v1 = vunpack.c.l.bf16 %v652_v0 }
  0x39   : > { %655 = vst.msk [vmem:[#allocation2] sm:$0xff] %vm654_vm0, %v653_v1 }
  0x3a PF: > { %v1754_v2 = vld [vmem:[%s603_s17 + $0x8] sm:$0xff]   ;;  %v1843_v3 = vmov 0.0   ;;  %v1755_v4 = vld [vmem:[%s603_s17] sm:$0xff]   ;;  %vm1844_vm1 = vmmov 0   ;;  %vm681_vm2 = vcmask 261120   ;;  %s2223_s26 = scalar_lea.vmem %s2184_s3, %s1969_s25  ;;  %s1845_s29 = smov 112   ;;  %v726_v19 = vlaneseq }
  0x3b   : > { %1645 = vmatprep.subr.bf16.mxu0 %v1843_v3  ;;  %1665 = vmatprep.subr.bf16.mxu1 %v1843_v3  ;;  %v1582_v7 = vld [vmem:[%s2223_s26] ss:$0 sm:$0xff]  ;;  %s1846_s17 = smov 96   ;;  %s1847_s16 = smov 80   ;;  %vm735_vm3 = vcmask 130048   ;;  %vm782_vm5 = vcmask 64512  }
  0x3c   : > { %1646 = vmatpush3.bf16.msra.mxu0 %v1754_v2  ;;  %1649 = vmatprep.mubr.msk.bf16.mxu0 %vm1844_vm1, %v1843_v3  ;;  %s2224_s20 = sld [smem:[#allocation7_spill]]  ;;  %v727_v20 = vand.u32 127, %v726_v19  ;;  %s1848_s24 = smov 48   ;;  %vm800_vm6 = vcmask 1043456   ;;  %v1756_v57 = vld [vmem:[%s1985_s19 + $0x8] sm:$0xff]   ;;  %v1757_v58 = vld [vmem:[%s1985_s19] sm:$0xff]  }
  0x3d   : > { %1647 = vmatprep.subr.bf16.mxu0 %v1843_v3  ;;  %1667 = vmatprep.mubr.msk.bf16.mxu1 %vm1844_vm1, %v1843_v3  ;;  %s1849_s1 = smov 64   ;;  %s1850_s28 = smov 16   ;;  %vm1074_vm7 = vcmask 1040384   ;;  %vm1086_vm8 = vcmask 1045504   ;;  %vm1079_vm9 = vcmask 1046528   ;;  %vm1094_vm10 = vcmask 523264  }
  0x3e   : > { %s2225_s22 = scalar_lea.vmem %s2186_s5, %s1969_s25  ;;  %s2226_s30 = scalar_lea.vmem %s2187_s6, %s1969_s25  ;;  %vm1139_vm11 = vcmask 785408   ;;  %vm1382_vm12 = vcmask 257024  }
  0x3f   : > { %s2227_s0 = scalar_lea.vmem %s2188_s7, %s1969_s25 }
  0x40   : > { %v2037_v5 = vld [vmem:[#allocation2] sm:$0xff]  ;;  %1648 = vmatpush3.bf16.msra.mxu0 %v1755_v4 }
  0x41   : > { %v657_v6 = vpack.c.bf16 %v2037_v5, %v2037_v5  ;;  %1653 = vmatprep.subr.bf16.mxu0 %v1843_v3 }
  0x42   : > { %s728_s18 = sld [smem:[#allocation4 + %s2224_s20]] }
  0x43   : > { %1650 = vmatmul.mubr.msk.bf16.vlgmr.msra.gmra.mxu0 %vm681_vm2, %v657_v6 }
  0x44   : > { %1655 = vmatprep.mubr.msk.bf16.mxu0 %vm1844_vm1, %v1843_v3 }
  0x48   : > { %v729_v21 = vstv %s728_s18  ;;  %s2230_s18 = sld [smem:[#allocation17_spill]] }
  0x49   : > { %vm730_vm4 = vcmp.gt.s32.totalorder %v727_v20, %v729_v21 }
  0x4a   : > { %v731_v22 = vsel %vm730_vm4, -inf, %v1843_v3 }
 0x103   : > { %v719_v8 = vpop.f32.mrf.mxu0 }
 0x104   : > { %v720_v9 = vadd.f32 %v1582_v7, %v719_v8 }
 0x105   : > { %v1651_v10 = vpop.f32.mrf.mxu0 }
 0x106   : > { %v725_v11 = vpack.c.bf16 %v720_v9, %v720_v9  ;;  %v1590_v9 = vld [vmem:[%s2225_s22] ss:$0 sm:$0xff] }
 0x107   : > { %v722_v12 = vpop.f32.mrf.mxu0 }
 0x108   : > { %845 = vrot.lane.b32.xlu1 %v725_v11, %s1845_s29  ;;  %733 = vrot.lane.b32.xlu0 %v725_v11, %s1846_s17  ;;  %s2228_s17 = sld [smem:[#allocation16_spill]] }
 0x109   : > { %v1652_v13 = vpop.f32.mrf.mxu0 }
 0x10c   : > { %847 = vrot.lane.b32.xlu0 %v725_v11, %s1847_s16 }
 0x10e   : > { %s2229_s16 = scalar_lea.vmem %s2228_s17, %s1969_s25 }
 0x17a   : > { %v734_v14 = vpop.permute.xlu0 %733  ;;  %v846_v18 = vpop.permute.xlu1 %845 }
 0x17b   : > { %v740_v15 = vsel %vm735_vm3, %v734_v14, 0 }
 0x17c   : > { %1654 = vmatpush3.bf16.xpose.msra.mxu0 %v740_v15 }
 0x17d   : > { %1659 = vmatprep.subr.bf16.mxu0 %v1843_v3 }
 0x17e   : > { %v848_v16 = vpop.permute.xlu0 %847 }
 0x17f   : > { %v853_v17 = vsel %vm735_vm3, %v848_v16, 0 }
 0x180   : > { %1666 = vmatpush3.bf16.xpose.msra.mxu1 %v853_v17 }
 0x181   : > { %1677 = vmatprep.subr.bf16.mxu1 %v1843_v3 }
 0x183   : > { %1656 = vmatmul.mubr.msk.bf16.vlgmr.msra.gmra.mxu0 %vm735_vm3, %v725_v11 }
 0x184   : > { %1661 = vmatprep.mubr.msk.bf16.mxu0 %vm1844_vm1, %v1843_v3 }
 0x187   : > { %1668 = vmatmul.mubr.msk.bf16.vlgmr.msra.gmra.mxu1 %vm735_vm3, %v846_v18 }
 0x188   : > { %1681 = vmatprep.mubr.msk.bf16.mxu1 %vm1844_vm1, %v1843_v3  ;;  %1678 = vmatpush3.bf16.msra.mxu1 %v1756_v57  ;;  %v1771_v57 = vld [vmem:[%s2021_s14] sm:$0xff]  }
 0x189   : > { %1679 = vmatprep.subr.bf16.mxu1 %v1843_v3 }
 0x18c   : > { %1680 = vmatpush3.bf16.msra.mxu1 %v1757_v58  ;;  %v1772_v58 = vld [vmem:[%s2021_s14 + $0x58] sm:$0xff]  }
 0x243   : > { %v776_v23 = vpop.f32.mrf.mxu0 }
 0x244   : > { %v777_v24 = vadd.f32 %v776_v23, %v731_v22  ;;  %v1759_v23 = vld [vmem:[%s2012_s27 + $0x20] sm:$0xff]  }
 0x245   : > { %v1657_v25 = vpop.f32.mrf.mxu0 }
 0x246   : > { %v783_v26 = vsel %vm782_vm5, %v777_v24, -inf  ;;  %v1762_v25 = vld [vmem:[%s2012_s27 + $0x8] sm:$0xff]  }
 0x247   : > { %v889_v27 = vpop.f32.mrf.mxu1  ;;  %784 = vmax.xlane.f32.xlu1 %v783_v26  ;;  %v779_v28 = vpop.f32.mrf.mxu0 }
 0x248   : > { %v890_v29 = vadd.f32 %v889_v27, %v731_v22  ;;  %v1758_v22 = vld [vmem:[%s2012_s27 + $0x28] sm:$0xff]  }
 0x249   : > { %v1658_v30 = vpop.f32.mrf.mxu0  ;;  %v1669_v31 = vpop.f32.mrf.mxu1 }
 0x24a   : > { %v895_v32 = vsel %vm782_vm5, %v890_v29, -inf  ;;  %v1594_v30 = vld [vmem:[%s2226_s30] ss:$0 sm:$0xff] }
 0x24b   : > { %896 = vmax.xlane.f32.xlu0 %v895_v32  ;;  %v892_v33 = vpop.f32.mrf.mxu1  ;;  %v1763_v31 = vld [vmem:[%s2012_s27] sm:$0xff]  }
 0x24c   : > { %v1595_v33 = vld [vmem:[%s2227_s0] ss:$0 sm:$0xff] }
 0x24d   : > { %v1670_v34 = vpop.f32.mrf.mxu1 }
 0x2d0   : > { %v785_v35 = vpop.xlane.xlu1 %784 }
 0x2d1   : > { %v786_v36 = vsub.f32 %v777_v24, %v785_v35  ;;  %v1761_v24 = vld [vmem:[%s2012_s27 + $0x10] sm:$0xff]  }
 0x2d3   : > { %v787_v37 = vmul.f32 1.442695, %v786_v36 }
 0x2d4   : > { %v897_v38 = vpop.xlane.xlu0 %896 }
 0x2d5   : > { %1776 = vpow2.f32 %v787_v37  ;;  %v898_v39 = vsub.f32 %v890_v29, %v897_v38 }
 0x2d7   : > { %v899_v40 = vmul.f32 1.442695, %v898_v39 }
 0x2d9   : > { %1778 = vpow2.f32 %v899_v40 }
 0x2e2   : > { %v1777_v41 = vpop.eup %1776 }
 0x2e3   : > { %v789_v42 = vsel %vm782_vm5, %v1777_v41, 0.0 }
 0x2e4   : > { %790 = vadd.xlane.f32.xlu0 %v789_v42 }
 0x2e6   : > { %v1779_v43 = vpop.eup %1778 }
 0x2e7   : > { %v901_v44 = vsel %vm782_vm5, %v1779_v43, 0.0 }
 0x2e8   : > { %902 = vadd.xlane.f32.xlu1 %v901_v44 }
 0x2f9   : > { %907 = vrot.lane.b32.xlu1 %v725_v11, %s1848_s24  ;;  %s2231_s24 = scalar_lea.vmem %s2230_s18, %s1969_s25 }
 0x2fa   : > { %795 = vrot.lane.b32.xlu0 %v725_v11, %s1849_s1 }
 0x36d   : > { %v791_v45 = vpop.xlane.xlu0 %790 }
 0x36e   : > { %1780 = vrcp.f32 %v791_v45 }
 0x371   : > { %v796_v46 = vpop.permute.xlu0 %795  ;;  %v903_v47 = vpop.xlane.xlu1 %902 }
 0x372   : > { %v802_v48 = vsel %vm800_vm6, %v796_v46, 0  ;;  %1782 = vrcp.f32 %v903_v47 }
 0x373   : > { %1660 = vmatpush3.bf16.msra.mxu0 %v802_v48 }
 0x374   : > { %1671 = vmatprep.subr.bf16.mxu0 %v1843_v3 }
 0x375   : > { %v908_v51 = vpop.permute.xlu1 %907 }
 0x376   : > { %v913_v54 = vsel %vm800_vm6, %v908_v51, 0  ;;  %v1765_v51 = vld [vmem:[%s2021_s14 + $0x30] sm:$0xff]  }
 0x37b   : > { %v1781_v49 = vpop.eup %1780 }
 0x37c   : > { %v793_v50 = vmul.f32 %v1781_v49, %v1777_v41  ;;  %v1764_v49 = vld [vmem:[%s2021_s14 + $0x38] sm:$0xff]  }
 0x37e   : > { %v794_v52 = vpack.c.bf16 %v793_v50, %v793_v50  ;;  %v1852_v50 = vmov 0  }
 0x37f   : > { %v1783_v53 = vpop.eup %1782  ;;  %1310 = vmatprep.subr.bf16.mxu1 %v1852_v50 }
 0x380   : > { %1662 = vmatmul.mubr.msk.bf16.vlgmr.msra.gmra.mxu0 %vm782_vm5, %v794_v52  ;;  %v905_v55 = vmul.f32 %v1783_v53, %v1779_v43  ;;  %v1766_v52 = vld [vmem:[%s2021_s14 + $0x28] sm:$0xff]   ;;  %v1767_v53 = vld [vmem:[%s2021_s14 + $0x20] sm:$0xff]  }
 0x381   : > { %1672 = vmatpush3.bf16.msra.mxu0 %v913_v54  ;;  %1673 = vmatprep.mubr.msk.bf16.mxu0 %vm1844_vm1, %v1843_v3  ;;  %v1768_v54 = vld [vmem:[%s2021_s14 + $0x18] sm:$0xff]  }
 0x382   : > { %1685 = vmatprep.subr.bf16.mxu0 %v1843_v3  ;;  %v906_v56 = vpack.c.bf16 %v905_v55, %v905_v55  ;;  %v1769_v55 = vld [vmem:[%s2021_s14 + $0x10] sm:$0xff]  }
 0x388   : > { %1674 = vmatmul.mubr.msk.bf16.vlgmr.msra.gmra.mxu0 %vm782_vm5, %v906_v56  ;;  %v1770_v56 = vld [vmem:[%s2021_s14 + $0x8] sm:$0xff]  }
 0x389   : > { %1697 = vmatprep.mubr.msk.bf16.mxu0 %vm1844_vm1, %v1843_v3  ;;  %1686 = vmatpush3.bf16.msra.mxu0 %v1758_v22 }
 0x38a   : > { %1687 = vmatprep.subr.bf16.mxu0 %v1843_v3 }
 0x38d   : > { %1688 = vmatpush3.bf16.msra.mxu0 %v1759_v23 }
 0x38e   : > { %1689 = vmatprep.subr.bf16.mxu0 %v1843_v3 }
 0x440   : > { %v838_v59 = vpop.f32.mrf.mxu0 }
 0x441   : > { %v844_v6 = vpack.c.bf16 %v838_v59, %v838_v59  ;;  %v1773_v59 = vld [vmem:[%s2021_s14 + $0x50] sm:$0xff]  }
 0x442   : > { %v1663_v60 = vpop.f32.mrf.mxu0 }
 0x443   : > { %v1774_v60 = vld [vmem:[%s2021_s14 + $0x48] sm:$0xff]  }
 0x444   : > { %v841_v61 = vpop.f32.mrf.mxu0 }
 0x445   : > { %v1775_v61 = vld [vmem:[%s2021_s14 + $0x40] sm:$0xff]  }
 0x446   : > { %v1664_v62 = vpop.f32.mrf.mxu0 }
 0x447   : > { %v1596_v62 = vld [vmem:[%s2229_s16] ss:$0 sm:$0xff] }
 0x448   : > { %v949_v63 = vpop.f32.mrf.mxu0 }
 0x449   : > { %v955_v0 = vpack.c.bf16 %v949_v63, %v949_v63 }
 0x44a   : > { %v1675_v1 = vpop.f32.mrf.mxu0 }
 0x44b   : > { %957 = vrot.lane.b32.xlu1 %v955_v0, %s1850_s28 }
 0x44c   : > { %v952_v2 = vpop.f32.mrf.mxu0 }
 0x44e   : > { %v1676_v4 = vpop.f32.mrf.mxu0 }
 0x4bd   : > { %v958_v7 = vpop.permute.xlu1 %957 }
 0x4be   : > { %v961_v8 = vsel %vm735_vm3, %v844_v6, %v958_v7 }
 0x4bf   : > { %1682 = vmatmul.mubr.msk.bf16.vlgmr.msra.gmra.mxu1 %vm681_vm2, %v961_v8 }
 0x4c0   : > { %1311 = vmatpush1.bf16.msra.mxu1 %v1764_v49 }
 0x4c1   : > { %1312 = vmatprep.subr.bf16.mxu1 %v1852_v50 }
 0x4c4   : > { %1313 = vmatpush1.bf16.msra.mxu1 %v1765_v51 }
 0x4c5   : > { %1314 = vmatprep.subr.bf16.mxu1 %v1852_v50 }
 0x4c8   : > { %1315 = vmatpush1.bf16.msra.mxu1 %v1766_v52 }
 0x4c9   : > { %1316 = vmatprep.subr.bf16.mxu1 %v1852_v50 }
 0x4cc   : > { %1317 = vmatpush1.bf16.msra.mxu1 %v1767_v53 }
 0x4cd   : > { %1318 = vmatprep.subr.bf16.mxu1 %v1852_v50 }
 0x4d0   : > { %1319 = vmatpush1.bf16.msra.mxu1 %v1768_v54 }
 0x4d1   : > { %1320 = vmatprep.subr.bf16.mxu1 %v1852_v50 }
 0x4d4   : > { %1321 = vmatpush1.bf16.msra.mxu1 %v1769_v55 }
 0x4d5   : > { %1322 = vmatprep.subr.bf16.mxu1 %v1852_v50 }
 0x4d8   : > { %1323 = vmatpush1.bf16.msra.mxu1 %v1770_v56 }
 0x4d9   : > { %1324 = vmatprep.subr.bf16.mxu1 %v1852_v50 }
 0x4dc   : > { %1325 = vmatpush1.bf16.msra.mxu1 %v1771_v57 }
 0x4dd   : > { %1334 = vmatprep.subr.bf16.mxu1 %v1852_v50 }
 0x4e0   : > { %1335 = vmatpush2.bf16.msra.mxu1 %v1772_v58 }
 0x4e1   : > { %1336 = vmatprep.subr.bf16.mxu1 %v1852_v50 }
 0x4e4   : > { %1337 = vmatpush2.bf16.msra.mxu1 %v1773_v59 }
 0x4e5   : > { %1338 = vmatprep.subr.bf16.mxu1 %v1852_v50 }
 0x4e8   : > { %1339 = vmatpush2.bf16.msra.mxu1 %v1774_v60 }
 0x4e9   : > { %1340 = vmatprep.subr.bf16.mxu1 %v1852_v50 }
 0x4ec   : > { %1341 = vmatpush2.bf16.msra.mxu1 %v1775_v61 }
 0x57f   : > { %v1021_v10 = vpop.f32.mrf.mxu1 }
 0x580   : > { %v1022_v11 = vadd.f32 %v1590_v9, %v1021_v10 }
 0x581   : > { %v1683_v12 = vpop.f32.mrf.mxu1 }
 0x582   : > { %v1027_v13 = vadd.f32 %v1022_v11, %v2037_v5  ;;  %v1760_v5 = vld [vmem:[%s2012_s27 + $0x18] sm:$0xff]   ;;  %s1851_s27 = smov 32  }
 0x583   : > { %v1024_v14 = vpop.f32.mrf.mxu1  ;;  %1690 = vmatpush3.bf16.msra.mxu0 %v1760_v5 }
 0x584   : > { %v1030_v15 = vsel %vm681_vm2, %v1027_v13, 0.0  ;;  %1691 = vmatprep.subr.bf16.mxu0 %v1843_v3 }
 0x585   : > { %1031 = vadd.xlane.f32.xlu0 %v1030_v15  ;;  %v1684_v16 = vpop.f32.mrf.mxu1 }
 0x587   : > { %1692 = vmatpush3.bf16.msra.mxu0 %v1761_v24 }
 0x588   : > { %1693 = vmatprep.subr.bf16.mxu0 %v1843_v3 }
 0x58b   : > { %1694 = vmatpush3.bf16.msra.mxu0 %v1762_v25 }
 0x58c   : > { %1695 = vmatprep.subr.bf16.mxu0 %v1843_v3 }
 0x58f   : > { %1696 = vmatpush3.bf16.msra.mxu0 %v1763_v31 }
 0x60e   : > { %v1032_v17 = vpop.xlane.xlu0 %1031 }
 0x60f   : > { %v1034_v18 = vmul.f32 0.03125, %v1032_v17 }
 0x611   : > { %v1035_v19 = vsub.f32 %v1027_v13, %v1034_v18 }
 0x613   : > { %v1036_v20 = vmul.f32 %v1035_v19, %v1035_v19 }
 0x615   : > { %v1037_v21 = vsel %vm681_vm2, %v1036_v20, 0.0  ;;  %v1604_v20 = vld [vmem:[%s2231_s24] ss:$0 sm:$0xff] }
 0x616   : > { %1038 = vadd.xlane.f32.xlu1 %v1037_v21 }
 0x69f   : > { %v1039_v26 = vpop.xlane.xlu1 %1038 }
 0x6a0   : > { %v1040_v27 = vmul.f32 0.03125, %v1039_v26 }
 0x6a2   : > { %v1041_v28 = vadd.f32 1e-05, %v1040_v27 }
 0x6a4   : > { %1784 = vrsqrt.f32 %v1041_v28 }
 0x6b1   : > { %v1785_v29 = vpop.eup %1784 }
 0x6b2   : > { %v1043_v32 = vmul.f32 %v1785_v29, %v1035_v19 }
 0x6b4   : > { %v1050_v34 = vmul.f32 %v1594_v30, %v1043_v32 }
 0x6b6   : > { %v2112_v3 = vadd.f32 %v1595_v33, %v1050_v34 }
 0x6b8   : > { %v1072_v35 = vrot.slane %v2112_v3, 7 }
 0x6ba   : > { %v1075_v36 = vsel %vm1074_vm7, 0.0, %v1072_v35  ;;  %v1076_v37 = vsel %vm1074_vm7, %v1072_v35, 0.0  ;;  %v1618_v35 = vld [vmem:[%s639_s13] ss:$0 sm:$0xff] }
 0x6bb   : > { %v1087_v38 = vrot.slane %v1075_v36, 2  ;;  %v1088_v39 = vrot.slane %v1076_v37, 2  ;;  %v1080_v40 = vrot.slane %v1075_v36, 1  ;;  %v1081_v41 = vrot.slane %v1076_v37, 1  ;;  %v1619_v37 = vld [vmem:[%s642_s9] ss:$0 sm:$0xff] }
 0x6bd   : > { %v1089_v42 = vsel %vm1086_vm8, %v1087_v38, %v1088_v39  ;;  %v1082_v43 = vsel %vm1079_vm9, %v1080_v40, %v1081_v41 }
 0x6be   : > { %1090 = vrot.lane.b32.xlu1 %v1089_v42, %s1849_s1  ;;  %1083 = vrot.lane.b32.xlu0 %v1082_v43, %s1851_s27 }
 0x730   : > { %v1091_v44 = vpop.permute.xlu1 %1090  ;;  %v1084_v45 = vpop.permute.xlu0 %1083 }
 0x731   : > { %v1093_v46 = vsel %vm681_vm2, %v1075_v36, %v1084_v45 }
 0x732   : > { %v1095_v47 = vsel %vm1094_vm10, %v1093_v46, %v1091_v44 }
 0x733   : > { %v1096_v48 = vpack.c.bf16 %v1095_v47, %v1095_v47 }
 0x735   : > { %1698 = vmatmul.mubr.msk.bf16.vlgmr.msra.gmra.mxu0 %vm1139_vm11, %v1096_v48 }
 0x7f5   : > { %v1177_v63 = vpop.f32.mrf.mxu0 }
 0x7f6   : > { %v1178_v0 = vadd.f32 %v1596_v62, %v1177_v63 }
 0x7f7   : > { %v1699_v1 = vpop.f32.mrf.mxu0 }
 0x7f8   : > { %v1183_v2 = vmax.f32 %v1178_v0, 0.0 }
 0x7f9   : > { %v1180_v4 = vpop.f32.mrf.mxu0 }
 0x7fa   : > { %v1210_v6 = vrot.slane %v1183_v2, 7 }
 0x7fb   : > { %v1700_v7 = vpop.f32.mrf.mxu0 }
 0x7fc   : > { %v1212_v8 = vsel %vm1074_vm7, 0.0, %v1210_v6  ;;  %v1213_v9 = vsel %vm1074_vm7, %v1210_v6, 0.0 }
 0x7fd   : > { %v1216_v10 = vrot.slane %v1212_v8, 1  ;;  %v1217_v11 = vrot.slane %v1213_v9, 1  ;;  %v1222_v12 = vrot.slane %v1212_v8, 2  ;;  %v1223_v13 = vrot.slane %v1213_v9, 2 }
 0x7ff   : > { %v1218_v14 = vsel %vm1079_vm9, %v1216_v10, %v1217_v11  ;;  %v1224_v15 = vsel %vm1086_vm8, %v1222_v12, %v1223_v13 }
 0x800   : > { %1219 = vrot.lane.b32.xlu0 %v1218_v14, %s1849_s1  ;;  %v1228_v16 = vpack.c.bf16 %v1224_v15, %v1224_v15 }
 0x802   : > { %1617 = vmatprep.mubr.msk.bf16.mxu1 %vm1094_vm10, %v1228_v16 }
 0x872   : > { %v1220_v17 = vpop.permute.xlu0 %1219 }
 0x873   : > { %v1226_v18 = vsel %vm1094_vm10, %v1212_v8, %v1220_v17 }
 0x874   : > { %v1227_v19 = vpack.c.bf16 %v1226_v18, %v1226_v18 }
 0x876   : > { %1343 = vmatmul.mubr.bf16.vlgmr.msra.gmra.mxu1 %v1227_v19 }
 0x936   : > { %v1344_v21 = vpop.f32.mrf.mxu1 }
 0x937   : > { %v1345_v22 = vadd.f32 %v1604_v20, %v1344_v21 }
 0x938   : > { %v1346_v23 = vpop.f32.mrf.mxu1 }
 0x939   : > { %v1350_v5 = vadd.f32 %v1345_v22, %v2112_v3 }
 0x93a   : > { %v1347_v24 = vpop.f32.mrf.mxu1 }
 0x93b   : > { %v1353_v25 = vsel %vm681_vm2, %v1350_v5, 0.0 }
 0x93c   : > { %v1348_v26 = vpop.f32.mrf.mxu1  ;;  %1354 = vadd.xlane.f32.xlu1 %v1353_v25 }
 0x9c5   : > { %v1355_v27 = vpop.xlane.xlu1 %1354 }
 0x9c6   : > { %v1356_v28 = vmul.f32 0.03125, %v1355_v27 }
 0x9c8   : > { %v1357_v29 = vsub.f32 %v1350_v5, %v1356_v28 }
 0x9ca   : > { %v1358_v30 = vmul.f32 %v1357_v29, %v1357_v29 }
 0x9cc   : > { %v1359_v31 = vsel %vm681_vm2, %v1358_v30, 0.0 }
 0x9cd   : > { %1360 = vadd.xlane.f32.xlu0 %v1359_v31 }
 0xa56   : > { %v1361_v32 = vpop.xlane.xlu0 %1360 }
 0xa57   : > { %v1362_v33 = vmul.f32 0.03125, %v1361_v32 }
 0xa59   : > { %v1363_v34 = vadd.f32 1e-05, %v1362_v33 }
 0xa5b   : > { %1786 = vrsqrt.f32 %v1363_v34 }
 0xa68   : > { %v1787_v3 = vpop.eup %1786 }
 0xa69   : > { %v1365_v36 = vmul.f32 %v1787_v3, %v1357_v29 }
 0xa6b   : > { %v1372_v38 = vmul.f32 %v1618_v35, %v1365_v36 }
 0xa6d   : > { %v1379_v39 = vadd.f32 %v1619_v37, %v1372_v38 }
 0xa6f   : > { %1380 = vst.msk [vmem:[#allocation2] sm:$0xff] %vm681_vm2, %v1379_v39  ;;  %v1381_v40 = vpack.c.bf16 %v1379_v39, %v1379_v39 }
 0xa71   : > { %1383 = vst.msk [vmem:[%s2030_s11] sm:$0xf] %vm1382_vm12, %v1381_v40 }
 0xa72 PF: > { %s2233_s23 = sld [smem:[#allocation10_spill]] }
 0xa73   : > { %s2234_s18 = sld [smem:[#allocation8_spill]] }
 0xa74   : > { %s2235_s19 = sld [smem:[#allocation9_spill]] }
 0xa75   : > { %s2236_s20 = sld [smem:[#allocation11_spill]] }
 0xa76   : > { %s2237_s0 = sld [smem:[#allocation12_spill]] }
 0xa78   : > { %s30_s21 = sadd.s32 1, %s2233_s23  }
 0xa79   : > { %p27_p13 = scmp.ge.s32.totalorder %s30_s21, 6  }
 0xa7b   :  { %29 = sbr.rel (!%p27_p13) target bundleno = 20 (0x14), region = 142 }

// kernel: fastspeech_forward.8
= control target key start
LH: loop header
LB: loop body
LE: loop exit
PB: predicated region body
PF: predicated region fallthrough
CT: control target
= control target key end

     0   :  { %s2368_s0 = inlined_call_operand.vmem [shape: s32[2], index: 0, kind: input, shape index: {}]   ;;  %s2369_s1 = inlined_call_operand.vmem [shape: bf16[2,13,32], index: 1, kind: input, shape index: {}]   ;;  %s2370_s2 = inlined_call_operand.vmem [shape: bf16[2,32,96], index: 2, kind: input, shape index: {}]   ;;  %s2371_s3 = inlined_call_operand.vmem [shape: f32[2,1,96], index: 3, kind: input, shape index: {}]   ;;  %s2372_s4 = inlined_call_operand.vmem [shape: bf16[2,32,32], index: 4, kind: input, shape index: {}]   ;;  %s2373_s5 = inlined_call_operand.vmem [shape: f32[2,1,32], index: 5, kind: input, shape index: {}]   ;;  %s2374_s6 = inlined_call_operand.vmem [shape: f32[2,1,32], index: 6, kind: input, shape index: {}]   ;;  %s2375_s7 = inlined_call_operand.vmem [shape: f32[2,1,32], index: 7, kind: input, shape index: {}]   ;;  %s2376_s8 = inlined_call_operand.vmem [shape: bf16[2,96,64], index: 8, kind: input, shape index: {}]   ;;  %s2377_s9 = inlined_call_operand.vmem [shape: f32[2,1,64], index: 9, kind: input, shape index: {}]   ;;  %s2378_s10 = inlined_call_operand.vmem [shape: bf16[2,192,32], index: 10, kind: input, shape index: {}]   ;;  %s2379_s11 = inlined_call_operand.vmem [shape: f32[2,1,32], index: 11, kind: input, shape index: {}]   ;;  %s2380_s12 = inlined_call_operand.vmem [shape: f32[2,1,32], index: 12, kind: input, shape index: {}]   ;;  %s2381_s13 = inlined_call_operand.vmem [shape: f32[2,1,32], index: 13, kind: input, shape index: {}]   ;;  %s2382_s14 = inlined_call_operand.vmem [shape: bf16[2,13,32], index: 14, kind: output, shape index: {}]  }
   0x1   :  { %2389 = sst [smem:[#allocation14_spill]] %s2369_s1  ;;  %s19_s15 = sshll.u32 %s2368_s0, 4  ;;  %s20_s15 = int_to_ptr.vmem [resolvable:$true] %s19_s15 }
   0x2   :  { %2390 = sst [smem:[#allocation15_spill]] %s2370_s2  ;;  %s1937_s16 = scalar_lea.vmem %s20_s15, 16 }
   0x3   :  { %2391 = sst [smem:[#allocation16_spill]] %s2372_s4  ;;  %p1938_p0 = scmp.ne.s32.totalorder %s20_s15, %s1937_s16 }
   0x4   :  { %2392 = sst [smem:[#allocation17_spill]] %s2379_s11  ;;  %p1942_p1 = scmp.lt.s32.totalorder %s20_s15, %s20_s15 }
   0x5   :  { %2393 = sst [smem:[#allocation18_spill]] %s2382_s14  ;;  %p1943_p2 = scmp.lt.s32.totalorder %s1937_s16, %s1937_s16 }
   0x7   :  { %p1944_p3 = por %p1943_p2, %p1942_p1 }
   0x9   :  { %p1945_p4 = pnand %p1944_p3, %p1938_p0 }
   0xb   :  { %1948 = shalt.err (!%p1945_p4)  }
   0xc   :  { %s1991_s17 = smov [#allocation4]  }
   0xd   :  { %22 = dma.vmem_to_smem %s20_s15, 16, %s1991_s17, [#allocation3] }
   0xe   :  { %1969 = dma.done.wait [#allocation3], 16 }
   0xf   :  { %1970 = vsyncadd [#allocation3], 4294967280 }
  0x10   :  { %24 = sfence }
  0x11   :  { %s2081_s18 = smov 0   ;;  %s2083_s19 = smov 0  }
  0x12   :  { %s2085_s20 = smov 0   ;;  %s2087_s0 = smov 0  }
  0x13   :  { %s2089_s21 = smov 0  }
  0x14 LB: > { %2394 = sst [smem:[#allocation6_spill]] %s1973_s18  ;;  %s39_s22 = sadd.s32 1, %s1981_s20  ;;  %s1989_s21 = sphi %s2089_s21, %s30_s21   ;;  %s1985_s0 = sphi %s2087_s0, %s2421_s0   ;;  %s1981_s20 = sphi %s2085_s20, %s2420_s20   ;;  %s1977_s19 = sphi %s2083_s19, %s2419_s19   ;;  %s1973_s18 = sphi %s2081_s18, %s2418_s18  }
  0x15   : > { %2395 = sst [smem:[#allocation7_spill]] %s1977_s19  ;;  %s42_s23 = sadd.s32 1, %s1985_s0 }
  0x16   : > { %2396 = sst [smem:[#allocation8_spill]] %s1981_s20  ;;  %p40_p5 = scmp.ge.s32.totalorder %s39_s22, 2 }
  0x17   : > { %2397 = sst [smem:[#allocation9_spill]] %s1985_s0  ;;  %p1685_p6 = scmp.ge.s32.totalorder %s1989_s21, 1 }
  0x18   : > { %2398 = sst [smem:[#allocation10_spill]] %s1989_s21  ;;  %p510_p7 = scmp.lt.s32.totalorder %s1989_s21, 5 }
  0x19   : > { %s2423_s22 = smov (%p40_p5, %s39_s22), 0  ;;  %s2425_s23 = smov (!%p40_p5, %s42_s23), %s1985_s0 }
  0x1a   : > { %2399 = sst [smem:[#allocation11_spill]] %s2423_s22  ;;  %p511_p8 = pnand %p1685_p6, %p510_p7 }
  0x1b   : > { %p44_p9 = scmp.ge.s32.totalorder %s2425_s23, 2 }
  0x1c   : > { %514 = sbr.rel (%p511_p8) target bundleno = 2721 (0xaa1), region = 72 }
  0x1d   : > { %s2427_s23 = smov (%p44_p9, %s2425_s23), 0 }
  0x1e   : > { %2400 = sst [smem:[#allocation12_spill]] %s2427_s23 }
  0x21   : > { %p598_p10 = scmp.lt.s32.totalorder %s1977_s19, 1  ;;  %p603_p11 = scmp.lt.s32.totalorder %s1973_s18, 1 }
  0x22   : > { %s2401_s1 = sld [smem:[#allocation14_spill]] }
  0x23   : > { %s599_s24 = scalar_select %p598_p10, %s1977_s19, 1 }
  0x24   : > { %s2119_s25 = scalar_select %p603_p11, %s1973_s18, 1 }
  0x25   : > { %s1739_s26 = sshll.u32 %s599_s24, 3  ;;  %s2402_s2 = sld [smem:[#allocation15_spill]] }
  0x26   : > { %s1740_s30 = sshll.u32 %s2119_s25, 4  ;;  %s2404_s4 = sld [smem:[#allocation16_spill]] }
  0x27   : > { %s1823_s20 = smul.u32 96, %s2119_s25  ;;  %s643_s15 = scalar_lea.vmem %s2380_s12, %s2119_s25 }
  0x28   : > { %s602_s29 = scalar_lea.vmem %s2401_s1, %s1739_s26  ;;  %s646_s0 = scalar_lea.vmem %s2381_s13, %s2119_s25 }
  0x29   : > { %s2173_s14 = scalar_lea.vmem %s2378_s10, %s1823_s20 }
  0x2b   : > { %s2128_s17 = scalar_lea.vmem %s2402_s2, %s1740_s30 }
  0x2c   : > { %2403 = sst [smem:[#allocation13_spill]] %s2128_s17  ;;  %s2137_s19 = scalar_lea.vmem %s2404_s4, %s1740_s30 }
  0x2d   : > { %s1822_s17 = smul.u32 48, %s2119_s25  ;;  %s2406_s4 = sld [smem:[#allocation18_spill]] }
  0x2f   : > { %s2164_s27 = scalar_lea.vmem %s2376_s8, %s1822_s17  ;;  %s2407_s17 = sld [smem:[#allocation6_spill]] }
  0x33   : > { %s2182_s11 = scalar_lea.vmem %s2406_s4, %s1739_s26 }
  0x35   : > { %p1696_p12 = scmp.ne.s32.totalorder %s2407_s17, 0 }
  0x37   : > { %656 = sbr.rel (%p1696_p12) target bundleno = 65 (0x41), region = 76 }
  0x3c   : > { %v657_v0 = vld [vmem:[%s602_s29] sm:$0xf]  ;;  %vm661_vm0 = vcmask 261120   ;;  %v658_v1 = vld [vmem:[%s602_s29 + $0x4] sm:$0x7]  ;;  %vm663_vm1 = vcmask 258048  }
  0x3d   : > { %v659_v2 = vunpack.c.l.bf16 %v657_v0  ;;  %v660_v3 = vunpack.c.l.bf16 %v658_v1 }
  0x3f   : > { %662 = vst.msk [vmem:[#allocation2] sm:$0xff] %vm661_vm0, %v659_v2 }
  0x40   : > { %664 = vst.msk [vmem:[#allocation2 + $0x8] sm:$0x1f] %vm663_vm1, %v660_v3 }
  0x41 PF: > { %s2408_s2 = sld [smem:[#allocation13_spill]]  ;;  %v1992_v5 = vmov 0.0   ;;  %vm1993_vm2 = vmmov 0   ;;  %vm691_vm3 = vcmask 261120   ;;  %s2409_s29 = scalar_lea.vmem %s2371_s3, %s2119_s25  ;;  %vm746_vm4 = vcmask 130048  }
  0x42   : > { %1766 = vmatprep.subr.bf16.mxu0 %v1992_v5  ;;  %1786 = vmatprep.subr.bf16.mxu1 %v1992_v5  ;;  %v1697_v11 = vld [vmem:[%s2409_s29] ss:$0 sm:$0xff]  ;;  %s1994_s20 = smov 112   ;;  %s1995_s18 = smov 96   ;;  %v737_v23 = vlaneseq  ;;  %vm794_vm6 = vcmask 105472   ;;  %vm798_vm7 = vcmask 102400  }
  0x43   : > { %1770 = vmatprep.mubr.msk.bf16.mxu0 %vm1993_vm2, %v1992_v5  ;;  %1788 = vmatprep.mubr.msk.bf16.mxu1 %vm1993_vm2, %v1992_v5  ;;  %s1996_s24 = smov 80   ;;  %s2410_s1 = sld [smem:[#allocation7_spill]]  ;;  %vm824_vm8 = vcmask 1045504   ;;  %vm825_vm9 = vcmask 1046528   ;;  %v1999_v2 = vmov 65535   ;;  %vm1076_vm10 = vcmask 258048  }
  0x44   : > { %v738_v24 = vand.u32 127, %v737_v23  ;;  %s1997_s16 = smov 48   ;;  %s1998_s22 = smov 64   ;;  %v826_v3 = vsel %vm824_vm8, 4294967295, %v1999_v2  ;;  %v1893_v23 = vld [vmem:[%s2137_s19 + $0x8] sm:$0xff]   ;;  %vm1132_vm11 = vcmask 1040384  }
  0x45   : > { %s2000_s23 = smov 16   ;;  %s2411_s30 = scalar_lea.vmem %s2373_s5, %s2119_s25  ;;  %vm1162_vm12 = vcmask 523264   ;;  %vm1208_vm13 = vcmask 785408   ;;  %vm1487_vm14 = vcmask 257024   ;;  %vm1489_vm15 = vcmask 256000  }
  0x46   : > { %v2191_v7 = vld [vmem:[#allocation2] sm:$0xff]  ;;  %s2412_s4 = scalar_lea.vmem %s2374_s6, %s2119_s25  ;;  %vm1490_vm0 = vsmask.f32 2304 }
  0x47   : > { %v1891_v4 = vld [vmem:[%s2408_s2 + $0x8] sm:$0xff]   ;;  %v1892_v6 = vld [vmem:[%s2408_s2] sm:$0xff]   ;;  %vm1491_vm1 = vmand %vm1489_vm15, %vm1490_vm0 }
  0x48   : > { %1767 = vmatpush3.bf16.msra.mxu0 %v1891_v4  ;;  %v2193_v8 = vld [vmem:[#allocation2 + $0x8] sm:$0x1f] }
  0x49   : > { %1768 = vmatprep.subr.bf16.mxu0 %v1992_v5  ;;  %v667_v9 = vpack.c.bf16 %v2193_v8, %v2191_v7  ;;  %s739_s28 = sld [smem:[#allocation4 + %s2410_s1]]  ;;  %s2414_s1 = scalar_lea.vmem %s2377_s9, %s2119_s25 }
  0x4c   : > { %1769 = vmatpush3.bf16.msra.mxu0 %v1892_v6  ;;  %v827_v6 = vsel %vm825_vm9, %v826_v3, 0 }
  0x4d   : > { %1774 = vmatprep.subr.bf16.mxu0 %v1992_v5 }
  0x4f   : > { %1771 = vmatmul.mubr.msk.bf16.vlgmr.msra.gmra.mxu0 %vm691_vm3, %v667_v9  ;;  %v740_v25 = vstv %s739_s28 }
  0x50   : > { %1776 = vmatprep.mubr.msk.bf16.mxu0 %vm1993_vm2, %v1992_v5  ;;  %vm741_vm5 = vcmp.gt.s32.totalorder %v738_v24, %v740_v25  ;;  %v1894_v24 = vld [vmem:[%s2137_s19] sm:$0xff]  }
  0x51   : > { %v742_v26 = vsel %vm741_vm5, -inf, %v1992_v5 }
 0x10f   : > { %v729_v10 = vpop.f32.mrf.mxu0 }
 0x110   : > { %v730_v14 = vadd.f32 %v1697_v11, %v729_v10 }
 0x111   : > { %v1772_v12 = vpop.f32.mrf.mxu0 }
 0x113   : > { %v732_v13 = vpop.f32.mrf.mxu0 }
 0x114   : > { %v733_v15 = vadd.f32 %v1697_v11, %v732_v13 }
 0x115   : > { %v1773_v16 = vpop.f32.mrf.mxu0 }
 0x116   : > { %v2209_v17 = vpack.c.bf16 %v733_v15, %v730_v14 }
 0x118   : > { %873 = vrot.lane.b32.xlu1 %v2209_v17, %s1994_s20  ;;  %744 = vrot.lane.b32.xlu0 %v2209_v17, %s1995_s18  ;;  %s2413_s20 = scalar_lea.vmem %s2375_s7, %s2119_s25 }
 0x11c   : > { %875 = vrot.lane.b32.xlu0 %v2209_v17, %s1996_s24 }
 0x18a   : > { %v745_v18 = vpop.permute.xlu0 %744  ;;  %v874_v22 = vpop.permute.xlu1 %873 }
 0x18b   : > { %v751_v19 = vsel %vm746_vm4, %v745_v18, 0 }
 0x18c   : > { %1775 = vmatpush3.bf16.xpose.msra.mxu0 %v751_v19 }
 0x18d   : > { %1780 = vmatprep.subr.bf16.mxu0 %v1992_v5 }
 0x18e   : > { %v876_v20 = vpop.permute.xlu0 %875 }
 0x18f   : > { %v881_v21 = vsel %vm746_vm4, %v876_v20, 0 }
 0x190   : > { %1787 = vmatpush3.bf16.xpose.msra.mxu1 %v881_v21 }
 0x191   : > { %1798 = vmatprep.subr.bf16.mxu1 %v1992_v5 }
 0x193   : > { %1777 = vmatmul.mubr.msk.bf16.vlgmr.msra.gmra.mxu0 %vm746_vm4, %v2209_v17 }
 0x194   : > { %1782 = vmatprep.mubr.msk.bf16.mxu0 %vm1993_vm2, %v1992_v5 }
 0x197   : > { %1789 = vmatmul.mubr.msk.bf16.vlgmr.msra.gmra.mxu1 %vm746_vm4, %v874_v22 }
 0x198   : > { %1802 = vmatprep.mubr.msk.bf16.mxu1 %vm1993_vm2, %v1992_v5  ;;  %1799 = vmatpush3.bf16.msra.mxu1 %v1893_v23 }
 0x199   : > { %1800 = vmatprep.subr.bf16.mxu1 %v1992_v5 }
 0x19c   : > { %1801 = vmatpush3.bf16.msra.mxu1 %v1894_v24 }
 0x253   : > { %v787_v27 = vpop.f32.mrf.mxu0 }
 0x254   : > { %v788_v28 = vadd.f32 %v787_v27, %v742_v26 }
 0x255   : > { %v1778_v29 = vpop.f32.mrf.mxu0 }
 0x256   : > { %v795_v30 = vsel %vm794_vm6, %v788_v28, -inf }
 0x257   : > { %v917_v31 = vpop.f32.mrf.mxu1  ;;  %796 = vmax.xlane.f32.xlu1 %v795_v30  ;;  %v790_v32 = vpop.f32.mrf.mxu0 }
 0x258   : > { %v791_v33 = vadd.f32 %v790_v32, %v742_v26  ;;  %v918_v36 = vadd.f32 %v917_v31, %v742_v26 }
 0x259   : > { %v1779_v34 = vpop.f32.mrf.mxu0  ;;  %v1790_v35 = vpop.f32.mrf.mxu1 }
 0x25a   : > { %v799_v37 = vsel %vm798_vm7, %v791_v33, -inf  ;;  %v924_v42 = vsel %vm794_vm6, %v918_v36, -inf }
 0x25b   : > { %v920_v38 = vpop.f32.mrf.mxu1  ;;  %800 = vmax.xlane.f32.xlu0 %v799_v37  ;;  %v1705_v37 = vld [vmem:[%s2411_s30] ss:$0 sm:$0xff] }
 0x25c   : > { %v921_v39 = vadd.f32 %v920_v38, %v742_v26 }
 0x25d   : > { %v1791_v40 = vpop.f32.mrf.mxu1 }
 0x25e   : > { %v927_v41 = vsel %vm798_vm7, %v921_v39, -inf }
 0x25f   : > { %928 = vmax.xlane.f32.xlu1 %v927_v41  ;;  %925 = vmax.xlane.f32.xlu0 %v924_v42 }
 0x2e0   : > { %v797_v43 = vpop.xlane.xlu1 %796 }
 0x2e1   : > { %v802_v44 = vsub.f32 %v788_v28, %v797_v43 }
 0x2e3   : > { %v804_v45 = vmul.f32 1.442695, %v802_v44 }
 0x2e4   : > { %v801_v46 = vpop.xlane.xlu0 %800 }
 0x2e5   : > { %1913 = vpow2.f32 %v804_v45  ;;  %v803_v47 = vsub.f32 %v791_v33, %v801_v46 }
 0x2e7   : > { %v806_v48 = vmul.f32 1.442695, %v803_v47 }
 0x2e8   : > { %v929_v49 = vpop.xlane.xlu1 %928  ;;  %v926_v50 = vpop.xlane.xlu0 %925 }
 0x2e9   : > { %1915 = vpow2.f32 %v806_v48  ;;  %v931_v51 = vsub.f32 %v921_v39, %v929_v49  ;;  %v930_v52 = vsub.f32 %v918_v36, %v926_v50 }
 0x2eb   : > { %v934_v53 = vmul.f32 1.442695, %v931_v51  ;;  %v932_v54 = vmul.f32 1.442695, %v930_v52 }
 0x2ed   : > { %1917 = vpow2.f32 %v934_v53 }
 0x2ee   : > { %1919 = vpow2.f32 %v932_v54 }
 0x2f2   : > { %v1914_v55 = vpop.eup %1913 }
 0x2f3   : > { %v808_v56 = vsel %vm794_vm6, %v1914_v55, 0.0 }
 0x2f4   : > { %809 = vadd.xlane.f32.xlu0 %v808_v56  ;;  %v1895_v56 = vld [vmem:[%s2164_s27 + $0x28] sm:$0xff]  }
 0x2f6   : > { %v1916_v57 = vpop.eup %1915 }
 0x2f7   : > { %v811_v58 = vsel %vm798_vm7, %v1916_v57, 0.0 }
 0x2f8   : > { %812 = vadd.xlane.f32.xlu1 %v811_v58  ;;  %v1897_v58 = vld [vmem:[%s2164_s27 + $0x18] sm:$0xff]  }
 0x2fa   : > { %v1918_v59 = vpop.eup %1917 }
 0x2fb   : > { %v1920_v60 = vpop.eup %1919  ;;  %v939_v61 = vsel %vm798_vm7, %v1918_v59, 0.0 }
 0x2fc   : > { %940 = vadd.xlane.f32.xlu1 %v939_v61  ;;  %v936_v62 = vsel %vm794_vm6, %v1920_v60, 0.0 }
 0x2fd   : > { %937 = vadd.xlane.f32.xlu0 %v936_v62 }
 0x30d   : > { %947 = vrot.lane.b32.xlu1 %v2209_v17, %s1997_s16  ;;  %s2415_s16 = sld [smem:[#allocation17_spill]] }
 0x313   : > { %819 = vrot.lane.b32.xlu0 %v2209_v17, %s1998_s22 }
 0x37d   : > { %v810_v63 = vpop.xlane.xlu0 %809 }
 0x37e   : > { %1921 = vrcp.f32 %v810_v63 }
 0x381   : > { %v813_v0 = vpop.xlane.xlu1 %812 }
 0x382   : > { %1923 = vrcp.f32 %v813_v0 }
 0x385   : > { %v941_v1 = vpop.xlane.xlu1 %940 }
 0x386   : > { %1925 = vrcp.f32 %v941_v1  ;;  %v938_v4 = vpop.xlane.xlu0 %937 }
 0x387   : > { %1927 = vrcp.f32 %v938_v4  ;;  %v1709_v4 = vld [vmem:[%s2412_s4] ss:$0 sm:$0xff] }
 0x389   : > { %v948_v13 = vpop.permute.xlu1 %947 }
 0x38a   : > { %v820_v9 = vpop.permute.xlu0 %819  ;;  %v953_v18 = vand.u32 %v948_v13, %v827_v6 }
 0x38b   : > { %v829_v10 = vand.u32 %v827_v6, %v820_v9  ;;  %v1922_v11 = vpop.eup %1921 }
 0x38c   : > { %v815_v14 = vmul.f32 %v1922_v11, %v1914_v55 }
 0x38d   : > { %1781 = vmatpush3.bf16.msra.mxu0 %v829_v10 }
 0x38e   : > { %1792 = vmatprep.subr.bf16.mxu0 %v1992_v5 }
 0x38f   : > { %v1924_v12 = vpop.eup %1923 }
 0x390   : > { %v817_v15 = vmul.f32 %v1924_v12, %v1916_v57  ;;  %v1896_v57 = vld [vmem:[%s2164_s27 + $0x20] sm:$0xff]  }
 0x392   : > { %v818_v16 = vpack.c.bf16 %v817_v15, %v815_v14 }
 0x393   : > { %v1926_v17 = vpop.eup %1925 }
 0x394   : > { %v1928_v19 = vpop.eup %1927  ;;  %1783 = vmatmul.mubr.msk.bf16.vlgmr.msra.gmra.mxu0 %vm794_vm6, %v818_v16  ;;  %v945_v21 = vmul.f32 %v1926_v17, %v1918_v59  ;;  %v1898_v59 = vld [vmem:[%s2164_s27 + $0x10] sm:$0xff]   ;;  %v1900_v16 = vld [vmem:[%s2164_s27] sm:$0xff]  }
 0x395   : > { %1793 = vmatpush3.bf16.msra.mxu0 %v953_v18  ;;  %1794 = vmatprep.mubr.msk.bf16.mxu0 %vm1993_vm2, %v1992_v5  ;;  %v943_v20 = vmul.f32 %v1928_v19, %v1920_v60  ;;  %v1899_v60 = vld [vmem:[%s2164_s27 + $0x8] sm:$0xff]   ;;  %s2001_s27 = smov 32  }
 0x396   : > { %1806 = vmatprep.subr.bf16.mxu0 %v1992_v5 }
 0x397   : > { %v946_v22 = vpack.c.bf16 %v945_v21, %v943_v20 }
 0x39c   : > { %1795 = vmatmul.mubr.msk.bf16.vlgmr.msra.gmra.mxu0 %vm794_vm6, %v946_v22 }
 0x39d   : > { %1818 = vmatprep.mubr.msk.bf16.mxu0 %vm1993_vm2, %v1992_v5  ;;  %1807 = vmatpush3.bf16.msra.mxu0 %v1895_v56 }
 0x39e   : > { %1808 = vmatprep.subr.bf16.mxu0 %v1992_v5 }
 0x3a1   : > { %1809 = vmatpush3.bf16.msra.mxu0 %v1896_v57 }
 0x3a2   : > { %1810 = vmatprep.subr.bf16.mxu0 %v1992_v5 }
 0x3a5   : > { %1811 = vmatpush3.bf16.msra.mxu0 %v1897_v58 }
 0x3a6   : > { %1812 = vmatprep.subr.bf16.mxu0 %v1992_v5 }
 0x3a9   : > { %1813 = vmatpush3.bf16.msra.mxu0 %v1898_v59  ;;  %v1912_v59 = vld [vmem:[%s2173_s14 + $0x40] sm:$0xff]  }
 0x3aa   : > { %1814 = vmatprep.subr.bf16.mxu0 %v1992_v5 }
 0x3ad   : > { %1815 = vmatpush3.bf16.msra.mxu0 %v1899_v60 }
 0x3ae   : > { %1816 = vmatprep.subr.bf16.mxu0 %v1992_v5  ;;  %v1710_v5 = vld [vmem:[%s2413_s20] ss:$0 sm:$0xff] }
 0x3b1   : > { %1817 = vmatpush3.bf16.msra.mxu0 %v1900_v16 }
 0x454   : > { %v865_v25 = vpop.f32.mrf.mxu0 }
 0x456   : > { %v1784_v26 = vpop.f32.mrf.mxu0 }
 0x458   : > { %v868_v27 = vpop.f32.mrf.mxu0 }
 0x459   : > { %v872_v28 = vpack.c.bf16 %v868_v27, %v865_v25 }
 0x45a   : > { %v1785_v29 = vpop.f32.mrf.mxu0 }
 0x45c   : > { %v989_v30 = vpop.f32.mrf.mxu0 }
 0x45e   : > { %v1796_v31 = vpop.f32.mrf.mxu0 }
 0x460   : > { %v992_v32 = vpop.f32.mrf.mxu0 }
 0x461   : > { %v996_v33 = vpack.c.bf16 %v992_v32, %v989_v30 }
 0x462   : > { %v1797_v34 = vpop.f32.mrf.mxu0 }
 0x463   : > { %998 = vrot.lane.b32.xlu1 %v996_v33, %s2000_s23  ;;  %s2416_s23 = scalar_lea.vmem %s2415_s16, %s2119_s25 }
 0x4d5   : > { %v999_v35 = vpop.permute.xlu1 %998 }
 0x4d6   : > { %v1002_v36 = vsel %vm746_vm4, %v872_v28, %v999_v35 }
 0x4d7   : > { %1803 = vmatmul.mubr.msk.bf16.vlgmr.msra.gmra.mxu1 %vm691_vm3, %v1002_v36 }
 0x597   : > { %v1062_v38 = vpop.f32.mrf.mxu1 }
 0x598   : > { %v1063_v39 = vadd.f32 %v1705_v37, %v1062_v38 }
 0x599   : > { %v1804_v40 = vpop.f32.mrf.mxu1 }
 0x59a   : > { %v1069_v41 = vadd.f32 %v1063_v39, %v2191_v7  ;;  %v1901_v40 = vld [vmem:[%s2173_s14 + $0x38] sm:$0xff]  }
 0x59b   : > { %v1065_v42 = vpop.f32.mrf.mxu1 }
 0x59c   : > { %v1066_v43 = vadd.f32 %v1705_v37, %v1065_v42  ;;  %v1073_v44 = vsel %vm691_vm3, %v1069_v41, 0.0  ;;  %v1902_v42 = vld [vmem:[%s2173_s14 + $0x30] sm:$0xff]  }
 0x59d   : > { %1074 = vadd.xlane.f32.xlu0 %v1073_v44  ;;  %v1805_v45 = vpop.f32.mrf.mxu1  ;;  %v1904_v44 = vld [vmem:[%s2173_s14 + $0x20] sm:$0xff]  }
 0x59e   : > { %v1070_v46 = vadd.f32 %v1066_v43, %v2193_v8  ;;  %v1903_v43 = vld [vmem:[%s2173_s14 + $0x28] sm:$0xff]   ;;  %v1905_v45 = vld [vmem:[%s2173_s14 + $0x18] sm:$0xff]  }
 0x5a0   : > { %v1077_v47 = vsel %vm1076_vm10, %v1070_v46, 0.0 }
 0x5a1   : > { %1078 = vadd.xlane.f32.xlu1 %v1077_v47  ;;  %v1907_v47 = vld [vmem:[%s2173_s14 + $0x8] sm:$0xff]  }
 0x626   : > { %v1075_v48 = vpop.xlane.xlu0 %1074 }
 0x627   : > { %v1081_v49 = vmul.f32 0.03125, %v1075_v48  ;;  %v1908_v48 = vld [vmem:[%s2173_s14] sm:$0xff]  }
 0x629   : > { %v1083_v50 = vsub.f32 %v1069_v41, %v1081_v49  ;;  %v2002_v41 = vmov 0   ;;  %v1909_v49 = vld [vmem:[%s2173_s14 + $0x58] sm:$0xff]  }
 0x62a   : > { %v1079_v51 = vpop.xlane.xlu1 %1078  ;;  %1390 = vmatprep.subr.bf16.mxu1 %v2002_v41 }
 0x62b   : > { %v1082_v7 = vmul.f32 0.03125, %v1079_v51  ;;  %v1085_v52 = vmul.f32 %v1083_v50, %v1083_v50  ;;  %1391 = vmatpush1.bf16.msra.mxu1 %v1901_v40  ;;  %v1911_v51 = vld [vmem:[%s2173_s14 + $0x48] sm:$0xff]  }
 0x62c   : > { %1392 = vmatprep.subr.bf16.mxu1 %v2002_v41 }
 0x62d   : > { %v1084_v53 = vsub.f32 %v1070_v46, %v1082_v7  ;;  %v1087_v54 = vsel %vm691_vm3, %v1085_v52, 0.0  ;;  %v1906_v46 = vld [vmem:[%s2173_s14 + $0x10] sm:$0xff]   ;;  %v1711_v7 = vld [vmem:[%s2414_s1] ss:$0 sm:$0xff] }
 0x62e   : > { %1088 = vadd.xlane.f32.xlu0 %v1087_v54 }
 0x62f   : > { %v1086_v55 = vmul.f32 %v1084_v53, %v1084_v53  ;;  %1393 = vmatpush1.bf16.msra.mxu1 %v1902_v42 }
 0x630   : > { %1394 = vmatprep.subr.bf16.mxu1 %v2002_v41 }
 0x631   : > { %v1090_v8 = vsel %vm1076_vm10, %v1086_v55, 0.0 }
 0x632   : > { %1091 = vadd.xlane.f32.xlu0 %v1090_v8 }
 0x633   : > { %1395 = vmatpush1.bf16.msra.mxu1 %v1903_v43 }
 0x634   : > { %1396 = vmatprep.subr.bf16.mxu1 %v2002_v41 }
 0x637   : > { %1397 = vmatpush1.bf16.msra.mxu1 %v1904_v44 }
 0x638   : > { %1398 = vmatprep.subr.bf16.mxu1 %v2002_v41 }
 0x63b   : > { %1399 = vmatpush1.bf16.msra.mxu1 %v1905_v45  ;;  %v1733_v45 = vld [vmem:[%s643_s15] ss:$0 sm:$0xff] }
 0x63c   : > { %1400 = vmatprep.subr.bf16.mxu1 %v2002_v41 }
 0x63f   : > { %1401 = vmatpush1.bf16.msra.mxu1 %v1906_v46 }
 0x640   : > { %1402 = vmatprep.subr.bf16.mxu1 %v2002_v41 }
 0x643   : > { %1403 = vmatpush1.bf16.msra.mxu1 %v1907_v47  ;;  %v1734_v47 = vld [vmem:[%s646_s0] ss:$0 sm:$0xff] }
 0x644   : > { %1404 = vmatprep.subr.bf16.mxu1 %v2002_v41 }
 0x647   : > { %1405 = vmatpush1.bf16.msra.mxu1 %v1908_v48 }
 0x648   : > { %1414 = vmatprep.subr.bf16.mxu1 %v2002_v41 }
 0x64b   : > { %1415 = vmatpush2.bf16.msra.mxu1 %v1909_v49 }
 0x64c   : > { %1416 = vmatprep.subr.bf16.mxu1 %v2002_v41 }
 0x6b7   : > { %v1089_v61 = vpop.xlane.xlu0 %1088 }
 0x6b8   : > { %v1093_v62 = vmul.f32 0.03125, %v1089_v61 }
 0x6ba   : > { %v1095_v63 = vadd.f32 1e-05, %v1093_v62 }
 0x6bb   : > { %v1092_v0 = vpop.xlane.xlu0 %1091 }
 0x6bc   : > { %1929 = vrsqrt.f32 %v1095_v63  ;;  %v1094_v1 = vmul.f32 0.03125, %v1092_v0 }
 0x6be   : > { %v1096_v2 = vadd.f32 1e-05, %v1094_v1 }
 0x6c0   : > { %1931 = vrsqrt.f32 %v1096_v2 }
 0x6c9   : > { %v1930_v3 = vpop.eup %1929 }
 0x6ca   : > { %v1099_v6 = vmul.f32 %v1930_v3, %v1083_v50  ;;  %v1910_v50 = vld [vmem:[%s2173_s14 + $0x50] sm:$0xff]  }
 0x6cb   : > { %1417 = vmatpush2.bf16.msra.mxu1 %v1910_v50 }
 0x6cc   : > { %v1107_v9 = vmul.f32 %v1709_v4, %v1099_v6  ;;  %1418 = vmatprep.subr.bf16.mxu1 %v2002_v41 }
 0x6cd   : > { %v1932_v10 = vpop.eup %1931 }
 0x6ce   : > { %v1100_v11 = vmul.f32 %v1932_v10, %v1084_v53  ;;  %v2284_v12 = vadd.f32 %v1710_v5, %v1107_v9 }
 0x6cf   : > { %1419 = vmatpush2.bf16.msra.mxu1 %v1911_v51 }
 0x6d0   : > { %v1108_v13 = vmul.f32 %v1709_v4, %v1100_v11  ;;  %v1133_v14 = vrot.slane %v2284_v12, 7  ;;  %1420 = vmatprep.subr.bf16.mxu1 %v2002_v41 }
 0x6d2   : > { %v2287_v15 = vadd.f32 %v1710_v5, %v1108_v13  ;;  %v1138_v18 = vsel %vm1132_vm11, 0.0, %v1133_v14 }
 0x6d3   : > { %v1151_v21 = vrot.slane %v1138_v18, 2  ;;  %v1142_v23 = vrot.slane %v1138_v18, 1  ;;  %1421 = vmatpush2.bf16.msra.mxu1 %v1912_v59 }
 0x6d4   : > { %v1134_v17 = vrot.slane %v2287_v15, 7 }
 0x6d6   : > { %v1135_v19 = vsel %vm1132_vm11, %v1133_v14, %v1134_v17 }
 0x6d7   : > { %v1139_v20 = vsel %vm824_vm8, %v1135_v19, 0.0  ;;  %v1719_v19 = vld [vmem:[%s2416_s23] ss:$0 sm:$0xff] }
 0x6d8   : > { %v1152_v22 = vrot.slane %v1139_v20, 2  ;;  %v1143_v24 = vrot.slane %v1139_v20, 1 }
 0x6da   : > { %v1153_v25 = vsel %vm824_vm8, %v1151_v21, %v1152_v22  ;;  %v1144_v26 = vsel %vm825_vm9, %v1142_v23, %v1143_v24 }
 0x6db   : > { %v1881_v27 = vpack.i.bf16 %v1152_v22, %v1153_v25  ;;  %v1876_v28 = vpack.i.bf16 %v1143_v24, %v1144_v26 }
 0x6dd   : > { %1882 = vrot.lane.b32.xlu0 %v1881_v27, %s1998_s22  ;;  %1877 = vrot.lane.b32.xlu1 %v1876_v28, %s2001_s27 }
 0x74f   : > { %v1883_v29 = vpop.permute.xlu0 %1882  ;;  %v1878_v30 = vpop.permute.xlu1 %1877 }
 0x750   : > { %v1885_v31 = vunpack.i.h.bf16 %v1883_v29  ;;  %v1884_v32 = vunpack.i.l.bf16 %v1883_v29  ;;  %v1880_v33 = vunpack.i.h.bf16 %v1878_v30  ;;  %v1879_v34 = vunpack.i.l.bf16 %v1878_v30 }
 0x752   : > { %v1161_v35 = vsel %vm691_vm3, %v1139_v20, %v1880_v33  ;;  %v1160_v36 = vsel %vm691_vm3, %v1138_v18, %v1879_v34 }
 0x753   : > { %v1164_v37 = vsel %vm1162_vm12, %v1161_v35, %v1885_v31  ;;  %v1163_v38 = vsel %vm1162_vm12, %v1160_v36, %v1884_v32 }
 0x754   : > { %v1165_v39 = vpack.c.bf16 %v1164_v37, %v1163_v38 }
 0x756   : > { %1819 = vmatmul.mubr.msk.bf16.vlgmr.msra.gmra.mxu0 %vm1208_vm13, %v1165_v39 }
 0x816   : > { %v1246_v52 = vpop.f32.mrf.mxu0 }
 0x817   : > { %v1247_v53 = vadd.f32 %v1711_v7, %v1246_v52 }
 0x818   : > { %v1820_v54 = vpop.f32.mrf.mxu0 }
 0x819   : > { %v1253_v55 = vmax.f32 %v1247_v53, 0.0  ;;  %v1492_v54 = vld [vmem:[%s2182_s11 + $0x4] sm:$0x7] }
 0x81a   : > { %v1249_v8 = vpop.f32.mrf.mxu0 }
 0x81b   : > { %v1250_v56 = vadd.f32 %v1711_v7, %v1249_v8  ;;  %v1282_v57 = vrot.slane %v1253_v55, 7 }
 0x81c   : > { %v1821_v58 = vpop.f32.mrf.mxu0 }
 0x81d   : > { %v1254_v60 = vmax.f32 %v1250_v56, 0.0  ;;  %v1287_v62 = vsel %vm1132_vm11, 0.0, %v1282_v57 }
 0x81e   : > { %v1291_v1 = vrot.slane %v1287_v62, 1  ;;  %v1300_v2 = vrot.slane %v1287_v62, 2 }
 0x81f   : > { %v1283_v61 = vrot.slane %v1254_v60, 7 }
 0x821   : > { %v1284_v63 = vsel %vm1132_vm11, %v1282_v57, %v1283_v61 }
 0x822   : > { %v1288_v0 = vsel %vm824_vm8, %v1284_v63, 0.0 }
 0x823   : > { %v1301_v3 = vrot.slane %v1288_v0, 2  ;;  %v1292_v4 = vrot.slane %v1288_v0, 1 }
 0x825   : > { %v1302_v6 = vsel %vm824_vm8, %v1300_v2, %v1301_v3  ;;  %v1293_v5 = vsel %vm825_vm9, %v1291_v1, %v1292_v4 }
 0x826   : > { %v1308_v9 = vpack.c.bf16 %v1301_v3, %v1302_v6  ;;  %v1886_v10 = vpack.i.bf16 %v1292_v4, %v1293_v5 }
 0x828   : > { %1732 = vmatprep.mubr.msk.bf16.mxu1 %vm1162_vm12, %v1308_v9  ;;  %1887 = vrot.lane.b32.xlu1 %v1886_v10, %s1998_s22 }
 0x89a   : > { %v1888_v11 = vpop.permute.xlu1 %1887 }
 0x89b   : > { %v1890_v13 = vunpack.i.h.bf16 %v1888_v11  ;;  %v1889_v14 = vunpack.i.l.bf16 %v1888_v11 }
 0x89d   : > { %v1306_v16 = vsel %vm1162_vm12, %v1288_v0, %v1890_v13  ;;  %v1305_v17 = vsel %vm1162_vm12, %v1287_v62, %v1889_v14 }
 0x89e   : > { %v1307_v18 = vpack.c.bf16 %v1306_v16, %v1305_v17 }
 0x8a0   : > { %1423 = vmatmul.mubr.bf16.vlgmr.msra.gmra.mxu1 %v1307_v18 }
 0x960   : > { %v1424_v20 = vpop.f32.mrf.mxu1 }
 0x961   : > { %v1425_v21 = vadd.f32 %v1719_v19, %v1424_v20 }
 0x962   : > { %v1426_v22 = vpop.f32.mrf.mxu1 }
 0x963   : > { %v1431_v23 = vadd.f32 %v1425_v21, %v2284_v12 }
 0x964   : > { %v1427_v24 = vpop.f32.mrf.mxu1 }
 0x965   : > { %v1428_v25 = vadd.f32 %v1719_v19, %v1427_v24  ;;  %v1435_v26 = vsel %vm691_vm3, %v1431_v23, 0.0 }
 0x966   : > { %v1429_v27 = vpop.f32.mrf.mxu1  ;;  %1436 = vadd.xlane.f32.xlu0 %v1435_v26 }
 0x967   : > { %v1432_v28 = vadd.f32 %v1428_v25, %v2287_v15 }
 0x969   : > { %v1438_v29 = vsel %vm1076_vm10, %v1432_v28, 0.0 }
 0x96a   : > { %1439 = vadd.xlane.f32.xlu1 %v1438_v29 }
 0x9ef   : > { %v1437_v30 = vpop.xlane.xlu0 %1436 }
 0x9f0   : > { %v1441_v31 = vmul.f32 0.03125, %v1437_v30 }
 0x9f2   : > { %v1443_v32 = vsub.f32 %v1431_v23, %v1441_v31 }
 0x9f3   : > { %v1440_v33 = vpop.xlane.xlu1 %1439 }
 0x9f4   : > { %v1442_v34 = vmul.f32 0.03125, %v1440_v33  ;;  %v1445_v35 = vmul.f32 %v1443_v32, %v1443_v32 }
 0x9f6   : > { %v1444_v36 = vsub.f32 %v1432_v28, %v1442_v34  ;;  %v1447_v12 = vsel %vm691_vm3, %v1445_v35, 0.0 }
 0x9f7   : > { %1448 = vadd.xlane.f32.xlu1 %v1447_v12 }
 0x9f8   : > { %v1446_v37 = vmul.f32 %v1444_v36, %v1444_v36 }
 0x9fa   : > { %v1450_v38 = vsel %vm1076_vm10, %v1446_v37, 0.0 }
 0x9fb   : > { %1451 = vadd.xlane.f32.xlu0 %v1450_v38 }
 0xa80   : > { %v1449_v15 = vpop.xlane.xlu1 %1448 }
 0xa81   : > { %v1453_v39 = vmul.f32 0.03125, %v1449_v15 }
 0xa83   : > { %v1455_v40 = vadd.f32 1e-05, %v1453_v39 }
 0xa84   : > { %v1452_v41 = vpop.xlane.xlu0 %1451 }
 0xa85   : > { %1933 = vrsqrt.f32 %v1455_v40  ;;  %v1454_v42 = vmul.f32 0.03125, %v1452_v41 }
 0xa87   : > { %v1456_v43 = vadd.f32 1e-05, %v1454_v42 }
 0xa89   : > { %1935 = vrsqrt.f32 %v1456_v43 }
 0xa92   : > { %v1934_v44 = vpop.eup %1933 }
 0xa93   : > { %v1459_v46 = vmul.f32 %v1934_v44, %v1443_v32 }
 0xa95   : > { %v1467_v48 = vmul.f32 %v1733_v45, %v1459_v46 }
 0xa96   : > { %v1936_v49 = vpop.eup %1935 }
 0xa97   : > { %v1475_v50 = vadd.f32 %v1734_v47, %v1467_v48  ;;  %v1460_v51 = vmul.f32 %v1936_v49, %v1444_v36 }
 0xa99   : > { %1477 = vst.msk [vmem:[#allocation2] sm:$0xff] %vm691_vm3, %v1475_v50  ;;  %v1743_v7 = vpack.c.bf16 %v1475_v50, %v1475_v50  ;;  %v1468_v52 = vmul.f32 %v1733_v45, %v1460_v51 }
 0xa9b   : > { %1488 = vst.msk [vmem:[%s2182_s11] sm:$0xf] %vm1487_vm14, %v1743_v7  ;;  %v1476_v53 = vadd.f32 %v1734_v47, %v1468_v52 }
 0xa9d   : > { %1478 = vst.msk [vmem:[#allocation2 + $0x8] sm:$0x1f] %vm1076_vm10, %v1476_v53  ;;  %v1744_v55 = vpack.c.bf16 %v1476_v53, %v1476_v53 }
 0xa9f   : > { %v1493_v8 = vsel %vm1491_vm1, %v1744_v55, %v1492_v54 }
 0xaa0   : > { %1494 = vst [vmem:[%s2182_s11 + $0x4] sm:$0x7] %v1493_v8 }
 0xaa1 PF: > { %s2417_s0 = sld [smem:[#allocation10_spill]] }
 0xaa2   : > { %s2418_s18 = sld [smem:[#allocation8_spill]] }
 0xaa3   : > { %s2419_s19 = sld [smem:[#allocation9_spill]] }
 0xaa4   : > { %s2420_s20 = sld [smem:[#allocation11_spill]] }
 0xaa7   : > { %s30_s21 = sadd.s32 1, %s2417_s0   ;;  %s2421_s0 = sld [smem:[#allocation12_spill]] }
 0xaa8   : > { %p27_p13 = scmp.ge.s32.totalorder %s30_s21, 6  }
 0xaaa   :  { %29 = sbr.rel (!%p27_p13) target bundleno = 20 (0x14), region = 142 }

// kernel: fastspeech_forward.6
= control target key start
LH: loop header
LB: loop body
LE: loop exit
PB: predicated region body
PF: predicated region fallthrough
CT: control target
= control target key end

     0   :  { %s1295_s0 = inlined_call_operand.vmem [shape: bf16[2,8,32], index: 0, kind: input, shape index: {}]   ;;  %s1296_s1 = inlined_call_operand.vmem [shape: bf16[96,32], index: 1, kind: input, shape index: {}]   ;;  %s1297_s2 = inlined_call_operand.vmem [shape: f32[1,32], index: 2, kind: input, shape index: {}]   ;;  %s1298_s3 = inlined_call_operand.vmem [shape: f32[1,32], index: 3, kind: input, shape index: {}]   ;;  %s1299_s4 = inlined_call_operand.vmem [shape: f32[1,32], index: 4, kind: input, shape index: {}]   ;;  %s1300_s5 = inlined_call_operand.vmem [shape: bf16[96,32], index: 5, kind: input, shape index: {}]   ;;  %s1301_s6 = inlined_call_operand.vmem [shape: f32[1,32], index: 6, kind: input, shape index: {}]   ;;  %s1302_s7 = inlined_call_operand.vmem [shape: f32[1,32], index: 7, kind: input, shape index: {}]   ;;  %s1303_s8 = inlined_call_operand.vmem [shape: f32[1,32], index: 8, kind: input, shape index: {}]   ;;  %s1304_s9 = inlined_call_operand.vmem [shape: bf16[1,32], index: 9, kind: input, shape index: {}]   ;;  %s1305_s10 = inlined_call_operand.<no memory space> [shape: f32[1,1], index: 10, kind: input, shape index: {}]   ;;  %s1306_s11 = inlined_call_operand.hbm [shape: f32[2,1,8], index: 11, kind: output, shape index: {}]  }
   0x1   :  { %v16_v0 = vstv %s1305_s10 }
   0x2   :  { %17 = vst [vmem:[#allocation2] sm:$0x1] %v16_v0 }
   0x3   :  { %18 = vsyncpa [#allocation4], 0 }
   0x4   :  { %20 = vsyncpa [#allocation4 + $0x1], 0  ;;  %s1096_s19 = smov 0   ;;  %s1098_s20 = smov 0  }
   0x5   :  { %s1100_s21 = smov 0   ;;  %s1102_s22 = smov 0  }
   0x6 LB: > { %s1117_s10 = sadd.s32 4294967295, %s1025_s22   ;;  %s821_s23 = sadd.s32 4294967294, %s1025_s22   ;;  %s1025_s22 = sphi %s1102_s22, %s1312_s22   ;;  %s1021_s21 = sphi %s1100_s21, %s1311_s21   ;;  %s1017_s20 = sphi %s1098_s20, %s1310_s20   ;;  %s1013_s19 = sphi %s1096_s19, %s1309_s19  }
   0x7   : > { %s1121_s24 = sadd.s32 1, %s1025_s22   ;;  %s269_s25 = sadd.s32 1, %s1021_s21 }
   0x8   : > { %s266_s26 = ssub.s32 %s1025_s22, %s1121_s24  ;;  %p279_p0 = scmp.ne.s32.totalorder %s1021_s21, %s1017_s20 }
   0x9   : > { %p267_p1 = scmp.eq.s32.totalorder %s266_s26, 0  ;;  %p280_p2 = scmp.eq.s32.totalorder %s1117_s10, 1 }
   0xa   : > { %p285_p3 = scmp.ne.s32.totalorder %s1017_s20, %s1013_s19  ;;  %p286_p4 = scmp.eq.s32.totalorder %s821_s23, 1 }
   0xb   : > { %s1132_s27 = scalar_select %p267_p1, %s1021_s21, %s269_s25  }
   0xc   : > { %p1134_p5 = por %p280_p2, %p279_p0  ;;  %p1138_p6 = por %p286_p4, %p285_p3 }
   0xd   : > { %p824_p7 = scmp.ge.s32.totalorder %s1025_s22, 1  ;;  %p341_p8 = scmp.lt.s32.totalorder %s1025_s22, 3 }
   0xf   : > { %p342_p9 = pnand %p824_p7, %p341_p8 }
  0x10   : > { %p379_p10 = scmp.lt.s32.totalorder (!%p342_p9), %s1117_s10, 1  ;;  %s377_s15 = sand.u32 (!%p342_p9), 1, %s1017_s20  }
  0x11   : > { %345 = sbr.rel (%p342_p9) target bundleno = 1511 (0x5e7), region = 64  ;;  %s847_s17 = sshll.u32 (!%p342_p9), %s1117_s10, 4 }
  0x12   : > { %s378_s18 = scalar_lea.vmem (!%p342_p9), [#allocation3], %s377_s15  ;;  %s754_s26 = scalar_lea.sflag (!%p342_p9), [#allocation4], %s377_s15 }
  0x13   : > { %s1032_s30 = smov (!%p342_p9), [#allocation3]  }
  0x14   : > { %s969_s12 = sshll.u32 (!%p342_p9), %s1032_s30, 4  ;;  %s970_s12 = int_to_ptr.vmem [resolvable:$false] %s969_s12 }
  0x15   : > { %s971_s14 = scalar_lea.vmem (!%p342_p9), %s970_s12, 32 }
  0x16   : > { %v1027_v1 = vmov 0.0   ;;  %v949_v2 = vld [vmem:[%s1296_s1 + $0x28] sm:$0xff]   ;;  %s380_s13 = scalar_select %p379_p10, %s1117_s10, 1  ;;  %v950_v3 = vld [vmem:[%s1296_s1 + $0x20] sm:$0xff]   ;;  %vm402_vm0 = vcmask 1040384   ;;  %v951_v6 = vld [vmem:[%s1296_s1 + $0x18] sm:$0xff]  }
  0x17   : > { %866 = vmatprep.subr.bf16.mxu0 %v1027_v1  ;;  %882 = vmatprep.subr.bf16.mxu1 %v1027_v1  ;;  %vm1028_vm1 = vmmov 0   ;;  %vm407_vm2 = vcmask 1046528   ;;  %v952_v8 = vld [vmem:[%s1296_s1 + $0x10] sm:$0xff]   ;;  %vm414_vm3 = vcmask 1045504   ;;  %v953_v16 = vld [vmem:[%s1296_s1 + $0x8] sm:$0xff]   ;;  %v954_v18 = vld [vmem:[%s1296_s1] sm:$0xff]  }
  0x18   : > { %867 = vmatpush3.bf16.msra.mxu0 %v949_v2  ;;  %s825_s16 = sshll.u32 %s380_s13, 2  ;;  %878 = vmatprep.mubr.msk.bf16.mxu0 %vm1028_vm1, %v1027_v1  ;;  %s1029_s13 = smov 32   ;;  %vm421_vm4 = vcmask 261120   ;;  %vm423_vm5 = vcmask 523264   ;;  %vm468_vm6 = vcmask 785408   ;;  %v955_v37 = vld [vmem:[%s1300_s5 + $0x28] sm:$0xff]  }
  0x19   : > { %868 = vmatprep.subr.bf16.mxu0 %v1027_v1  ;;  %s382_s23 = scalar_lea.vmem %s1295_s0, %s825_s16  ;;  %894 = vmatprep.mubr.msk.bf16.mxu1 %vm1028_vm1, %v1027_v1  ;;  %s1030_s16 = smov 64   ;;  %v826_v24 = vld [vmem:[%s1297_s2] ss:$0 sm:$0xff]  ;;  %v957_v39 = vld [vmem:[%s1300_s5 + $0x18] sm:$0xff]   ;;  %v958_v40 = vld [vmem:[%s1300_s5 + $0x10] sm:$0xff]   ;;  %vm751_vm7 = vcmask 57344  }
  0x1a   : > { %v384_v4 = vld [vmem:[%s382_s23] sm:$0xf]  ;;  %883 = vmatpush3.bf16.msra.mxu1 %v955_v37  ;;  %v959_v41 = vld [vmem:[%s1300_s5 + $0x8] sm:$0xff]   ;;  %s766_s23 = sshll.u32 %s378_s18, 4  ;;  %s1256_s23 = int_to_ptr.vmem [resolvable:$true] %s766_s23 }
  0x1b   : > { %v385_v5 = vunpack.c.l.bf16 %v384_v4  ;;  %v956_v38 = vld [vmem:[%s1300_s5 + $0x20] sm:$0xff]   ;;  %884 = vmatprep.subr.bf16.mxu1 %v1027_v1  ;;  %s965_s10 = scalar_lea.vmem %s1256_s23, 16  ;;  %p972_p0 = scmp.lt.s32.totalorder %s1256_s23, %s970_s12 }
  0x1c   : > { %869 = vmatpush3.bf16.msra.mxu0 %v950_v3  ;;  %v960_v45 = vld [vmem:[%s1300_s5] sm:$0xff]   ;;  %p966_p11 = scmp.ne.s32.totalorder %s1256_s23, %s965_s10  ;;  %p973_p1 = scmp.lt.s32.totalorder %s971_s14, %s965_s10 }
  0x1d   : > { %870 = vmatprep.subr.bf16.mxu0 %v1027_v1  ;;  %v400_v7 = vrot.slane %v385_v5, 7  ;;  %v834_v47 = vld [vmem:[%s1298_s3] ss:$0 sm:$0xff] }
  0x1e   : > { %885 = vmatpush3.bf16.msra.mxu1 %v956_v38  ;;  %v835_v49 = vld [vmem:[%s1299_s4] ss:$0 sm:$0xff]  ;;  %p967_p12 = pnand %p966_p11, %p1134_p5  ;;  %p974_p2 = por %p973_p1, %p972_p0 }
  0x1f   : > { %v403_v9 = vsel %vm402_vm0, 0.0, %v400_v7  ;;  %v404_v10 = vsel %vm402_vm0, %v400_v7, 0.0  ;;  %886 = vmatprep.subr.bf16.mxu1 %v1027_v1  ;;  %v836_v2 = vld [vmem:[%s1301_s6] ss:$0 sm:$0xff] }
  0x20   : > { %871 = vmatpush3.bf16.msra.mxu0 %v951_v6  ;;  %v408_v11 = vrot.slane %v403_v9, 1  ;;  %v409_v12 = vrot.slane %v404_v10, 1  ;;  %v415_v13 = vrot.slane %v403_v9, 2  ;;  %v416_v14 = vrot.slane %v404_v10, 2  ;;  %p968_p13 = pneg %p967_p12 }
  0x21   : > { %872 = vmatprep.subr.bf16.mxu0 %v1027_v1 }
  0x22   : > { %v410_v15 = vsel %vm407_vm2, %v408_v11, %v409_v12  ;;  %v417_v17 = vsel %vm414_vm3, %v415_v13, %v416_v14  ;;  %887 = vmatpush3.bf16.msra.mxu1 %v957_v39  ;;  %p975_p3 = pnand %p974_p2, %p968_p13 }
  0x23   : > { %411 = vrot.lane.b32.xlu0 %v410_v15, %s1029_s13  ;;  %888 = vmatprep.subr.bf16.mxu1 %v1027_v1  ;;  %v695_v15 = vld [vmem:[#allocation2] sm:$0x1] }
  0x24   : > { %873 = vmatpush3.bf16.msra.mxu0 %v952_v8 }
  0x25   : > { %874 = vmatprep.subr.bf16.mxu0 %v1027_v1 }
  0x26   : > { %889 = vmatpush3.bf16.msra.mxu1 %v958_v40 }
  0x27   : > { %418 = vrot.lane.b32.xlu0 %v417_v17, %s1030_s16  ;;  %890 = vmatprep.subr.bf16.mxu1 %v1027_v1 }
  0x28   : > { %875 = vmatpush3.bf16.msra.mxu0 %v953_v16  ;;  %v1031_v16 = vmov 0  }
  0x29   : > { %876 = vmatprep.subr.bf16.mxu0 %v1027_v1  ;;  %948 = vset.pattern.permute.xlu0 %v1031_v16 }
  0x2a   : > { %891 = vmatpush3.bf16.msra.mxu1 %v959_v41 }
  0x2b   : > { %892 = vmatprep.subr.bf16.mxu1 %v1027_v1 }
  0x2c   : > { %877 = vmatpush3.bf16.msra.mxu0 %v954_v18 }
  0x2d   : > { %898 = vmatprep.subr.bf16.mxu0 %v1027_v1 }
  0x2e   : > { %893 = vmatpush3.bf16.msra.mxu1 %v960_v45 }
  0x95   : > { %v412_v19 = vpop.permute.xlu0 %411 }
  0x96   : > { %v422_v20 = vsel %vm421_vm4, %v403_v9, %v412_v19 }
  0x99   : > { %v419_v21 = vpop.permute.xlu0 %418 }
  0x9a   : > { %v424_v22 = vsel %vm423_vm5, %v422_v20, %v419_v21  ;;  %v844_v21 = vld [vmem:[%s1302_s7] ss:$0 sm:$0xff] }
  0x9b   : > { %v425_v23 = vpack.c.bf16 %v424_v22, %v424_v22 }
  0x9d   : > { %879 = vmatmul.mubr.msk.bf16.vlgmr.msra.gmra.mxu0 %vm468_vm6, %v425_v23  ;;  %v845_v23 = vld [vmem:[%s1303_s8] ss:$0 sm:$0xff] }
  0x9e   : > { %900 = vmatprep.mubr.msk.bf16.mxu0 %vm1028_vm1, %v1027_v1 }
 0x15d   : > { %v506_v25 = vpop.f32.mrf.mxu0 }
 0x15e   : > { %v507_v26 = vadd.f32 %v826_v24, %v506_v25 }
 0x15f   : > { %v880_v27 = vpop.f32.mrf.mxu0 }
 0x160   : > { %v512_v28 = vmax.f32 %v507_v26, 0.0 }
 0x161   : > { %v509_v29 = vpop.f32.mrf.mxu0 }
 0x162   : > { %v515_v30 = vsel %vm421_vm4, %v512_v28, 0.0  ;;  %v701_v29 = vlaneseq }
 0x163   : > { %516 = vadd.xlane.f32.xlu1 %v515_v30  ;;  %v881_v31 = vpop.f32.mrf.mxu0 }
 0x164   : > { %v702_v30 = vshrl.u32 %v701_v29, 7 }
 0x166   : > { %v703_v31 = vsub.s32 0, %v702_v30 }
 0x1ec   : > { %v517_v32 = vpop.xlane.xlu1 %516 }
 0x1ed   : > { %v519_v33 = vmul.f32 0.03125, %v517_v32 }
 0x1ef   : > { %v520_v34 = vsub.f32 %v512_v28, %v519_v33  ;;  %v693_v28 = vld [vmem:[%s1304_s9] sm:$0x1] }
 0x1f1   : > { %v521_v35 = vmul.f32 %v520_v34, %v520_v34 }
 0x1f3   : > { %v522_v36 = vsel %vm421_vm4, %v521_v35, 0.0 }
 0x1f4   : > { %523 = vadd.xlane.f32.xlu1 %v522_v36 }
 0x27d   : > { %v524_v42 = vpop.xlane.xlu1 %523 }
 0x27e   : > { %v525_v43 = vmul.f32 0.03125, %v524_v42 }
 0x280   : > { %v526_v44 = vadd.f32 1e-05, %v525_v43 }
 0x282   : > { %961 = vrsqrt.f32 %v526_v44 }
 0x28f   : > { %v962_v46 = vpop.eup %961 }
 0x290   : > { %v528_v48 = vmul.f32 %v962_v46, %v520_v34 }
 0x292   : > { %v535_v50 = vmul.f32 %v834_v47, %v528_v48 }
 0x294   : > { %v542_v51 = vadd.f32 %v835_v49, %v535_v50 }
 0x296   : > { %v557_v52 = vrot.slane %v542_v51, 7 }
 0x298   : > { %v559_v53 = vsel %vm402_vm0, 0.0, %v557_v52  ;;  %v560_v54 = vsel %vm402_vm0, %v557_v52, 0.0 }
 0x299   : > { %v569_v55 = vrot.slane %v559_v53, 2  ;;  %v570_v56 = vrot.slane %v560_v54, 2  ;;  %v563_v57 = vrot.slane %v559_v53, 1  ;;  %v564_v58 = vrot.slane %v560_v54, 1 }
 0x29b   : > { %v571_v59 = vsel %vm414_vm3, %v569_v55, %v570_v56  ;;  %v565_v60 = vsel %vm407_vm2, %v563_v57, %v564_v58 }
 0x29c   : > { %572 = vrot.lane.b32.xlu1 %v571_v59, %s1030_s16  ;;  %566 = vrot.lane.b32.xlu0 %v565_v60, %s1029_s13  ;;  %s1254_s16 = scalar_lea.hbm %s1306_s11, %s847_s17 }
 0x30e   : > { %v573_v61 = vpop.permute.xlu1 %572  ;;  %v567_v62 = vpop.permute.xlu0 %566 }
 0x30f   : > { %v575_v63 = vsel %vm421_vm4, %v559_v53, %v567_v62 }
 0x310   : > { %v576_v0 = vsel %vm423_vm5, %v575_v63, %v573_v61 }
 0x311   : > { %v577_v1 = vpack.c.bf16 %v576_v0, %v576_v0 }
 0x313   : > { %895 = vmatmul.mubr.msk.bf16.vlgmr.msra.gmra.mxu1 %vm468_vm6, %v577_v1 }
 0x3d3   : > { %v657_v3 = vpop.f32.mrf.mxu1 }
 0x3d4   : > { %v658_v4 = vadd.f32 %v836_v2, %v657_v3 }
 0x3d5   : > { %v896_v5 = vpop.f32.mrf.mxu1 }
 0x3d6   : > { %v663_v6 = vmax.f32 %v658_v4, 0.0 }
 0x3d7   : > { %v660_v7 = vpop.f32.mrf.mxu1 }
 0x3d8   : > { %v666_v8 = vsel %vm421_vm4, %v663_v6, 0.0 }
 0x3d9   : > { %667 = vadd.xlane.f32.xlu0 %v666_v8  ;;  %v897_v9 = vpop.f32.mrf.mxu1 }
 0x3ef   : > { %698 = vperm.xlu0 %948, %v695_v15  }
 0x462   : > { %v668_v10 = vpop.xlane.xlu0 %667 }
 0x463   : > { %v669_v11 = vmul.f32 0.03125, %v668_v10 }
 0x465   : > { %v670_v12 = vsub.f32 %v663_v6, %v669_v11 }
 0x467   : > { %v671_v13 = vmul.f32 %v670_v12, %v670_v12 }
 0x469   : > { %v672_v14 = vsel %vm421_vm4, %v671_v13, 0.0 }
 0x46a   : > { %673 = vadd.xlane.f32.xlu1 %v672_v14  ;;  %v699_v32 = vpop.permute.xlu0 %698 }
 0x46b   : > { %v704_v33 = vrot.slane %v699_v32, %v703_v31 }
 0x4f3   : > { %v674_v17 = vpop.xlane.xlu1 %673 }
 0x4f4   : > { %v675_v18 = vmul.f32 0.03125, %v674_v17 }
 0x4f6   : > { %v676_v19 = vadd.f32 1e-05, %v675_v18 }
 0x4f8   : > { %963 = vrsqrt.f32 %v676_v19 }
 0x505   : > { %v964_v20 = vpop.eup %963 }
 0x506   : > { %v678_v22 = vmul.f32 %v964_v20, %v670_v12 }
 0x508   : > { %v685_v24 = vmul.f32 %v844_v21, %v678_v22 }
 0x50a   : > { %v692_v25 = vadd.f32 %v845_v23, %v685_v24 }
 0x50c   : > { %v694_v26 = vpack.c.bf16 %v692_v25, %v692_v25 }
 0x50e   : > { %v709_v27 = vsel %vm421_vm4, %v694_v26, 0 }
 0x50f   : > { %899 = vmatpush3.bf16.xpose.msra.mxu0 %v709_v27 }
 0x516   : > { %901 = vmatmul.mubr.msk.bf16.vlgmr.msra.gmra.mxu0 %vm421_vm4, %v693_v28 }
 0x5d6   : > { %v745_v34 = vpop.f32.mrf.mxu0 }
 0x5d7   : > { %v746_v35 = vadd.f32 %v745_v34, %v704_v33 }
 0x5d8   : > { %v902_v36 = vpop.f32.mrf.mxu0 }
 0x5d9   : > { %752 = vst.msk [vmem:[%s378_s18] sm:$0x1] %vm751_vm7, %v746_v35 }
 0x5da   : > { %v748_v37 = vpop.f32.mrf.mxu0 }
 0x5db   : > { %978 = shalt.err (!%p975_p3)
}
 0x5dc   : > { %s979_s17 = scalar_lea.hbm %s1254_s16, 16  ;;  %s983_s25 = scalar_lea.hbm %s1306_s11, 32 }
 0x5dd   : > { %p980_p4 = scmp.ne.s32.totalorder %s1254_s16, %s979_s17  ;;  %p984_p9 = scmp.lt.s32.totalorder %s1254_s16, %s1306_s11 }
 0x5de   : > { %p985_p10 = scmp.lt.s32.totalorder %s983_s25, %s979_s17 }
 0x5df   : > { %p981_p7 = pnand %p980_p4, %p1134_p5 }
 0x5e0   : > { %p986_p11 = por %p985_p10, %p984_p9 }
 0x5e1   : > { %p982_p8 = pneg %p981_p7 }
 0x5e3   : > { %p987_p12 = pnand %p986_p11, %p982_p8 }
 0x5e5   : > { %990 = shalt.err (!%p987_p12)
}
 0x5e6   : > { %904 = dma.vmem_to_hbm [thread:$0]  (%p1134_p5), %s1256_s23, 16, %s1254_s16, %s754_s26   ;;  %v903_v38 = vpop.f32.mrf.mxu0 }
 0x5e7 PF: > { %p910_p13 = scmp.ge.s32.totalorder %s1025_s22, 2  ;;  %s778_s10 = sand.u32 1, %s1013_s19  }
 0x5e8   : > { %s779_s12 = scalar_lea.sflag [#allocation4], %s778_s10 }
 0x5e9   : > { %p907_p0 = pnand %p910_p13, %p1138_p6 }
 0x5eb   : > { %p908_p1 = pneg %p907_p0 }
 0x5ed   : > { %1008 = dma.done.wait (%p908_p1), %s779_s12, 16  }
 0x5ee   : > { %1010 = vsyncadd (%p908_p1), %s779_s12, 4294967280  ;;  %p23_p2 = scmp.ge.s32.totalorder %s1121_s24, 4   ;;  %s1309_s19 = smov %s1017_s20 }
 0x5ef   : > { %s1310_s20 = smov %s1021_s21  ;;  %s1311_s21 = smov %s1132_s27 }
 0x5f0   : > { %s1312_s22 = smov %s1121_s24  ;;  %25 = sbr.rel (!%p23_p2) target bundleno = 6 (0x6), region = 99 }
 0x5f5   :  { %783 = vsyncpa [#allocation4], 1 }
 0x5f6   :  { %785 = vsyncpa [#allocation4 + $0x1], 1 }

</bundles_post_ra>
